<compile_context>
chip_gen: v5e
topology: v5e:2x2
jax: 0.10.0
libtpu: 0.0.40
codegen_flags: <defaults>
</compile_context>

<pallas_src>
import functools

import jax
import jax.numpy as jnp
from jax.experimental import pallas as pl
from jax.experimental.pallas import tpu as pltpu


# ----------------------------------------------------------------------------
# Fused kernel: 2-layer GAT per relation + Inter_AGG MLP accumulated across
# relations.  grid = (R,), dimension_semantics = ("arbitrary",).
# ----------------------------------------------------------------------------
def margnn_fused_kernel(x_ref, adj1_ref, adj2_ref, thr_ref,
                        w1_ref, a1s_ref, b1_ref, bns_ref, bnb_ref,
                        w2_ref, a2s_ref, b2_ref,
                        wm1_ref, bm1_ref, ms_ref, mb_ref, wm2_ref, bm2_ref,
                        out_ref, acc_ref, *, heads, hid, out_dim):
    r = pl.program_id(0)
    last = pl.num_programs(0) - 1
    hc1 = heads * hid
    n_dst1 = adj1_ref.shape[0]
    n_dst2 = adj2_ref.shape[0]
    contract_last = (((1,), (1,)), ((), ()))   # contract feature axis of both operands

    # ---------- Intra_AGG layer 1: GATConv(heads, concat) + BN + ELU ----------
    # x @ [W1 | W1 a_dst^(h)] : the folded columns ARE the per-head destination
    # attention logits (free extra output columns of the same MXU pass).
    xw1a = jnp.dot(x_ref[...], w1_ref[...],                   # bf16 x bf16 -> f32
                   preferred_element_type=jnp.float32)        # (n_src, hc1 + heads)
    xw1 = xw1a[:, :hc1]                                       # (n_src, hc1)
    # all heads' source logits in ONE small contraction, lane-oriented (heads, n_src)
    alpha_src = jax.lax.dot_general(a1s_ref[...], xw1, contract_last,
                                    preferred_element_type=jnp.float32)
    mask1 = adj1_ref[...].astype(jnp.float32)                 # (n_dst1, n_src) 0/1

    head_outs = []
    for h in range(heads):
        a_dst = xw1a[:n_dst1, hc1 + h:hc1 + h + 1]            # (n_dst1, 1) folded col
        e = a_dst + alpha_src[h:h + 1, :]                     # (n_dst1, n_src)
        e = jnp.where(e > 0.0, e, 0.2 * e)                    # LeakyReLU(0.2)
        # softmax over incoming edges: multiplicative mask only (shift cancels)
        p = jnp.exp(e - jnp.max(e, axis=1, keepdims=True)) * mask1
        denom = jnp.sum(p, axis=1, keepdims=True)
        denom = jnp.where(denom == 0.0, 1.0, denom)           # isolated rows -> attn 0
        attn = p * pl.reciprocal(denom, approx=True)
        head_outs.append(
            jnp.dot(attn.astype(jnp.bfloat16),
                    xw1[:, h * hid:(h + 1) * hid].astype(jnp.bfloat16),
                    preferred_element_type=jnp.float32))
    h1 = jnp.concatenate(head_outs, axis=-1) if heads > 1 else head_outs[0]
    h1 = h1 + b1_ref[...]                                     # GATConv bias
    h1 = h1 * bns_ref[...] + bnb_ref[...]                     # eval BatchNorm (folded)
    h1 = jnp.where(h1 > 0.0, h1, jnp.exp(jnp.minimum(h1, 0.0)) - 1.0)  # ELU; dropout=id

    # ---------- Intra_AGG layer 2: GATConv (1 head) ---------------------------
    xw2a = jnp.dot(h1.astype(jnp.bfloat16), w2_ref[...],
                   preferred_element_type=jnp.float32)        # (n_dst1, out_dim + 1)
    xw2 = xw2a[:, :out_dim]
    alpha_src2 = jax.lax.dot_general(a2s_ref[...], xw2, contract_last,
                                     preferred_element_type=jnp.float32)  # (1, n_dst1)
    e2 = xw2a[:n_dst2, out_dim:out_dim + 1] + alpha_src2      # (n_dst2, n_dst1)
    e2 = jnp.where(e2 > 0.0, e2, 0.2 * e2)
    mask2 = adj2_ref[...].astype(jnp.float32)
    p2 = jnp.exp(e2 - jnp.max(e2, axis=1, keepdims=True)) * mask2
    d2 = jnp.sum(p2, axis=1, keepdims=True)
    d2 = jnp.where(d2 == 0.0, 1.0, d2)
    attn2 = p2 * pl.reciprocal(d2, approx=True)
    feat = jnp.dot(attn2.astype(jnp.bfloat16), xw2.astype(jnp.bfloat16),
                   preferred_element_type=jnp.float32) + b2_ref[...]  # (n_dst2, out_dim)

    # ---------- Inter_AGG 'cat_w_avg_mlp', fused ------------------------------
    # concat_r(thr_r*feat_r) @ W_mlp1 == sum_r (thr_r*feat_r) @ W_mlp1[rD:(r+1)D, :]
    # -> accumulate the first MLP layer per relation; no transpose/reshape glue,
    #    no HBM round trip of the per-relation features, no second launch.
    @pl.when(r == 0)
    def _():
        acc_ref[...] = jnp.zeros_like(acc_ref)

    acc_ref[...] += jnp.dot((feat * thr_ref[...]).astype(jnp.bfloat16), wm1_ref[...],
                            preferred_element_type=jnp.float32)

    @pl.when(r == last)
    def _():
        hmid = acc_ref[...] + bm1_ref[...]                    # Linear bias
        hmid = jnp.maximum(hmid * ms_ref[...] + mb_ref[...], 0.0)  # eval BN + ReLU
        out_ref[...] = jnp.dot(hmid.astype(jnp.bfloat16), wm2_ref[...],
                               preferred_element_type=jnp.float32) + bm2_ref[...]


def fused_margnn_call(x_rel, adj1, adj2, thr, params, *, heads, hid_dim, out_dim):
    R, n_src, f_in = x_rel.shape
    n_dst1 = adj1.shape[1]
    n_dst2 = adj2.shape[1]
    assert n_dst1 <= n_src and n_dst2 <= n_dst1
    hc1 = heads * hid_dim
    mlp_in = R * out_dim
    p_i, p_m = params["intra"], params["inter"]

    rel = lambda r: (r, 0, 0)          # per-relation block
    const2 = lambda r: (0, 0)          # resident across the relation axis

    kernel = functools.partial(margnn_fused_kernel,
                               heads=heads, hid=hid_dim, out_dim=out_dim)

    grid_spec = pltpu.PrefetchScalarGridSpec(
        num_scalar_prefetch=0,
        grid=(R,),
        in_specs=[
            pl.BlockSpec((None, n_src, f_in), rel),            # x            bf16
            pl.BlockSpec((None, n_dst1, n_src), rel),          # adj hop-1    int8
            pl.BlockSpec((None, n_dst2, n_dst1), rel),         # adj hop-2    int8
            pl.BlockSpec((None, 1, out_dim), rel),             # RL threshold f32
            pl.BlockSpec((None, f_in, hc1 + heads), rel),      # [W1 | dst-att cols]
            pl.BlockSpec((None, heads, hc1), rel),             # src-att rows (layer 1)
            pl.BlockSpec((None, 1, hc1), rel),                 # bias1
            pl.BlockSpec((None, 1, hc1), rel),                 # bn scale (folded)
            pl.BlockSpec((None, 1, hc1), rel),                 # bn shift (folded)
            pl.BlockSpec((None, hc1, out_dim + 1), rel),       # [W2 | dst-att col]
            pl.BlockSpec((None, 1, out_dim), rel),             # att_src2
            pl.BlockSpec((None, 1, out_dim), rel),             # bias2
            pl.BlockSpec((None, out_dim, mlp_in), rel),        # MLP W1 row-block r
            pl.BlockSpec((1, mlp_in), const2),                 # MLP b1
            pl.BlockSpec((1, mlp_in), const2),                 # MLP bn scale
            pl.BlockSpec((1, mlp_in), const2),                 # MLP bn shift
            pl.BlockSpec((mlp_in, out_dim), const2),           # MLP W2
            pl.BlockSpec((1, out_dim), const2),                # MLP b2
        ],
        out_specs=pl.BlockSpec((n_dst2, out_dim), const2),
        scratch_shapes=[pltpu.VMEM((n_dst2, mlp_in), jnp.float32)],  # MLP-1 accumulator
    )
    return pl.pallas_call(
        kernel,
        out_shape=jax.ShapeDtypeStruct((n_dst2, out_dim), jnp.float32),
        grid_spec=grid_spec,
        # relation axis must be sequential: the Inter_AGG accumulator spans relations
        compiler_params=pltpu.CompilerParams(dimension_semantics=("arbitrary",)),
    )(x_rel, adj1, adj2, thr,
      p_i["w1_aug"], p_i["att_src1_rows"], p_i["bias1"], p_i["bn_scale"], p_i["bn_shift"],
      p_i["w2_aug"], p_i["att_src2"], p_i["bias2"],
      p_m["w1_blocks"], p_m["b1"], p_m["bn_scale"], p_m["bn_shift"],
      p_m["w2"], p_m["b2"])


# ----------------------------------------------------------------------------
# MarGNN forward (is_shared=False, inter_opt='cat_w_avg_mlp')
# ----------------------------------------------------------------------------
def margnn_forward(x, adjs, n_ids, params, rl_thresholds, *, heads, hid_dim, out_dim):
    R = params["intra"]["w1_aug"].shape[0]
    if rl_thresholds is None:
        rl_thresholds = jnp.ones((R, 1), jnp.float32)
    thr = jnp.asarray(rl_thresholds, jnp.float32).reshape(R, 1, 1)
    thr = jnp.broadcast_to(thr, (R, 1, out_dim))   # lane-friendly threshold block

    # Per-relation neighbour-sampled gather stays XLA glue at these sizes.
    # TODO(synk): move the gather in-kernel via scalar-prefetched row tables
    # once the graphs are large (avoids R HBM copies of the sampled rows).
    x_rel = jnp.stack([x[n_ids[i]] for i in range(R)], axis=0).astype(jnp.bfloat16)
    adj1 = jnp.stack([adjs[i][0] for i in range(R)], axis=0).astype(jnp.int8)
    adj2 = jnp.stack([adjs[i][1] for i in range(R)], axis=0).astype(jnp.int8)

    return fused_margnn_call(x_rel, adj1, adj2, thr, params,
                             heads=heads, hid_dim=hid_dim, out_dim=out_dim)


# ----------------------------------------------------------------------------
# Deterministic parameter construction (eval-mode BN stats folded host-side,
# destination attention vectors folded into W1/W2 as extra columns).
# ----------------------------------------------------------------------------
def init_params(key, num_relations, in_dim, hid_dim, out_dim, heads, eps=1e-5):
    R = num_relations
    hc1 = heads * hid_dim
    keys = iter(jax.random.split(key, 32))

    def nrm(shape):
        return 0.1 * jax.random.normal(next(keys), shape, jnp.float32)

    # block-row layout over the concatenated head dim: rows[r,h, h*hid+c] = att[r,h,c]
    eye = jnp.eye(heads, dtype=jnp.float32)
    def to_rows(att):                                  # (R, H, C) -> (R, H, H*C)
        return (eye[None, :, :, None] * att[:, :, None, :]).reshape(R, heads, hc1)

    w1 = nrm((R, in_dim, hc1))
    att_src1_rows = to_rows(nrm((R, heads, hid_dim)))
    att_dst1_rows = to_rows(nrm((R, heads, hid_dim)))
    # fold dst attention into W1: column hc1+h of x@W1_aug == per-head dst logit
    dst_cols1 = jnp.einsum('rfk,rhk->rfh', w1, att_dst1_rows)      # (R, in_dim, heads)
    w1_aug = jnp.concatenate([w1, dst_cols1], axis=-1).astype(jnp.bfloat16)

    # BatchNorm1d eval: running_mean=0, running_var=1 (real stats pluggable here)
    gamma, beta = jnp.ones((R, 1, hc1)), jnp.zeros((R, 1, hc1))
    r_mean, r_var = jnp.zeros((R, 1, hc1)), jnp.ones((R, 1, hc1))
    bn_scale = gamma * jax.lax.rsqrt(r_var + eps)
    bn_shift = beta - r_mean * bn_scale

    w2 = nrm((R, hc1, out_dim))
    att_src2 = nrm((R, 1, out_dim))
    att_dst2 = nrm((R, 1, out_dim))
    dst_col2 = jnp.einsum('rkd,rod->rko', w2, att_dst2)            # (R, hc1, 1)
    w2_aug = jnp.concatenate([w2, dst_col2], axis=-1).astype(jnp.bfloat16)

    intra = dict(
        w1_aug=w1_aug, att_src1_rows=att_src1_rows, bias1=nrm((R, 1, hc1)),
        bn_scale=bn_scale, bn_shift=bn_shift,
        w2_aug=w2_aug, att_src2=att_src2, bias2=nrm((R, 1, out_dim)),
    )

    mlp_in = R * out_dim
    g2, b2 = jnp.ones((1, mlp_in)), jnp.zeros((1, mlp_in))
    m2, v2 = jnp.zeros((1, mlp_in)), jnp.ones((1, mlp_in))
    s2 = g2 * jax.lax.rsqrt(v2 + eps)
    w_mlp1 = nrm((mlp_in, mlp_in))
    inter = dict(
        # per-relation row blocks of the first MLP Linear so it can be
        # accumulated relation-by-relation inside the fused kernel
        w1_blocks=w_mlp1.reshape(R, out_dim, mlp_in).astype(jnp.bfloat16),
        b1=nrm((1, mlp_in)),
        bn_scale=s2, bn_shift=b2 - m2 * s2,
        w2=nrm((mlp_in, out_dim)).astype(jnp.bfloat16),
        b2=nrm((1, out_dim)),
    )
    return {"intra": intra, "inter": inter}


if __name__ == "__main__":
    # GNN_args = (in_dim, hid_dim, out_dim, heads); num_relations = 3 (FinEvent default)
    num_relations = 3
    in_dim, hid_dim, out_dim, heads = 64, 16, 16, 2
    n_total, n_src, n_dst1, n_dst2 = 300, 256, 128, 64   # 2-hop neighbour-sampled sizes

    key = jax.random.PRNGKey(0)
    k_x, k_ids, k_a1, k_a2, k_p = jax.random.split(key, 5)

    x = jax.random.normal(k_x, (n_total, in_dim), jnp.float32)

    n_ids, adjs = [], []
    for i in range(num_relations):
        ki = jax.random.fold_in(k_ids, i)
        n_ids.append(jax.random.permutation(ki, n_total)[:n_src])
        a1 = jax.random.uniform(jax.random.fold_in(k_a1, i), (n_dst1, n_src)) < 0.15
        a2 = jax.random.uniform(jax.random.fold_in(k_a2, i), (n_dst2, n_dst1)) < 0.15
        # guarantee >=1 incoming edge per target (self edge), like sampled subgraphs
        a1 = jnp.logical_or(a1, jnp.eye(n_dst1, n_src, dtype=bool))
        a2 = jnp.logical_or(a2, jnp.eye(n_dst2, n_dst1, dtype=bool))
        adjs.append((a1.astype(jnp.int8), a2.astype(jnp.int8)))

    params = init_params(k_p, num_relations, in_dim, hid_dim, out_dim, heads)
    rl_thresholds = jnp.array([[1.0], [1.0], [1.0]], jnp.float32)

    fwd = jax.jit(functools.partial(margnn_forward, heads=heads,
                                    hid_dim=hid_dim, out_dim=out_dim))
    out = fwd(x, adjs, n_ids, params, rl_thresholds)
    out = jax.block_until_ready(out)

    assert out.shape == (n_dst2, out_dim)
    assert bool(jnp.all(jnp.isfinite(out)))
    print("KERNEL_OK")
</pallas_src>

<mosaic_0001>
module attributes {stable_mosaic.version = 11 : i64} {
  func.func @margnn_fused_kernel(%arg0: i32, %arg1: memref<1x256x64xbf16, #tpu.memory_space<vmem>>, %arg2: memref<1x128x256xi8, #tpu.memory_space<vmem>>, %arg3: memref<1x64x128xi8, #tpu.memory_space<vmem>>, %arg4: memref<1x1x16xf32, #tpu.memory_space<vmem>>, %arg5: memref<1x64x34xbf16, #tpu.memory_space<vmem>>, %arg6: memref<1x2x32xf32, #tpu.memory_space<vmem>>, %arg7: memref<1x1x32xf32, #tpu.memory_space<vmem>>, %arg8: memref<1x1x32xf32, #tpu.memory_space<vmem>>, %arg9: memref<1x1x32xf32, #tpu.memory_space<vmem>>, %arg10: memref<1x32x17xbf16, #tpu.memory_space<vmem>>, %arg11: memref<1x1x16xf32, #tpu.memory_space<vmem>>, %arg12: memref<1x1x16xf32, #tpu.memory_space<vmem>>, %arg13: memref<1x16x48xbf16, #tpu.memory_space<vmem>>, %arg14: memref<1x48xf32, #tpu.memory_space<vmem>>, %arg15: memref<1x48xf32, #tpu.memory_space<vmem>>, %arg16: memref<1x48xf32, #tpu.memory_space<vmem>>, %arg17: memref<48x16xbf16, #tpu.memory_space<vmem>>, %arg18: memref<1x16xf32, #tpu.memory_space<vmem>>, %arg19: memref<64x16xf32, #tpu.memory_space<vmem>>, %arg20: memref<64x48xf32, #tpu.memory_space<vmem>>) attributes {dimension_semantics = [#tpu.dimension_semantics<arbitrary>], iteration_bounds = array<i64: 3>, scalar_prefetch = 0 : i64, scratch_operands = 1 : i64, tpu.core_type = #tpu.core_type<tc>, window_params = [{transform_indices = @transform_0, window_bounds = array<i64: 1, 256, 64>}, {transform_indices = @transform_1, window_bounds = array<i64: 1, 128, 256>}, {transform_indices = @transform_2, window_bounds = array<i64: 1, 64, 128>}, {transform_indices = @transform_3, window_bounds = array<i64: 1, 1, 16>}, {transform_indices = @transform_4, window_bounds = array<i64: 1, 64, 34>}, {transform_indices = @transform_5, window_bounds = array<i64: 1, 2, 32>}, {transform_indices = @transform_6, window_bounds = array<i64: 1, 1, 32>}, {transform_indices = @transform_7, window_bounds = array<i64: 1, 1, 32>}, {transform_indices = @transform_8, window_bounds = array<i64: 1, 1, 32>}, {transform_indices = @transform_9, window_bounds = array<i64: 1, 32, 17>}, {transform_indices = @transform_10, window_bounds = array<i64: 1, 1, 16>}, {transform_indices = @transform_11, window_bounds = array<i64: 1, 1, 16>}, {transform_indices = @transform_12, window_bounds = array<i64: 1, 16, 48>}, {pipeline_mode = #tpu.pipeline_mode<synchronous>, transform_indices = @transform_13, window_bounds = array<i64: 1, 48>}, {pipeline_mode = #tpu.pipeline_mode<synchronous>, transform_indices = @transform_14, window_bounds = array<i64: 1, 48>}, {pipeline_mode = #tpu.pipeline_mode<synchronous>, transform_indices = @transform_15, window_bounds = array<i64: 1, 48>}, {pipeline_mode = #tpu.pipeline_mode<synchronous>, transform_indices = @transform_16, window_bounds = array<i64: 48, 16>}, {pipeline_mode = #tpu.pipeline_mode<synchronous>, transform_indices = @transform_17, window_bounds = array<i64: 1, 16>}, {pipeline_mode = #tpu.pipeline_mode<synchronous>, transform_indices = @transform_18, window_bounds = array<i64: 64, 16>}]} {
    %c0 = arith.constant 0 : index
    %c0_0 = arith.constant 0 : index
    %c0_1 = arith.constant 0 : index
    %0 = vector.load %arg1[%c0, %c0_0, %c0_1] : memref<1x256x64xbf16, #tpu.memory_space<vmem>>, vector<1x256x64xbf16>
    %1 = vector.shape_cast %0 : vector<1x256x64xbf16> to vector<256x64xbf16>
    %c0_2 = arith.constant 0 : index
    %c0_3 = arith.constant 0 : index
    %c0_4 = arith.constant 0 : index
    %2 = vector.load %arg5[%c0_2, %c0_3, %c0_4] : memref<1x64x34xbf16, #tpu.memory_space<vmem>>, vector<1x64x34xbf16>
    %3 = vector.shape_cast %2 : vector<1x64x34xbf16> to vector<64x34xbf16>
    %cst = arith.constant dense<0.000000e+00> : vector<256x34xf32>
    %4 = tpu.matmul %1, %3, %cst {dimension_numbers = #tpu.dot_dimension_numbers<[1], [0], [0], [1], [0, 0, 1, 1], [], []>} : vector<256x64xbf16>, vector<64x34xbf16>, vector<256x34xf32> -> vector<256x34xf32>
    %5 = vector.extract_strided_slice %4 {offsets = [0, 0], sizes = [256, 32], strides = [1, 1]} : vector<256x34xf32> to vector<256x32xf32>
    %c0_5 = arith.constant 0 : index
    %c0_6 = arith.constant 0 : index
    %c0_7 = arith.constant 0 : index
    %6 = vector.load %arg6[%c0_5, %c0_6, %c0_7] : memref<1x2x32xf32, #tpu.memory_space<vmem>>, vector<1x2x32xf32>
    %7 = vector.shape_cast %6 : vector<1x2x32xf32> to vector<2x32xf32>
    %cst_8 = arith.constant dense<0.000000e+00> : vector<2x256xf32>
    %8 = tpu.matmul %7, %5, %cst_8 {dimension_numbers = #tpu.dot_dimension_numbers<[1], [1], [0], [0], [0, 0, 1, 0], [], []>} : vector<2x32xf32>, vector<256x32xf32>, vector<2x256xf32> -> vector<2x256xf32>
    %c0_9 = arith.constant 0 : index
    %c0_10 = arith.constant 0 : index
    %c0_11 = arith.constant 0 : index
    %9 = vector.load %arg2[%c0_9, %c0_10, %c0_11] : memref<1x128x256xi8, #tpu.memory_space<vmem>>, vector<1x128x256xi8>
    %10 = vector.shape_cast %9 : vector<1x128x256xi8> to vector<128x256xi8>
    %11 = arith.sitofp %10 : vector<128x256xi8> to vector<128x256xf32>
    %12 = vector.extract_strided_slice %4 {offsets = [0, 32], sizes = [128, 1], strides = [1, 1]} : vector<256x34xf32> to vector<128x1xf32>
    %13 = vector.extract_strided_slice %8 {offsets = [0, 0], sizes = [1, 256], strides = [1, 1]} : vector<2x256xf32> to vector<1x256xf32>
    %14 = vector.broadcast %12 : vector<128x1xf32> to vector<128x256xf32>
    %15 = vector.broadcast %13 : vector<1x256xf32> to vector<128x256xf32>
    %16 = arith.addf %14, %15 : vector<128x256xf32>
    %cst_12 = arith.constant 0.000000e+00 : f32
    %17 = vector.broadcast %cst_12 : f32 to vector<128x256xf32>
    %18 = arith.cmpf ogt, %16, %17 : vector<128x256xf32>
    %cst_13 = arith.constant 2.000000e-01 : f32
    %19 = vector.broadcast %cst_13 : f32 to vector<128x256xf32>
    %20 = arith.mulf %19, %16 : vector<128x256xf32>
    %21 = arith.select %18, %16, %20 : vector<128x256xi1>, vector<128x256xf32>
    %cst_14 = arith.constant dense<0xFF800000> : vector<128xf32>
    %22 = vector.multi_reduction <maximumf>, %21, %cst_14 [1] : vector<128x256xf32> to vector<128xf32>
    %23 = vector.shape_cast %22 : vector<128xf32> to vector<128x1xf32>
    %24 = vector.broadcast %23 : vector<128x1xf32> to vector<128x256xf32>
    %25 = arith.subf %21, %24 : vector<128x256xf32>
    %26 = math.exp %25 : vector<128x256xf32>
    %27 = arith.mulf %26, %11 : vector<128x256xf32>
    %cst_15 = arith.constant dense<0.000000e+00> : vector<128xf32>
    %28 = vector.multi_reduction <add>, %27, %cst_15 [1] : vector<128x256xf32> to vector<128xf32>
    %29 = vector.shape_cast %28 : vector<128xf32> to vector<128x1xf32>
    %cst_16 = arith.constant 0.000000e+00 : f32
    %30 = vector.broadcast %cst_16 : f32 to vector<128x1xf32>
    %31 = arith.cmpf oeq, %29, %30 : vector<128x1xf32>
    %cst_17 = arith.constant 1.000000e+00 : f32
    %32 = vector.broadcast %cst_17 : f32 to vector<128x1xf32>
    %33 = arith.select %31, %32, %29 : vector<128x1xi1>, vector<128x1xf32>
    %34 = tpu.reciprocal %33 {approx = true} : vector<128x1xf32> -> vector<128x1xf32>
    %35 = vector.broadcast %34 : vector<128x1xf32> to vector<128x256xf32>
    %36 = arith.mulf %27, %35 : vector<128x256xf32>
    %37 = arith.truncf %36 : vector<128x256xf32> to vector<128x256xbf16>
    %38 = vector.extract_strided_slice %5 {offsets = [0, 0], sizes = [256, 16], strides = [1, 1]} : vector<256x32xf32> to vector<256x16xf32>
    %39 = arith.truncf %38 : vector<256x16xf32> to vector<256x16xbf16>
    %cst_18 = arith.constant dense<0.000000e+00> : vector<128x16xf32>
    %40 = tpu.matmul %37, %39, %cst_18 {dimension_numbers = #tpu.dot_dimension_numbers<[1], [0], [0], [1], [0, 0, 1, 1], [], []>} : vector<128x256xbf16>, vector<256x16xbf16>, vector<128x16xf32> -> vector<128x16xf32>
    %41 = vector.extract_strided_slice %4 {offsets = [0, 33], sizes = [128, 1], strides = [1, 1]} : vector<256x34xf32> to vector<128x1xf32>
    %42 = vector.extract_strided_slice %8 {offsets = [1, 0], sizes = [1, 256], strides = [1, 1]} : vector<2x256xf32> to vector<1x256xf32>
    %43 = vector.broadcast %41 : vector<128x1xf32> to vector<128x256xf32>
    %44 = vector.broadcast %42 : vector<1x256xf32> to vector<128x256xf32>
    %45 = arith.addf %43, %44 : vector<128x256xf32>
    %cst_19 = arith.constant 0.000000e+00 : f32
    %46 = vector.broadcast %cst_19 : f32 to vector<128x256xf32>
    %47 = arith.cmpf ogt, %45, %46 : vector<128x256xf32>
    %cst_20 = arith.constant 2.000000e-01 : f32
    %48 = vector.broadcast %cst_20 : f32 to vector<128x256xf32>
    %49 = arith.mulf %48, %45 : vector<128x256xf32>
    %50 = arith.select %47, %45, %49 : vector<128x256xi1>, vector<128x256xf32>
    %cst_21 = arith.constant dense<0xFF800000> : vector<128xf32>
    %51 = vector.multi_reduction <maximumf>, %50, %cst_21 [1] : vector<128x256xf32> to vector<128xf32>
    %52 = vector.shape_cast %51 : vector<128xf32> to vector<128x1xf32>
    %53 = vector.broadcast %52 : vector<128x1xf32> to vector<128x256xf32>
    %54 = arith.subf %50, %53 : vector<128x256xf32>
    %55 = math.exp %54 : vector<128x256xf32>
    %56 = arith.mulf %55, %11 : vector<128x256xf32>
    %cst_22 = arith.constant dense<0.000000e+00> : vector<128xf32>
    %57 = vector.multi_reduction <add>, %56, %cst_22 [1] : vector<128x256xf32> to vector<128xf32>
    %58 = vector.shape_cast %57 : vector<128xf32> to vector<128x1xf32>
    %cst_23 = arith.constant 0.000000e+00 : f32
    %59 = vector.broadcast %cst_23 : f32 to vector<128x1xf32>
    %60 = arith.cmpf oeq, %58, %59 : vector<128x1xf32>
    %cst_24 = arith.constant 1.000000e+00 : f32
    %61 = vector.broadcast %cst_24 : f32 to vector<128x1xf32>
    %62 = arith.select %60, %61, %58 : vector<128x1xi1>, vector<128x1xf32>
    %63 = tpu.reciprocal %62 {approx = true} : vector<128x1xf32> -> vector<128x1xf32>
    %64 = vector.broadcast %63 : vector<128x1xf32> to vector<128x256xf32>
    %65 = arith.mulf %56, %64 : vector<128x256xf32>
    %66 = arith.truncf %65 : vector<128x256xf32> to vector<128x256xbf16>
    %67 = vector.extract_strided_slice %5 {offsets = [0, 16], sizes = [256, 16], strides = [1, 1]} : vector<256x32xf32> to vector<256x16xf32>
    %68 = arith.truncf %67 : vector<256x16xf32> to vector<256x16xbf16>
    %cst_25 = arith.constant dense<0.000000e+00> : vector<128x16xf32>
    %69 = tpu.matmul %66, %68, %cst_25 {dimension_numbers = #tpu.dot_dimension_numbers<[1], [0], [0], [1], [0, 0, 1, 1], [], []>} : vector<128x256xbf16>, vector<256x16xbf16>, vector<128x16xf32> -> vector<128x16xf32>
    %70 = tpu.concatenate %40, %69 in 1 : vector<128x16xf32>, vector<128x16xf32> -> vector<128x32xf32>
    %c0_26 = arith.constant 0 : index
    %c0_27 = arith.constant 0 : index
    %c0_28 = arith.constant 0 : index
    %71 = vector.load %arg7[%c0_26, %c0_27, %c0_28] : memref<1x1x32xf32, #tpu.memory_space<vmem>>, vector<1x1x32xf32>
    %72 = vector.shape_cast %71 : vector<1x1x32xf32> to vector<1x32xf32>
    %73 = vector.broadcast %72 : vector<1x32xf32> to vector<128x32xf32>
    %74 = arith.addf %70, %73 : vector<128x32xf32>
    %c0_29 = arith.constant 0 : index
    %c0_30 = arith.constant 0 : index
    %c0_31 = arith.constant 0 : index
    %75 = vector.load %arg8[%c0_29, %c0_30, %c0_31] : memref<1x1x32xf32, #tpu.memory_space<vmem>>, vector<1x1x32xf32>
    %76 = vector.shape_cast %75 : vector<1x1x32xf32> to vector<1x32xf32>
    %77 = vector.broadcast %76 : vector<1x32xf32> to vector<128x32xf32>
    %78 = arith.mulf %74, %77 : vector<128x32xf32>
    %c0_32 = arith.constant 0 : index
    %c0_33 = arith.constant 0 : index
    %c0_34 = arith.constant 0 : index
    %79 = vector.load %arg9[%c0_32, %c0_33, %c0_34] : memref<1x1x32xf32, #tpu.memory_space<vmem>>, vector<1x1x32xf32>
    %80 = vector.shape_cast %79 : vector<1x1x32xf32> to vector<1x32xf32>
    %81 = vector.broadcast %80 : vector<1x32xf32> to vector<128x32xf32>
    %82 = arith.addf %78, %81 : vector<128x32xf32>
    %cst_35 = arith.constant 0.000000e+00 : f32
    %83 = vector.broadcast %cst_35 : f32 to vector<128x32xf32>
    %84 = arith.cmpf ogt, %82, %83 : vector<128x32xf32>
    %cst_36 = arith.constant 0.000000e+00 : f32
    %85 = vector.broadcast %cst_36 : f32 to vector<128x32xf32>
    %86 = arith.minimumf %82, %85 : vector<128x32xf32>
    %87 = math.exp %86 : vector<128x32xf32>
    %cst_37 = arith.constant 1.000000e+00 : f32
    %88 = vector.broadcast %cst_37 : f32 to vector<128x32xf32>
    %89 = arith.subf %87, %88 : vector<128x32xf32>
    %90 = arith.select %84, %82, %89 : vector<128x32xi1>, vector<128x32xf32>
    %91 = arith.truncf %90 : vector<128x32xf32> to vector<128x32xbf16>
    %c0_38 = arith.constant 0 : index
    %c0_39 = arith.constant 0 : index
    %c0_40 = arith.constant 0 : index
    %92 = vector.load %arg10[%c0_38, %c0_39, %c0_40] : memref<1x32x17xbf16, #tpu.memory_space<vmem>>, vector<1x32x17xbf16>
    %93 = vector.shape_cast %92 : vector<1x32x17xbf16> to vector<32x17xbf16>
    %cst_41 = arith.constant dense<0.000000e+00> : vector<128x17xf32>
    %94 = tpu.matmul %91, %93, %cst_41 {dimension_numbers = #tpu.dot_dimension_numbers<[1], [0], [0], [1], [0, 0, 1, 1], [], []>} : vector<128x32xbf16>, vector<32x17xbf16>, vector<128x17xf32> -> vector<128x17xf32>
    %95 = vector.extract_strided_slice %94 {offsets = [0, 0], sizes = [128, 16], strides = [1, 1]} : vector<128x17xf32> to vector<128x16xf32>
    %c0_42 = arith.constant 0 : index
    %c0_43 = arith.constant 0 : index
    %c0_44 = arith.constant 0 : index
    %96 = vector.load %arg11[%c0_42, %c0_43, %c0_44] : memref<1x1x16xf32, #tpu.memory_space<vmem>>, vector<1x1x16xf32>
    %97 = vector.shape_cast %96 : vector<1x1x16xf32> to vector<1x16xf32>
    %cst_45 = arith.constant dense<0.000000e+00> : vector<1x128xf32>
    %98 = tpu.matmul %97, %95, %cst_45 {dimension_numbers = #tpu.dot_dimension_numbers<[1], [1], [0], [0], [0, 0, 1, 0], [], []>} : vector<1x16xf32>, vector<128x16xf32>, vector<1x128xf32> -> vector<1x128xf32>
    %99 = vector.extract_strided_slice %94 {offsets = [0, 16], sizes = [64, 1], strides = [1, 1]} : vector<128x17xf32> to vector<64x1xf32>
    %100 = vector.broadcast %99 : vector<64x1xf32> to vector<64x128xf32>
    %101 = vector.broadcast %98 : vector<1x128xf32> to vector<64x128xf32>
    %102 = arith.addf %100, %101 : vector<64x128xf32>
    %cst_46 = arith.constant 0.000000e+00 : f32
    %103 = vector.broadcast %cst_46 : f32 to vector<64x128xf32>
    %104 = arith.cmpf ogt, %102, %103 : vector<64x128xf32>
    %cst_47 = arith.constant 2.000000e-01 : f32
    %105 = vector.broadcast %cst_47 : f32 to vector<64x128xf32>
    %106 = arith.mulf %105, %102 : vector<64x128xf32>
    %107 = arith.select %104, %102, %106 : vector<64x128xi1>, vector<64x128xf32>
    %c0_48 = arith.constant 0 : index
    %c0_49 = arith.constant 0 : index
    %c0_50 = arith.constant 0 : index
    %108 = vector.load %arg3[%c0_48, %c0_49, %c0_50] : memref<1x64x128xi8, #tpu.memory_space<vmem>>, vector<1x64x128xi8>
    %109 = vector.shape_cast %108 : vector<1x64x128xi8> to vector<64x128xi8>
    %110 = arith.sitofp %109 : vector<64x128xi8> to vector<64x128xf32>
    %cst_51 = arith.constant dense<0xFF800000> : vector<64xf32>
    %111 = vector.multi_reduction <maximumf>, %107, %cst_51 [1] : vector<64x128xf32> to vector<64xf32>
    %112 = vector.shape_cast %111 : vector<64xf32> to vector<64x1xf32>
    %113 = vector.broadcast %112 : vector<64x1xf32> to vector<64x128xf32>
    %114 = arith.subf %107, %113 : vector<64x128xf32>
    %115 = math.exp %114 : vector<64x128xf32>
    %116 = arith.mulf %115, %110 : vector<64x128xf32>
    %cst_52 = arith.constant dense<0.000000e+00> : vector<64xf32>
    %117 = vector.multi_reduction <add>, %116, %cst_52 [1] : vector<64x128xf32> to vector<64xf32>
    %118 = vector.shape_cast %117 : vector<64xf32> to vector<64x1xf32>
    %cst_53 = arith.constant 0.000000e+00 : f32
    %119 = vector.broadcast %cst_53 : f32 to vector<64x1xf32>
    %120 = arith.cmpf oeq, %118, %119 : vector<64x1xf32>
    %cst_54 = arith.constant 1.000000e+00 : f32
    %121 = vector.broadcast %cst_54 : f32 to vector<64x1xf32>
    %122 = arith.select %120, %121, %118 : vector<64x1xi1>, vector<64x1xf32>
    %123 = tpu.reciprocal %122 {approx = true} : vector<64x1xf32> -> vector<64x1xf32>
    %124 = vector.broadcast %123 : vector<64x1xf32> to vector<64x128xf32>
    %125 = arith.mulf %116, %124 : vector<64x128xf32>
    %126 = arith.truncf %125 : vector<64x128xf32> to vector<64x128xbf16>
    %127 = arith.truncf %95 : vector<128x16xf32> to vector<128x16xbf16>
    %cst_55 = arith.constant dense<0.000000e+00> : vector<64x16xf32>
    %128 = tpu.matmul %126, %127, %cst_55 {dimension_numbers = #tpu.dot_dimension_numbers<[1], [0], [0], [1], [0, 0, 1, 1], [], []>} : vector<64x128xbf16>, vector<128x16xbf16>, vector<64x16xf32> -> vector<64x16xf32>
    %c0_56 = arith.constant 0 : index
    %c0_57 = arith.constant 0 : index
    %c0_58 = arith.constant 0 : index
    %129 = vector.load %arg12[%c0_56, %c0_57, %c0_58] : memref<1x1x16xf32, #tpu.memory_space<vmem>>, vector<1x1x16xf32>
    %130 = vector.shape_cast %129 : vector<1x1x16xf32> to vector<1x16xf32>
    %131 = vector.broadcast %130 : vector<1x16xf32> to vector<64x16xf32>
    %132 = arith.addf %128, %131 : vector<64x16xf32>
    %c0_i32 = arith.constant 0 : i32
    %133 = arith.cmpi eq, %arg0, %c0_i32 : i32
    %134 = arith.extui %133 : i1 to i32
    %c0_i32_59 = arith.constant 0 : i32
    %135 = arith.cmpi ne, %134, %c0_i32_59 : i32
    scf.if %135 {
      %cst_72 = arith.constant 0.000000e+00 : f32
      %150 = vector.broadcast %cst_72 : f32 to vector<64x48xf32>
      %c0_73 = arith.constant 0 : index
      %c0_74 = arith.constant 0 : index
      %151 = vector.load %arg20[%c0_73, %c0_74] : memref<64x48xf32, #tpu.memory_space<vmem>>, vector<64x48xf32>
      tpu.vector_store %arg20[%c0_73, %c0_74], %150 {strides = array<i32>} : memref<64x48xf32, #tpu.memory_space<vmem>>, vector<64x48xf32>,
    } else {
    }
    %c0_60 = arith.constant 0 : index
    %c0_61 = arith.constant 0 : index
    %136 = vector.load %arg20[%c0_60, %c0_61] : memref<64x48xf32, #tpu.memory_space<vmem>>, vector<64x48xf32>
    %c0_62 = arith.constant 0 : index
    %c0_63 = arith.constant 0 : index
    %c0_64 = arith.constant 0 : index
    %137 = vector.load %arg4[%c0_62, %c0_63, %c0_64] : memref<1x1x16xf32, #tpu.memory_space<vmem>>, vector<1x1x16xf32>
    %138 = vector.shape_cast %137 : vector<1x1x16xf32> to vector<1x16xf32>
    %139 = vector.broadcast %138 : vector<1x16xf32> to vector<64x16xf32>
    %140 = arith.mulf %132, %139 : vector<64x16xf32>
    %141 = arith.truncf %140 : vector<64x16xf32> to vector<64x16xbf16>
    %c0_65 = arith.constant 0 : index
    %c0_66 = arith.constant 0 : index
    %c0_67 = arith.constant 0 : index
    %142 = vector.load %arg13[%c0_65, %c0_66, %c0_67] : memref<1x16x48xbf16, #tpu.memory_space<vmem>>, vector<1x16x48xbf16>
    %143 = vector.shape_cast %142 : vector<1x16x48xbf16> to vector<16x48xbf16>
    %cst_68 = arith.constant dense<0.000000e+00> : vector<64x48xf32>
    %144 = tpu.matmul %141, %143, %cst_68 {dimension_numbers = #tpu.dot_dimension_numbers<[1], [0], [0], [1], [0, 0, 1, 1], [], []>} : vector<64x16xbf16>, vector<16x48xbf16>, vector<64x48xf32> -> vector<64x48xf32>
    %145 = arith.addf %136, %144 : vector<64x48xf32>
    %c0_69 = arith.constant 0 : index
    %c0_70 = arith.constant 0 : index
    %146 = vector.load %arg20[%c0_69, %c0_70] : memref<64x48xf32, #tpu.memory_space<vmem>>, vector<64x48xf32>
    tpu.vector_store %arg20[%c0_69, %c0_70], %145 {strides = array<i32>} : memref<64x48xf32, #tpu.memory_space<vmem>>, vector<64x48xf32>,
    %c2_i32 = arith.constant 2 : i32
    %147 = arith.cmpi eq, %arg0, %c2_i32 : i32
    %148 = arith.extui %147 : i1 to i32
    %c0_i32_71 = arith.constant 0 : i32
    %149 = arith.cmpi ne, %148, %c0_i32_71 : i32
    scf.if %149 {
      %c0_72 = arith.constant 0 : index
      %c0_73 = arith.constant 0 : index
      %150 = vector.load %arg20[%c0_72, %c0_73] : memref<64x48xf32, #tpu.memory_space<vmem>>, vector<64x48xf32>
      %c0_74 = arith.constant 0 : index
      %c0_75 = arith.constant 0 : index
      %151 = vector.load %arg14[%c0_74, %c0_75] : memref<1x48xf32, #tpu.memory_space<vmem>>, vector<1x48xf32>
      %152 = vector.broadcast %151 : vector<1x48xf32> to vector<64x48xf32>
      %153 = arith.addf %150, %152 : vector<64x48xf32>
      %c0_76 = arith.constant 0 : index
      %c0_77 = arith.constant 0 : index
      %154 = vector.load %arg15[%c0_76, %c0_77] : memref<1x48xf32, #tpu.memory_space<vmem>>, vector<1x48xf32>
      %155 = vector.broadcast %154 : vector<1x48xf32> to vector<64x48xf32>
      %156 = arith.mulf %153, %155 : vector<64x48xf32>
      %c0_78 = arith.constant 0 : index
      %c0_79 = arith.constant 0 : index
      %157 = vector.load %arg16[%c0_78, %c0_79] : memref<1x48xf32, #tpu.memory_space<vmem>>, vector<1x48xf32>
      %158 = vector.broadcast %157 : vector<1x48xf32> to vector<64x48xf32>
      %159 = arith.addf %156, %158 : vector<64x48xf32>
      %cst_80 = arith.constant 0.000000e+00 : f32
      %160 = vector.broadcast %cst_80 : f32 to vector<64x48xf32>
      %161 = arith.maximumf %159, %160 : vector<64x48xf32>
      %162 = arith.truncf %161 : vector<64x48xf32> to vector<64x48xbf16>
      %c0_81 = arith.constant 0 : index
      %c0_82 = arith.constant 0 : index
      %163 = vector.load %arg17[%c0_81, %c0_82] : memref<48x16xbf16, #tpu.memory_space<vmem>>, vector<48x16xbf16>
      %cst_83 = arith.constant dense<0.000000e+00> : vector<64x16xf32>
      %164 = tpu.matmul %162, %163, %cst_83 {dimension_numbers = #tpu.dot_dimension_numbers<[1], [0], [0], [1], [0, 0, 1, 1], [], []>} : vector<64x48xbf16>, vector<48x16xbf16>, vector<64x16xf32> -> vector<64x16xf32>
      %c0_84 = arith.constant 0 : index
      %c0_85 = arith.constant 0 : index
      %165 = vector.load %arg18[%c0_84, %c0_85] : memref<1x16xf32, #tpu.memory_space<vmem>>, vector<1x16xf32>
      %166 = vector.broadcast %165 : vector<1x16xf32> to vector<64x16xf32>
      %167 = arith.addf %164, %166 : vector<64x16xf32>
      %c0_86 = arith.constant 0 : index
      %c0_87 = arith.constant 0 : index
      %168 = vector.load %arg19[%c0_86, %c0_87] : memref<64x16xf32, #tpu.memory_space<vmem>>, vector<64x16xf32>
      tpu.vector_store %arg19[%c0_86, %c0_87], %167 {strides = array<i32>} : memref<64x16xf32, #tpu.memory_space<vmem>>, vector<64x16xf32>,
    } else {
    }
    return
  }
  func.func @transform_0(%arg0: i32) -> (i32, i32, i32) {
    %c0_i32 = arith.constant 0 : i32
    %c0_i32_0 = arith.constant 0 : i32
    %c0_i32_1 = arith.constant 0 : i32
    return %arg0, %c0_i32, %c0_i32_0 : i32, i32, i32
  }
  func.func @transform_1(%arg0: i32) -> (i32, i32, i32) {
    %c0_i32 = arith.constant 0 : i32
    %c0_i32_0 = arith.constant 0 : i32
    %c0_i32_1 = arith.constant 0 : i32
    return %arg0, %c0_i32, %c0_i32_0 : i32, i32, i32
  }
  func.func @transform_2(%arg0: i32) -> (i32, i32, i32) {
    %c0_i32 = arith.constant 0 : i32
    %c0_i32_0 = arith.constant 0 : i32
    %c0_i32_1 = arith.constant 0 : i32
    return %arg0, %c0_i32, %c0_i32_0 : i32, i32, i32
  }
  func.func @transform_3(%arg0: i32) -> (i32, i32, i32) {
    %c0_i32 = arith.constant 0 : i32
    %c0_i32_0 = arith.constant 0 : i32
    %c0_i32_1 = arith.constant 0 : i32
    return %arg0, %c0_i32, %c0_i32_0 : i32, i32, i32
  }
  func.func @transform_4(%arg0: i32) -> (i32, i32, i32) {
    %c0_i32 = arith.constant 0 : i32
    %c0_i32_0 = arith.constant 0 : i32
    %c0_i32_1 = arith.constant 0 : i32
    return %arg0, %c0_i32, %c0_i32_0 : i32, i32, i32
  }
  func.func @transform_5(%arg0: i32) -> (i32, i32, i32) {
    %c0_i32 = arith.constant 0 : i32
    %c0_i32_0 = arith.constant 0 : i32
    %c0_i32_1 = arith.constant 0 : i32
    return %arg0, %c0_i32, %c0_i32_0 : i32, i32, i32
  }
  func.func @transform_6(%arg0: i32) -> (i32, i32, i32) {
    %c0_i32 = arith.constant 0 : i32
    %c0_i32_0 = arith.constant 0 : i32
    %c0_i32_1 = arith.constant 0 : i32
    return %arg0, %c0_i32, %c0_i32_0 : i32, i32, i32
  }
  func.func @transform_7(%arg0: i32) -> (i32, i32, i32) {
    %c0_i32 = arith.constant 0 : i32
    %c0_i32_0 = arith.constant 0 : i32
    %c0_i32_1 = arith.constant 0 : i32
    return %arg0, %c0_i32, %c0_i32_0 : i32, i32, i32
  }
  func.func @transform_8(%arg0: i32) -> (i32, i32, i32) {
    %c0_i32 = arith.constant 0 : i32
    %c0_i32_0 = arith.constant 0 : i32
    %c0_i32_1 = arith.constant 0 : i32
    return %arg0, %c0_i32, %c0_i32_0 : i32, i32, i32
  }
  func.func @transform_9(%arg0: i32) -> (i32, i32, i32) {
    %c0_i32 = arith.constant 0 : i32
    %c0_i32_0 = arith.constant 0 : i32
    %c0_i32_1 = arith.constant 0 : i32
    return %arg0, %c0_i32, %c0_i32_0 : i32, i32, i32
  }
  func.func @transform_10(%arg0: i32) -> (i32, i32, i32) {
    %c0_i32 = arith.constant 0 : i32
    %c0_i32_0 = arith.constant 0 : i32
    %c0_i32_1 = arith.constant 0 : i32
    return %arg0, %c0_i32, %c0_i32_0 : i32, i32, i32
  }
  func.func @transform_11(%arg0: i32) -> (i32, i32, i32) {
    %c0_i32 = arith.constant 0 : i32
    %c0_i32_0 = arith.constant 0 : i32
    %c0_i32_1 = arith.constant 0 : i32
    return %arg0, %c0_i32, %c0_i32_0 : i32, i32, i32
  }
  func.func @transform_12(%arg0: i32) -> (i32, i32, i32) {
    %c0_i32 = arith.constant 0 : i32
    %c0_i32_0 = arith.constant 0 : i32
    %c0_i32_1 = arith.constant 0 : i32
    return %arg0, %c0_i32, %c0_i32_0 : i32, i32, i32
  }
  func.func @transform_13(%arg0: i32) -> (i32, i32) {
    %c0_i32 = arith.constant 0 : i32
    %c0_i32_0 = arith.constant 0 : i32
    %c0_i32_1 = arith.constant 0 : i32
    return %c0_i32, %c0_i32_0 : i32, i32
  }
  func.func @transform_14(%arg0: i32) -> (i32, i32) {
    %c0_i32 = arith.constant 0 : i32
    %c0_i32_0 = arith.constant 0 : i32
    %c0_i32_1 = arith.constant 0 : i32
    return %c0_i32, %c0_i32_0 : i32, i32
  }
  func.func @transform_15(%arg0: i32) -> (i32, i32) {
    %c0_i32 = arith.constant 0 : i32
    %c0_i32_0 = arith.constant 0 : i32
    %c0_i32_1 = arith.constant 0 : i32
    return %c0_i32, %c0_i32_0 : i32, i32
  }
  func.func @transform_16(%arg0: i32) -> (i32, i32) {
    %c0_i32 = arith.constant 0 : i32
    %c0_i32_0 = arith.constant 0 : i32
    %c0_i32_1 = arith.constant 0 : i32
    return %c0_i32, %c0_i32_0 : i32, i32
  }
  func.func @transform_17(%arg0: i32) -> (i32, i32) {
    %c0_i32 = arith.constant 0 : i32
    %c0_i32_0 = arith.constant 0 : i32
    %c0_i32_1 = arith.constant 0 : i32
    return %c0_i32, %c0_i32_0 : i32, i32
  }
  func.func @transform_18(%arg0: i32) -> (i32, i32) {
    %c0_i32 = arith.constant 0 : i32
    %c0_i32_0 = arith.constant 0 : i32
    %c0_i32_1 = arith.constant 0 : i32
    return %c0_i32, %c0_i32_0 : i32, i32
  }
}

</mosaic_0001>

<bundles_post_ra>
// kernel: margnn_forward.1
= control target key start
LH: loop header
LB: loop body
LE: loop exit
PB: predicated region body
PF: predicated region fallthrough
CT: control target
= control target key end

     0   :  { %s4262_s27 = smov 0   ;;  %s5836_s0 = inlined_call_operand.vmem [shape: bf16[3,256,64], index: 0, kind: input, shape index: {}]   ;;  %s5837_s1 = inlined_call_operand.vmem [shape: s8[3,128,256], index: 1, kind: input, shape index: {}]   ;;  %s5838_s2 = inlined_call_operand.vmem [shape: s8[3,64,128], index: 2, kind: input, shape index: {}]   ;;  %s5839_s3 = inlined_call_operand.vmem [shape: f32[3,1,16], index: 3, kind: input, shape index: {}]   ;;  %s5840_s4 = inlined_call_operand.vmem [shape: bf16[3,64,34], index: 4, kind: input, shape index: {}]   ;;  %s5841_s5 = inlined_call_operand.vmem [shape: f32[3,2,32], index: 5, kind: input, shape index: {}]   ;;  %s5842_s6 = inlined_call_operand.vmem [shape: f32[3,1,32], index: 6, kind: input, shape index: {}]   ;;  %s5843_s7 = inlined_call_operand.vmem [shape: f32[3,1,32], index: 7, kind: input, shape index: {}]   ;;  %s5844_s8 = inlined_call_operand.vmem [shape: f32[3,1,32], index: 8, kind: input, shape index: {}]   ;;  %s5845_s9 = inlined_call_operand.vmem [shape: bf16[3,32,17], index: 9, kind: input, shape index: {}]   ;;  %s5846_s10 = inlined_call_operand.vmem [shape: f32[3,1,16], index: 10, kind: input, shape index: {}]   ;;  %s5847_s11 = inlined_call_operand.vmem [shape: f32[3,1,16], index: 11, kind: input, shape index: {}]   ;;  %s5848_s12 = inlined_call_operand.vmem [shape: bf16[3,16,48], index: 12, kind: input, shape index: {}]   ;;  %s5849_s13 = inlined_call_operand.vmem [shape: f32[1,48], index: 13, kind: input, shape index: {}]   ;;  %s5850_s14 = inlined_call_operand.vmem [shape: f32[1,48], index: 14, kind: input, shape index: {}]   ;;  %s5851_s15 = inlined_call_operand.vmem [shape: f32[1,48], index: 15, kind: input, shape index: {}]   ;;  %s5852_s16 = inlined_call_operand.vmem [shape: bf16[48,16], index: 16, kind: input, shape index: {}]   ;;  %s5853_s17 = inlined_call_operand.vmem [shape: f32[1,16], index: 17, kind: input, shape index: {}]   ;;  %s5854_s18 = inlined_call_operand.vmem [shape: f32[64,16], index: 18, kind: output, shape index: {}]  }
   0x1   :  { %5908 = sst [smem:[#allocation47_spill]] %s5836_s0 }
   0x2   :  { %5909 = sst [smem:[#allocation48_spill]] %s5837_s1 }
   0x3   :  { %5910 = sst [smem:[#allocation49_spill]] %s5838_s2 }
   0x4 LB: > { %5911 = sst [smem:[#allocation3_spill]] %s4159_s27  ;;  %s4268_s28 = sadd.s32 4294967295, %s4159_s27   ;;  %s4159_s27 = sphi %s4262_s27, %s28_s27  }
   0x5   : > { %p3589_p0 = scmp.ge.s32.totalorder %s4159_s27, 1  ;;  %p614_p1 = scmp.lt.s32.totalorder %s4159_s27, 4 }
   0x7   : > { %p615_p2 = pnand %p3589_p0, %p614_p1 }
   0x9   : > { %618 = sbr.rel (%p615_p2) target bundleno = 2657 (0xa61), region = 92 }
   0xe   : > { %p710_p3 = scmp.lt.s32.totalorder %s4268_s28, 2  ;;  %s5912_s19 = sld [smem:[#allocation47_spill]]  ;;  %vm907_vm0 = vcmask 523264   ;;  %v4161_v10 = vmov 33   ;;  %v4162_v11 = vmov 32   ;;  %vm1046_vm1 = vcmask 261120  }
   0xf   : > { %3868 = vset.pattern.permute.xlu2 %v4161_v10  ;;  %3867 = vset.pattern.permute.xlu0 %v4162_v11  ;;  %s5934_s24 = sld [smem:[#allocation48_spill]]  ;;  %s4164_s23 = smov 16  }
  0x10   : > { %s4274_s29 = scalar_select %p710_p3, %s4268_s28, 2  ;;  %3869 = vset.pattern.permute.xlu1 %v4162_v11 }
  0x11   : > { %p3782_p4 = scmp.ne.s32.totalorder %s4268_s28, 0 }
  0x12   : > { %s3813_s1 = sshll.u32 %s4274_s29, 5  ;;  %s3815_s2 = sshll.u32 %s4274_s29, 3 }
  0x13   : > { %s732_s22 = scalar_lea.vmem %s5840_s4, %s3813_s1  ;;  %s4288_s25 = scalar_lea.vmem %s5848_s12, %s3815_s2 }
  0x14   : > { %v3835_v0 = vld [vmem:[%s732_s22 + $0x18] sm:$0xff]  ;;  %v3834_v1 = vld [vmem:[%s732_s22 + $0x10] sm:$0xff]  ;;  %v3833_v2 = vld [vmem:[%s732_s22 + $0x8] sm:$0xff]  ;;  %s3810_s26 = sshll.u32 %s4274_s29, 7  ;;  %s742_s20 = scalar_lea.vmem %s5843_s7, %s4274_s29 }
  0x15   : > { %960 = vmatpush.bf16.msra.mxu0 %v3835_v0  ;;  %s4294_s27 = scalar_lea.vmem %s5912_s19, %s3810_s26  ;;  %v3832_v3 = vld [vmem:[%s732_s22] sm:$0xff]  ;;  %s4163_s19 = smov 112  }
  0x16   : > { %v3816_v4 = vld [vmem:[%s4294_s27] sm:$0xff]  ;;  %v3817_v5 = vld [vmem:[%s4294_s27 + $0x8] sm:$0xff]  ;;  %v3818_v6 = vld [vmem:[%s4294_s27 + $0x10] sm:$0xff]  ;;  %s3811_s22 = sshll.u32 %s4274_s29, 6  ;;  %s745_s2 = scalar_lea.vmem %s5844_s8, %s4274_s29 }
  0x17   : > { %v3819_v7 = vld [vmem:[%s4294_s27 + $0x18] sm:$0xff]  ;;  %v3820_v8 = vld [vmem:[%s4294_s27 + $0x20] sm:$0xff]  ;;  %v3821_v9 = vld [vmem:[%s4294_s27 + $0x28] sm:$0xff]  ;;  %s4831_s26 = scalar_lea.vmem %s5934_s24, %s3811_s22  ;;  %s3812_s24 = sshll.u32 %s4274_s29, 4 }
  0x18   : > { %v3822_v12 = vld [vmem:[%s4294_s27 + $0x30] sm:$0xff]  ;;  %v3823_v13 = vld [vmem:[%s4294_s27 + $0x38] sm:$0xff]  ;;  %v3824_v14 = vld [vmem:[%s4294_s27 + $0x40] sm:$0xff]  ;;  %s750_s0 = scalar_lea.vmem %s5845_s9, %s3812_s24  ;;  %s756_s22 = scalar_lea.vmem %s5847_s11, %s4274_s29 }
  0x19   : > { %961 = vmatpush.bf16.msra.mxu0 %v3834_v1  ;;  %v3825_v17 = vld [vmem:[%s4294_s27 + $0x48] sm:$0xff]  ;;  %v3826_v20 = vld [vmem:[%s4294_s27 + $0x50] sm:$0xff]  ;;  %v3827_v23 = vld [vmem:[%s4294_s27 + $0x58] sm:$0xff] }
  0x1a   : > { %v3828_v28 = vld [vmem:[%s4294_s27 + $0x60] sm:$0xff]  ;;  %v3829_v31 = vld [vmem:[%s4294_s27 + $0x68] sm:$0xff]  ;;  %v3830_v36 = vld [vmem:[%s4294_s27 + $0x70] sm:$0xff] }
  0x1b   : > { %v3831_v40 = vld [vmem:[%s4294_s27 + $0x78] sm:$0xff]  ;;  %s3598_s27 = sshll.u32 %s4274_s29, 1 }
  0x1c   : > { %s736_s21 = scalar_lea.vmem %s5841_s5, %s3598_s27  ;;  %s6018_s27 = sld [smem:[#allocation49_spill]] }
  0x1d   : > { %962 = vmatpush.bf16.msra.mxu0 %v3833_v2  ;;  %v4467_v53 = vld [vmem:[%s736_s21] sm:$0x3] }
  0x21   : > { %963 = vmatpush.bf16.msra.mxu0 %v3832_v3 }
  0x22   : > { %s724_s1 = scalar_lea.vmem %s6018_s27, %s3812_s24 }
  0x24   : > { %3683 = vmatmul.msk.bf16.vlgmr.msra.gmra.mxu0 %vm907_vm0, %v3816_v4 }
  0x34   : > { %3684 = vmatmul.msk.bf16.gmra.mxu0 %vm907_vm0, %v3817_v5 }
  0x44   : > { %3685 = vmatmul.msk.bf16.gmra.mxu0 %vm907_vm0, %v3818_v6 }
  0x54   : > { %3686 = vmatmul.msk.bf16.gmra.mxu0 %vm907_vm0, %v3819_v7 }
  0x64   : > { %3687 = vmatmul.msk.bf16.gmra.mxu0 %vm907_vm0, %v3820_v8 }
  0x74   : > { %3688 = vmatmul.msk.bf16.gmra.mxu0 %vm907_vm0, %v3821_v9 }
  0x84   : > { %3689 = vmatmul.msk.bf16.gmra.mxu0 %vm907_vm0, %v3822_v12 }
  0x94   : > { %3690 = vmatmul.msk.bf16.gmra.mxu0 %vm907_vm0, %v3823_v13 }
  0xa1   : > { %v4316_v15 = vpop.f32.mrf.mxu0 }
  0xa2   : > { %1887 = vperm.xlu2 %3868, %v4316_v15   ;;  %1259 = vperm.xlu0 %3867, %v4316_v15  }
  0xa4   : > { %3691 = vmatmul.msk.bf16.gmra.mxu0 %vm907_vm0, %v3824_v14 }
  0xa9   : > { %v4321_v16 = vpop.f32.mrf.mxu0 }
  0xaa   : > { %1891 = vperm.xlu2 %3868, %v4321_v16   ;;  %1263 = vperm.xlu0 %3867, %v4321_v16   ;;  %v4438_v48 = vpack.c.bf16 %v4321_v16, %v4316_v15 }
  0xac   : > { %5914 = vst [vmem:[#allocation5_spill] sm:$0xff] %v4438_v48 }
  0xb1   : > { %v4326_v18 = vpop.f32.mrf.mxu0 }
  0xb2   : > { %3870 = vset.pattern.permute.xlu0 %v4161_v10  ;;  %1267 = vperm.xlu1 %3869, %v4326_v18  }
  0xb3   : > { %1895 = vperm.xlu0 %3870, %v4326_v18   ;;  %3872 = vset.pattern.permute.xlu2 %v4162_v11 }
  0xb4   : > { %3692 = vmatmul.msk.bf16.gmra.mxu0 %vm907_vm0, %v3825_v17 }
  0xb9   : > { %v4333_v19 = vpop.f32.mrf.mxu0 }
  0xba   : > { %1271 = vperm.xlu1 %3869, %v4333_v19   ;;  %v4431_v47 = vpack.c.bf16 %v4333_v19, %v4326_v18 }
  0xbc   : > { %5913 = vst [vmem:[#allocation4_spill] sm:$0xff] %v4431_v47 }
  0xc1   : > { %v4337_v21 = vpop.f32.mrf.mxu0 }
  0xc2   : > { %3871 = vset.pattern.permute.xlu1 %v4161_v10  ;;  %1275 = vperm.xlu2 %3872, %v4337_v21  }
  0xc3   : > { %1899 = vperm.xlu1 %3871, %v4333_v19  }
  0xc4   : > { %3693 = vmatmul.msk.bf16.gmra.mxu0 %vm907_vm0, %v3826_v20 }
  0xc9   : > { %v4343_v22 = vpop.f32.mrf.mxu0 }
  0xca   : > { %3873 = vset.pattern.permute.xlu2 %v4161_v10  ;;  %v4353_v25 = vpack.c.bf16 %v4343_v22, %v4337_v21 }
  0xcb   : > { %1903 = vperm.xlu2 %3873, %v4337_v21   ;;  %1907 = vperm.xlu1 %3871, %v4343_v22  }
  0xd1   : > { %v4349_v24 = vpop.f32.mrf.mxu0 }
  0xd2   : > { %1911 = vperm.xlu0 %3870, %v4349_v24  }
  0xd3   : > { %3874 = vset.pattern.permute.xlu2 %v4162_v11  ;;  %2420 = vrot.lane.b32.xlu1 %v4353_v25, %s4163_s19 }
  0xd4   : > { %3694 = vmatmul.msk.bf16.gmra.mxu0 %vm907_vm0, %v3827_v23  ;;  %1279 = vperm.xlu2 %3874, %v4343_v22  }
  0xd5   : > { %3876 = vset.pattern.permute.xlu1 %v4162_v11 }
  0xd9   : > { %v4362_v26 = vpop.f32.mrf.mxu0 }
  0xda   : > { %v4366_v27 = vpack.c.bf16 %v4362_v26, %v4349_v24  ;;  %3878 = vset.pattern.permute.xlu0 %v4162_v11 }
  0xdc   : > { %1283 = vperm.xlu2 %3874, %v4349_v24   ;;  %2422 = vrot.lane.b32.xlu1 %v4366_v27, %s4163_s19 }
  0xe1   : > { %v4373_v29 = vpop.f32.mrf.mxu0 }
  0xe4   : > { %3695 = vmatmul.msk.bf16.gmra.mxu0 %vm907_vm0, %v3828_v28  ;;  %1287 = vperm.xlu2 %3874, %v4362_v26  }
  0xe5   : > { %1291 = vperm.xlu1 %3876, %v4373_v29  }
  0xe9   : > { %v987_v30 = vpop.f32.mrf.mxu0 }
  0xea   : > { %1295 = vperm.xlu0 %3878, %v987_v30   ;;  %v1776_v33 = vpack.c.bf16 %v987_v30, %v4373_v29 }
  0xec   : > { %3875 = vset.pattern.permute.xlu2 %v4161_v10 }
  0xed   : > { %3877 = vset.pattern.permute.xlu1 %v4161_v10  ;;  %1915 = vperm.xlu2 %3875, %v4362_v26  }
  0xee   : > { %1919 = vperm.xlu1 %3877, %v4373_v29  }
  0xf1   : > { %v990_v32 = vpop.f32.mrf.mxu0 }
  0xf2   : > { %3879 = vset.pattern.permute.xlu0 %v4161_v10 }
  0xf3   : > { %1923 = vperm.xlu0 %3879, %v987_v30  }
  0xf4   : > { %3696 = vmatmul.msk.bf16.gmra.mxu0 %vm907_vm0, %v3829_v31 }
  0xf5   : > { %2424 = vrot.lane.b32.xlu2 %v1776_v33, %s4163_s19 }
  0xf6   : > { %3880 = vset.pattern.permute.xlu1 %v4162_v11 }
  0xf7   : > { %1299 = vperm.xlu1 %3880, %v990_v32  }
  0xf9   : > { %v992_v34 = vpop.f32.mrf.mxu0 }
  0xfa   : > { %v1777_v35 = vpack.c.bf16 %v992_v34, %v990_v32 }
  0xfb   : > { %3881 = vset.pattern.permute.xlu0 %v4162_v11 }
  0xfc   : > { %1303 = vperm.xlu0 %3881, %v992_v34   ;;  %v4485_v6 = vpop.permute.xlu2 %1887 }
  0xfd   : > { %1927 = vperm.xlu2 %3875, %v990_v32  }
  0xff   : > { %2426 = vrot.lane.b32.xlu1 %v1777_v35, %s4163_s19 }
 0x101   : > { %v995_v37 = vpop.f32.mrf.mxu0 }
 0x104   : > { %3697 = vmatmul.msk.bf16.gmra.mxu0 %vm907_vm0, %v3830_v36  ;;  %1307 = vperm.xlu0 %3881, %v995_v37  }
 0x105   : > { %1931 = vperm.xlu2 %3875, %v992_v34  }
 0x109   : > { %v4392_v38 = vpop.f32.mrf.mxu0 }
 0x10a   : > { %v1778_v39 = vpack.c.bf16 %v4392_v38, %v995_v37 }
 0x10c   : > { %2428 = vrot.lane.b32.xlu1 %v1778_v39, %s4163_s19 }
 0x10d   : > { %1935 = vperm.xlu2 %3875, %v995_v37  }
 0x111   : > { %v4397_v41 = vpop.f32.mrf.mxu0 }
 0x112   : > { %1315 = vperm.xlu0 %3881, %v4397_v41  }
 0x114   : > { %3698 = vmatmul.msk.bf16.gmra.mxu0 %vm907_vm0, %v3831_v40 }
 0x115   : > { %3882 = vset.pattern.permute.xlu2 %v4162_v11 }
 0x116   : > { %1311 = vperm.xlu2 %3882, %v4392_v38  }
 0x119   : > { %v4403_v42 = vpop.f32.mrf.mxu0 }
 0x11a   : > { %1319 = vperm.xlu1 %3880, %v4403_v42   ;;  %3699 = vmatpush.xpose.msk.msra.mxu1 %vm1046_vm1, %v4403_v42  ;;  %v1779_v43 = vpack.c.bf16 %v4403_v42, %v4397_v41 }
 0x11b   : > { %3883 = vset.pattern.permute.xlu0 %v4161_v10 }
 0x11c   : > { %1788 = vmatpush.bf16.msra.mxu3 %v1779_v43 }
 0x11e   : > { %3700 = vmatpush.xpose.msk.msra.mxu1 %vm1046_vm1, %v4397_v41  ;;  %3884 = vset.pattern.permute.xlu2 %v4161_v10  ;;  %v4487_v10 = vpop.permute.xlu2 %1891 }
 0x120   : > { %1789 = vmatpush.bf16.msra.mxu3 %v1778_v39 }
 0x121   : > { %v4414_v44 = vpop.f32.mrf.mxu0 }
 0x122   : > { %2430 = vrot.lane.b32.xlu1 %v1779_v43, %s4163_s19  ;;  %3701 = vmatpush.xpose.msk.msra.mxu1 %vm1046_vm1, %v4392_v38 }
 0x124   : > { %1790 = vmatpush.bf16.msra.mxu3 %v1777_v35  ;;  %v4472_v57 = vpop.permute.xlu1 %1267 }
 0x126   : > { %3702 = vmatpush.xpose.msk.msra.mxu1 %vm1046_vm1, %v995_v37  ;;  %v4494_v13 = vpop.permute.xlu2 %1275 }
 0x128   : > { %1791 = vmatpush.bf16.msra.mxu3 %v1776_v33 }
 0x129   : > { %v4420_v45 = vpop.f32.mrf.mxu0 }
 0x12a   : > { %3703 = vmatpush.xpose.msk.msra.mxu1 %vm1046_vm1, %v992_v34 }
 0x12c   : > { %1792 = vmatpush.bf16.msra.mxu3 %v4366_v27  ;;  %v4474_v60 = vpop.permute.xlu1 %1271 }
 0x12e   : > { %3704 = vmatpush.xpose.msk.msra.mxu1 %vm1046_vm1, %v990_v32 }
 0x130   : > { %1793 = vmatpush.bf16.msra.mxu3 %v4353_v25 }
 0x131   : > { %v4426_v46 = vpop.f32.mrf.mxu0 }
 0x132   : > { %3705 = vmatpush.xpose.msk.msra.mxu1 %vm1046_vm1, %v987_v30 }
 0x134   : > { %1794 = vmatpush.bf16.msra.mxu3 %v4431_v47 }
 0x135   : > { %v4477_v62 = vpop.permute.xlu1 %1899 }
 0x136   : > { %3706 = vmatpush.xpose.msk.msra.mxu1 %vm1046_vm1, %v4373_v29 }
 0x138   : > { %1795 = vmatpush.bf16.msra.mxu3 %v4438_v48 }
 0x139   : > { %v4441_v49 = vpop.f32.mrf.mxu0 }
 0x13a   : > { %3707 = vmatpush.xpose.msk.msra.mxu1 %vm1046_vm1, %v4362_v26 }
 0x13d   : > { %v4480_v1 = vpop.permute.xlu1 %1907 }
 0x13e   : > { %3708 = vmatpush.xpose.msk.msra.mxu1 %vm1046_vm1, %v4349_v24 }
 0x141   : > { %v4447_v50 = vpop.f32.mrf.mxu0 }
 0x142   : > { %3709 = vmatpush.xpose.msk.msra.mxu1 %vm1046_vm1, %v4343_v22 }
 0x145   : > { %v4482_v4 = vpop.permute.xlu1 %2420 }
 0x146   : > { %3710 = vmatpush.xpose.msk.msra.mxu1 %vm1046_vm1, %v4337_v21  ;;  %v4524_v21 = vpack.c.bf16 %v4420_v45, %v4414_v44 }
 0x148   : > { %5916 = vst [vmem:[#allocation7_spill] sm:$0xff] %v4524_v21 }
 0x149   : > { %v4453_v51 = vpop.f32.mrf.mxu0 }
 0x14a   : > { %3711 = vmatpush.xpose.msk.msra.mxu1 %vm1046_vm1, %v4333_v19  ;;  %v4516_v19 = vpop.permute.xlu0 %1259 }
 0x14e   : > { %3712 = vmatpush.xpose.msk.msra.mxu1 %vm1046_vm1, %v4326_v18  ;;  %v2423_v8 = vpop.permute.xlu1 %2422  ;;  %v4514_v18 = vpack.c.bf16 %v4441_v49, %v4426_v46 }
 0x151   : > { %v1020_v52 = vpop.f32.mrf.mxu0 }
 0x152   : > { %3713 = vmatpush.xpose.msk.msra.mxu1 %vm1046_vm1, %v4321_v16  ;;  %v4506_v16 = vpack.c.bf16 %v4453_v51, %v4447_v50  ;;  %v1264_v23 = vpop.permute.xlu0 %1263 }
 0x156   : > { %3714 = vmatpush.xpose.msk.msra.mxu1 %vm1046_vm1, %v4316_v15  ;;  %v4501_v15 = vpop.permute.xlu2 %1903 }
 0x157   : > { %v4491_v12 = vpop.permute.xlu1 %1291 }
 0x159   : > { %v1022_v54 = vpop.f32.mrf.mxu0  ;;  %3715 = vmatmul.msk.f32.vlgmr.msra.gmra.mxu1 %vm1046_vm1, %v4467_v53 }
 0x15a   : > { %v1783_v55 = vpack.c.bf16 %v1022_v54, %v1020_v52  ;;  %v4535_v26 = vpop.permute.xlu0 %1895 }
 0x15c   : > { %2438 = vrot.lane.b32.xlu0 %v1783_v55, %s4163_s19 }
 0x15e   : > { %v4519_v20 = vpop.permute.xlu2 %1279 }
 0x160   : > { %v4498_v14 = vpop.permute.xlu1 %1919 }
 0x161   : > { %v1025_v56 = vpop.f32.mrf.mxu0  ;;  %5915 = vst [vmem:[#allocation6_spill] sm:$0xff] %v4498_v14 }
 0x162   : > { %v4543_v29 = vpop.permute.xlu0 %1911 }
 0x166   : > { %v4529_v24 = vpop.permute.xlu2 %1283 }
 0x169   : > { %v1027_v58 = vpop.f32.mrf.mxu0  ;;  %v4509_v17 = vpop.permute.xlu1 %1299 }
 0x16a   : > { %v1784_v59 = vpack.c.bf16 %v1027_v58, %v1025_v56  ;;  %v4551_v32 = vpop.permute.xlu0 %1295 }
 0x16c   : > { %2440 = vrot.lane.b32.xlu2 %v1784_v59, %s4163_s19 }
 0x16e   : > { %v1288_v27 = vpop.permute.xlu2 %1287 }
 0x171   : > { %v1030_v61 = vpop.f32.mrf.mxu0  ;;  %v2427_v22 = vpop.permute.xlu1 %2426 }
 0x172   : > { %v4555_v34 = vpop.permute.xlu0 %1923 }
 0x176   : > { %v4547_v30 = vpop.permute.xlu2 %1915 }
 0x179   : > { %v1032_v63 = vpop.f32.mrf.mxu0 }
 0x17a   : > { %v1785_v0 = vpack.c.bf16 %v1032_v63, %v1030_v61  ;;  %v4560_v36 = vpop.permute.xlu0 %1303 }
 0x17c   : > { %2442 = vrot.lane.b32.xlu2 %v1785_v0, %s4163_s19 }
 0x17e   : > { %v2429_v25 = vpop.permute.xlu1 %2428  ;;  %v2425_v33 = vpop.permute.xlu2 %2424 }
 0x181   : > { %v1035_v2 = vpop.f32.mrf.mxu0 }
 0x182   : > { %v4564_v39 = vpop.permute.xlu0 %1307 }
 0x186   : > { %v4557_v35 = vpop.permute.xlu2 %1927 }
 0x187   : > { %5917 = vst [vmem:[#allocation8_spill] sm:$0xff] %v4557_v35 }
 0x189   : > { %v1037_v3 = vpop.f32.mrf.mxu0 }
 0x18a   : > { %v1786_v5 = vpack.c.bf16 %v1037_v3, %v1035_v2  ;;  %v4568_v43 = vpop.permute.xlu0 %1315 }
 0x18c   : > { %2444 = vrot.lane.b32.xlu1 %v1786_v5, %s4163_s19  ;;  %v4539_v28 = vpop.permute.xlu1 %1319 }
 0x18e   : > { %v4562_v37 = vpop.permute.xlu2 %1931 }
 0x18f   : > { %5918 = vst [vmem:[#allocation9_spill] sm:$0xff] %v4562_v37 }
 0x191   : > { %v1040_v7 = vpop.f32.mrf.mxu0 }
 0x194   : > { %v2431_v31 = vpop.permute.xlu1 %2430 }
 0x196   : > { %v4566_v40 = vpop.permute.xlu2 %1935 }
 0x197   : > { %5919 = vst [vmem:[#allocation10_spill] sm:$0xff] %v4566_v40 }
 0x199   : > { %v1042_v9 = vpop.f32.mrf.mxu0 }
 0x19a   : > { %v1787_v11 = vpack.c.bf16 %v1042_v9, %v1040_v7  ;;  %3716 = vmatpush.xpose.msk.msra.mxu2 %vm1046_vm1, %v1042_v9 }
 0x19c   : > { %2446 = vrot.lane.b32.xlu0 %v1787_v11, %s4163_s19  ;;  %1837 = vmatpush.bf16.msrb.mxu1 %v1787_v11 }
 0x19e   : > { %3717 = vmatpush.xpose.msk.msra.mxu2 %vm1046_vm1, %v1040_v7 }
 0x1a0   : > { %1838 = vmatpush.bf16.msrb.mxu1 %v1786_v5 }
 0x1a2   : > { %3718 = vmatpush.xpose.msk.msra.mxu2 %vm1046_vm1, %v1037_v3 }
 0x1a4   : > { %1839 = vmatpush.bf16.msrb.mxu1 %v1785_v0 }
 0x1a6   : > { %3719 = vmatpush.xpose.msk.msra.mxu2 %vm1046_vm1, %v1035_v2 }
 0x1a8   : > { %1840 = vmatpush.bf16.msrb.mxu1 %v1784_v59 }
 0x1aa   : > { %3720 = vmatpush.xpose.msk.msra.mxu2 %vm1046_vm1, %v1032_v63 }
 0x1ac   : > { %1841 = vmatpush.bf16.msrb.mxu1 %v1783_v55 }
 0x1ae   : > { %3721 = vmatpush.xpose.msk.msra.mxu2 %vm1046_vm1, %v1030_v61 }
 0x1b0   : > { %1842 = vmatpush.bf16.msrb.mxu1 %v4506_v16 }
 0x1b2   : > { %3722 = vmatpush.xpose.msk.msra.mxu2 %vm1046_vm1, %v1027_v58 }
 0x1b4   : > { %1843 = vmatpush.bf16.msrb.mxu1 %v4514_v18 }
 0x1b6   : > { %3723 = vmatpush.xpose.msk.msra.mxu2 %vm1046_vm1, %v1025_v56 }
 0x1b8   : > { %1844 = vmatpush.bf16.msrb.mxu1 %v4524_v21 }
 0x1ba   : > { %3724 = vmatpush.xpose.msk.msra.mxu2 %vm1046_vm1, %v1022_v54 }
 0x1be   : > { %3725 = vmatpush.xpose.msk.msra.mxu2 %vm1046_vm1, %v1020_v52 }
 0x1c2   : > { %3726 = vmatpush.xpose.msk.msra.mxu2 %vm1046_vm1, %v4453_v51 }
 0x1c6   : > { %3727 = vmatpush.xpose.msk.msra.mxu2 %vm1046_vm1, %v4447_v50 }
 0x1ca   : > { %3728 = vmatpush.xpose.msk.msra.mxu2 %vm1046_vm1, %v4441_v49 }
 0x1ce   : > { %3729 = vmatpush.xpose.msk.msra.mxu2 %vm1046_vm1, %v4426_v46 }
 0x1d2   : > { %3730 = vmatpush.xpose.msk.msra.mxu2 %vm1046_vm1, %v4420_v45  ;;  %v2439_v45 = vpop.permute.xlu0 %2438 }
 0x1d6   : > { %3731 = vmatpush.xpose.msk.msra.mxu2 %vm1046_vm1, %v4414_v44  ;;  %v4570_v44 = vpop.permute.xlu2 %1311  ;;  %v4572_v52 = vpop.f32.mrf.mxu1 }
 0x1d9   : > { %3732 = vmatmul.msk.f32.vlgmr.msra.gmra.mxu2 %vm1046_vm1, %v4467_v53  ;;  %v4575_v53 = vperm.slane %v4572_v52, 0 }
 0x1da   : > { %2464 = vmatpush.bf16.msrb.mxu2 %v2431_v31 }
 0x1db   : > { %v1328_v54 = vadd.f32 %v4575_v53, %v4472_v57  ;;  %v1326_v55 = vadd.f32 %v4575_v53, %v1264_v23  ;;  %v1324_v58 = vadd.f32 %v4575_v53, %v4516_v19  ;;  %v1332_v61 = vadd.f32 %v4575_v53, %v4494_v13 }
 0x1dc   : > { %v1338_v0 = vadd.f32 %v4575_v53, %v1288_v27 }
 0x1dd   : > { %vm1360_vm2 = vcmp.gt.f32.partialorder %v1328_v54, 0.0  ;;  %v1392_v63 = vmul.f32 0.2, %v1328_v54  ;;  %vm1358_vm3 = vcmp.gt.f32.partialorder %v1326_v55, 0.0  ;;  %vm1356_vm4 = vcmp.gt.f32.partialorder %v1324_v58, 0.0 }
 0x1de   : > { %2465 = vmatpush.bf16.msrb.mxu2 %v2429_v25  ;;  %v2441_v46 = vpop.permute.xlu2 %2440  ;;  %v1388_v7 = vmul.f32 0.2, %v1324_v58  ;;  %vm1364_vm11 = vcmp.gt.f32.partialorder %v1332_v61, 0.0  ;;  %vm1370_vm12 = vcmp.gt.f32.partialorder %v1338_v0, 0.0 }
 0x1e2   : > { %2466 = vmatpush.bf16.msrb.mxu2 %v2427_v22 }
 0x1e6   : > { %2467 = vmatpush.bf16.msrb.mxu2 %v2425_v33  ;;  %v2443_v51 = vpop.permute.xlu2 %2442 }
 0x1ea   : > { %2468 = vmatpush.bf16.msrb.mxu2 %v2423_v8 }
 0x1ee   : > { %2469 = vmatpush.bf16.msrb.mxu2 %v4482_v4  ;;  %v1390_v4 = vmul.f32 0.2, %v1326_v55 }
 0x1fe   : > { %v2445_v50 = vpop.permute.xlu1 %2444 }
 0x20e   : > { %v2447_v49 = vpop.permute.xlu0 %2446 }
 0x20f   : > { %2513 = vmatpush.bf16.msrb.mxu3 %v2447_v49 }
 0x213   : > { %2514 = vmatpush.bf16.msrb.mxu3 %v2445_v50 }
 0x217   : > { %2515 = vmatpush.bf16.msrb.mxu3 %v2443_v51 }
 0x21b   : > { %2516 = vmatpush.bf16.msrb.mxu3 %v2441_v46  ;;  %v4617_v46 = vsel %vm1356_vm4, %v1324_v58, %v1388_v7 }
 0x21f   : > { %2517 = vmatpush.bf16.msrb.mxu3 %v2439_v45 }
 0x25c   : > { %v4580_v56 = vpop.f32.mrf.mxu2 }
 0x25d   : > { %v4585_v59 = vperm.slane %v4580_v56, 0 }
 0x25f   : > { %v1329_v2 = vadd.f32 %v4585_v59, %v4472_v57  ;;  %v1327_v3 = vadd.f32 %v4585_v59, %v1264_v23  ;;  %v1325_v5 = vadd.f32 %v4585_v59, %v4516_v19  ;;  %v1333_v8 = vadd.f32 %v4585_v59, %v4494_v13 }
 0x260   : > { %v1339_v9 = vadd.f32 %v4585_v59, %v1288_v27  ;;  %v1330_v57 = vadd.f32 %v4575_v53, %v4474_v60  ;;  %v1331_v23 = vadd.f32 %v4585_v59, %v4474_v60  ;;  %v4603_v19 = vsel %vm1360_vm2, %v1328_v54, %v1392_v63 }
 0x261   : > { %vm1361_vm5 = vcmp.gt.f32.partialorder %v1329_v2, 0.0  ;;  %v1393_v11 = vmul.f32 0.2, %v1329_v2  ;;  %vm1359_vm6 = vcmp.gt.f32.partialorder %v1327_v3, 0.0  ;;  %v1391_v22 = vmul.f32 0.2, %v1327_v3 }
 0x262   : > { %vm1357_vm7 = vcmp.gt.f32.partialorder %v1325_v5, 0.0  ;;  %v1389_v25 = vmul.f32 0.2, %v1325_v5  ;;  %v4608_v13 = vsel %vm1358_vm3, %v1326_v55, %v1390_v4  ;;  %v1397_v50 = vmul.f32 0.2, %v1333_v8 }
 0x263   : > { %v4605_v31 = vsel %vm1361_vm5, %v1329_v2, %v1393_v11  ;;  %v4610_v27 = vsel %vm1359_vm6, %v1327_v3, %v1391_v22  ;;  %v1403_v51 = vmul.f32 0.2, %v1339_v9  ;;  %vm1365_vm8 = vcmp.gt.f32.partialorder %v1333_v8, 0.0 }
 0x264   : > { %v1458_v33 = vmax.f32 %v4603_v19, %v4605_v31  ;;  %v1455_v45 = vmax.f32 %v4608_v13, %v4610_v27  ;;  %v4619_v60 = vsel %vm1357_vm7, %v1325_v5, %v1389_v25  ;;  %vm1371_vm9 = vcmp.gt.f32.partialorder %v1339_v9, 0.0 }
 0x265   : > { %v1452_v49 = vmax.f32 %v4617_v46, %v4619_v60  ;;  %v1395_v54 = vmul.f32 0.2, %v1331_v23  ;;  %v1396_v55 = vmul.f32 0.2, %v1332_v61  ;;  %v1402_v63 = vmul.f32 0.2, %v1338_v0 }
 0x266   : > { %1459 = vmax.xlane.f32.xlu2 %v1458_v33  ;;  %1456 = vmax.xlane.f32.xlu1 %v1455_v45  ;;  %vm1363_vm10 = vcmp.gt.f32.partialorder %v1331_v23, 0.0  ;;  %vm1362_vm13 = vcmp.gt.f32.partialorder %v1330_v57, 0.0  ;;  %v1394_v58 = vmul.f32 0.2, %v1330_v57  ;;  %v4623_v2 = vsel %vm1365_vm8, %v1333_v8, %v1397_v50 }
 0x267   : > { %1453 = vmax.xlane.f32.xlu0 %v1452_v49  ;;  %v4625_v3 = vsel %vm1371_vm9, %v1339_v9, %v1403_v51  ;;  %v1335_v4 = vadd.f32 %v4585_v59, %v4519_v20  ;;  %v1341_v5 = vadd.f32 %v4585_v59, %v4491_v12  ;;  %v4631_v7 = vsel %vm1363_vm10, %v1331_v23, %v1395_v54 }
 0x268   : > { %v1349_v11 = vadd.f32 %v4585_v59, %v4564_v39  ;;  %v4635_v22 = vsel %vm1364_vm11, %v1332_v61, %v1396_v55  ;;  %v4637_v25 = vsel %vm1370_vm12, %v1338_v0, %v1402_v63  ;;  %v1334_v8 = vadd.f32 %v4575_v53, %v4519_v20 }
 0x269   : > { %v1340_v9 = vadd.f32 %v4575_v53, %v4491_v12  ;;  %v1464_v33 = vmax.f32 %v4635_v22, %v4623_v2  ;;  %v1473_v23 = vmax.f32 %v4637_v25, %v4625_v3  ;;  %v4647_v45 = vsel %vm1362_vm13, %v1330_v57, %v1394_v58 }
 0x26a   : > { %v1348_v61 = vadd.f32 %v4575_v53, %v4564_v39  ;;  %v1461_v0 = vmax.f32 %v4647_v45, %v4631_v7  ;;  %v1399_v49 = vmul.f32 0.2, %v1335_v4  ;;  %v1405_v50 = vmul.f32 0.2, %v1341_v5 }
 0x26b   : > { %vm1367_vm14 = vcmp.gt.f32.partialorder %v1335_v4, 0.0  ;;  %vm1373_vm15 = vcmp.gt.f32.partialorder %v1341_v5, 0.0  ;;  %v1413_v12 = vmul.f32 0.2, %v1349_v11  ;;  %v1398_v20 = vmul.f32 0.2, %v1334_v8 }
 0x26c   : > { %v1404_v51 = vmul.f32 0.2, %v1340_v9  ;;  %vm1381_vm0 = vcmp.gt.f32.partialorder %v1349_v11, 0.0  ;;  %vm1366_vm2 = vcmp.gt.f32.partialorder %v1334_v8, 0.0  ;;  %vm1372_vm3 = vcmp.gt.f32.partialorder %v1340_v9, 0.0 }
 0x26d   : > { %vm1380_vm4 = vcmp.gt.f32.partialorder %v1348_v61, 0.0  ;;  %v1412_v57 = vmul.f32 0.2, %v1348_v61  ;;  %v4653_v54 = vsel %vm1367_vm14, %v1335_v4, %v1399_v49  ;;  %v4655_v39 = vsel %vm1373_vm15, %v1341_v5, %v1405_v50 }
 0x26e   : > { %1465 = vmax.xlane.f32.xlu2 %v1464_v33  ;;  %1474 = vmax.xlane.f32.xlu1 %v1473_v23  ;;  %v1337_v55 = vadd.f32 %v4585_v59, %v4529_v24  ;;  %v1343_v63 = vadd.f32 %v4585_v59, %v4551_v32  ;;  %v4661_v58 = vsel %vm1381_vm0, %v1349_v11, %v1413_v12 }
 0x26f   : > { %1462 = vmax.xlane.f32.xlu0 %v1461_v0  ;;  %v1355_v33 = vadd.f32 %v4585_v59, %v4539_v28  ;;  %v4665_v23 = vsel %vm1366_vm2, %v1334_v8, %v1398_v20  ;;  %v4667_v0 = vsel %vm1372_vm3, %v1340_v9, %v1404_v51  ;;  %v1336_v4 = vadd.f32 %v4575_v53, %v4529_v24 }
 0x270   : > { %v1342_v5 = vadd.f32 %v4575_v53, %v4551_v32  ;;  %v1467_v49 = vmax.f32 %v4665_v23, %v4653_v54  ;;  %v1476_v11 = vmax.f32 %v4667_v0, %v4655_v39  ;;  %v4677_v50 = vsel %vm1380_vm4, %v1348_v61, %v1412_v57 }
 0x271   : > { %v1354_v8 = vadd.f32 %v4575_v53, %v4539_v28  ;;  %v1488_v9 = vmax.f32 %v4677_v50, %v4661_v58  ;;  %v1401_v12 = vmul.f32 0.2, %v1337_v55  ;;  %v1407_v20 = vmul.f32 0.2, %v1343_v63 }
 0x272   : > { %v4684_v24 = vperm.slane %v4580_v56, 1  ;;  %vm1369_vm5 = vcmp.gt.f32.partialorder %v1337_v55, 0.0  ;;  %vm1375_vm6 = vcmp.gt.f32.partialorder %v1343_v63, 0.0  ;;  %v1419_v32 = vmul.f32 0.2, %v1355_v33 }
 0x273   : > { %v4687_v51 = vperm.slane %v4572_v52, 1  ;;  %v1400_v61 = vmul.f32 0.2, %v1336_v4  ;;  %v1406_v57 = vmul.f32 0.2, %v1342_v5  ;;  %vm1387_vm7 = vcmp.gt.f32.partialorder %v1355_v33, 0.0 }
 0x274   : > { %vm1368_vm8 = vcmp.gt.f32.partialorder %v1336_v4, 0.0  ;;  %vm1374_vm9 = vcmp.gt.f32.partialorder %v1342_v5, 0.0  ;;  %vm1386_vm10 = vcmp.gt.f32.partialorder %v1354_v8, 0.0  ;;  %v1418_v28 = vmul.f32 0.2, %v1354_v8 }
 0x275   : > { %v4689_v40 = vsel %vm1369_vm5, %v1337_v55, %v1401_v12  ;;  %v4691_v56 = vsel %vm1375_vm6, %v1343_v63, %v1407_v20  ;;  %v4697_v52 = vsel %vm1387_vm7, %v1355_v33, %v1419_v32  ;;  %v4701_v37 = vsel %vm1368_vm8, %v1336_v4, %v1400_v61 }
 0x276   : > { %1468 = vmax.xlane.f32.xlu2 %v1467_v49  ;;  %1477 = vmax.xlane.f32.xlu1 %v1476_v11  ;;  %v1345_v49 = vadd.f32 %v4585_v59, %v4509_v17  ;;  %v1347_v11 = vadd.f32 %v4585_v59, %v4560_v36  ;;  %v4703_v48 = vsel %vm1374_vm9, %v1342_v5, %v1406_v57 }
 0x277   : > { %1489 = vmax.xlane.f32.xlu0 %v1488_v9  ;;  %v1953_v9 = vadd.f32 %v4684_v24, %v4485_v6  ;;  %v1344_v55 = vadd.f32 %v4575_v53, %v4509_v17  ;;  %v1346_v63 = vadd.f32 %v4575_v53, %v4560_v36  ;;  %v1470_v12 = vmax.f32 %v4701_v37, %v4689_v40 }
 0x278   : > { %v1479_v33 = vmax.f32 %v4703_v48, %v4691_v56  ;;  %v4713_v20 = vsel %vm1386_vm10, %v1354_v8, %v1418_v28  ;;  %v1952_v4 = vadd.f32 %v4687_v51, %v4485_v6  ;;  %v1409_v32 = vmul.f32 0.2, %v1345_v49 }
 0x279   : > { %v1497_v5 = vmax.f32 %v4713_v20, %v4697_v52  ;;  %v1411_v61 = vmul.f32 0.2, %v1347_v11  ;;  %vm1377_vm11 = vcmp.gt.f32.partialorder %v1345_v49, 0.0  ;;  %vm1379_vm12 = vcmp.gt.f32.partialorder %v1347_v11, 0.0 }
 0x27a   : > { %v2017_v17 = vmul.f32 0.2, %v1953_v9  ;;  %v1408_v36 = vmul.f32 0.2, %v1344_v55  ;;  %v1410_v57 = vmul.f32 0.2, %v1346_v63  ;;  %v4719_v28 = vsel %vm1377_vm11, %v1345_v49, %v1409_v32 }
 0x27b   : > { %vm1985_vm13 = vcmp.gt.f32.partialorder %v1953_v9, 0.0  ;;  %vm1376_vm14 = vcmp.gt.f32.partialorder %v1344_v55, 0.0  ;;  %vm1378_vm15 = vcmp.gt.f32.partialorder %v1346_v63, 0.0  ;;  %vm1984_vm0 = vcmp.gt.f32.partialorder %v1952_v4, 0.0 }
 0x27c   : > { %v2016_v8 = vmul.f32 0.2, %v1952_v4  ;;  %v4721_v6 = vsel %vm1379_vm12, %v1347_v11, %v1411_v61  ;;  %v1353_v35 = vadd.f32 %v4585_v59, %v4568_v43  ;;  %v4731_v14 = vsel %vm1376_vm14, %v1344_v55, %v1408_v36 }
 0x27d   : > { %v4733_v21 = vsel %vm1378_vm15, %v1346_v63, %v1410_v57  ;;  %v1352_v49 = vadd.f32 %v4575_v53, %v4568_v43  ;;  %v1350_v11 = vadd.f32 %v4575_v53, %v4570_v44  ;;  %v1482_v32 = vmax.f32 %v4731_v14, %v4719_v28 }
 0x27e   : > { %1471 = vmax.xlane.f32.xlu2 %v1470_v12  ;;  %1480 = vmax.xlane.f32.xlu1 %v1479_v33  ;;  %v1351_v12 = vadd.f32 %v4585_v59, %v4570_v44  ;;  %v4727_v33 = vsel %vm1985_vm13, %v1953_v9, %v2017_v17  ;;  %v1485_v59 = vmax.f32 %v4733_v21, %v4721_v6  ;;  %v1417_v61 = vmul.f32 0.2, %v1353_v35 }
 0x27f   : > { %1498 = vmax.xlane.f32.xlu0 %v1497_v5  ;;  %5920 = vst [vmem:[#allocation11_spill] sm:$0xff] %v4727_v33  ;;  %v1961_v5 = vadd.f32 %v4684_v24, %v4501_v15  ;;  %v4743_v9 = vsel %vm1984_vm0, %v1952_v4, %v2016_v8  ;;  %v1960_v55 = vadd.f32 %v4687_v51, %v4501_v15  ;;  %vm1385_vm2 = vcmp.gt.f32.partialorder %v1353_v35, 0.0 }
 0x280   : > { %5921 = vst [vmem:[#allocation12_spill] sm:$0xff] %v4743_v9  ;;  %v2080_v63 = vmax.f32 %v4743_v9, %v4727_v33  ;;  %v1415_v17 = vmul.f32 0.2, %v1351_v12  ;;  %vm1383_vm3 = vcmp.gt.f32.partialorder %v1351_v12, 0.0  ;;  %v1416_v44 = vmul.f32 0.2, %v1352_v49 }
 0x281   : > { %v2025_v43 = vmul.f32 0.2, %v1961_v5  ;;  %v1414_v53 = vmul.f32 0.2, %v1350_v11  ;;  %vm1993_vm4 = vcmp.gt.f32.partialorder %v1961_v5, 0.0  ;;  %vm1384_vm5 = vcmp.gt.f32.partialorder %v1352_v49, 0.0 }
 0x282   : > { %vm1382_vm6 = vcmp.gt.f32.partialorder %v1350_v11, 0.0  ;;  %vm1992_vm7 = vcmp.gt.f32.partialorder %v1960_v55, 0.0  ;;  %v2024_v4 = vmul.f32 0.2, %v1960_v55  ;;  %v4749_v36 = vsel %vm1385_vm2, %v1353_v35, %v1417_v61 }
 0x283   : > { %v4751_v15 = vsel %vm1383_vm3, %v1351_v12, %v1415_v17  ;;  %v1963_v57 = vadd.f32 %v4684_v24, %v4480_v1  ;;  %v1955_v8 = vadd.f32 %v4684_v24, %v4487_v10  ;;  %v4763_v47 = vsel %vm1382_vm6, %v1350_v11, %v1414_v53 }
 0x284   : > { %v1962_v35 = vadd.f32 %v4687_v51, %v4480_v1  ;;  %v1954_v12 = vadd.f32 %v4687_v51, %v4487_v10  ;;  %v4773_v17 = vsel %vm1992_vm7, %v1960_v55, %v2024_v4 }
 0x285   : > { %5923 = vst [vmem:[#allocation14_spill] sm:$0xff] %v4773_v17  ;;  %vm1995_vm8 = vcmp.gt.f32.partialorder %v1963_v57, 0.0  ;;  %vm1987_vm9 = vcmp.gt.f32.partialorder %v1955_v8, 0.0 }
 0x286   : > { %1483 = vmax.xlane.f32.xlu2 %v1482_v32  ;;  %1486 = vmax.xlane.f32.xlu1 %v1485_v59  ;;  %v4757_v32 = vsel %vm1993_vm4, %v1961_v5, %v2025_v43  ;;  %v1967_v59 = vadd.f32 %v4684_v24, %v4547_v30  ;;  %v1491_v5 = vmax.f32 %v4763_v47, %v4751_v15  ;;  %v2027_v43 = vmul.f32 0.2, %v1963_v57 }
 0x287   : > { %2081 = vmax.xlane.f32.xlu0 %v2080_v63  ;;  %5922 = vst [vmem:[#allocation13_spill] sm:$0xff] %v4757_v32  ;;  %v4761_v63 = vsel %vm1384_vm5, %v1352_v49, %v1416_v44  ;;  %v1966_v49 = vadd.f32 %v4687_v51, %v4547_v30  ;;  %v2092_v11 = vmax.f32 %v4773_v17, %v4757_v32  ;;  %v2019_v44 = vmul.f32 0.2, %v1955_v8 }
 0x288   : > { %v1494_v61 = vmax.f32 %v4761_v63, %v4749_v36  ;;  %v2031_v1 = vmul.f32 0.2, %v1967_v59  ;;  %v2026_v10 = vmul.f32 0.2, %v1962_v35  ;;  %v2018_v53 = vmul.f32 0.2, %v1954_v12 }
 0x289   : > { %vm1999_vm10 = vcmp.gt.f32.partialorder %v1967_v59, 0.0  ;;  %vm1994_vm11 = vcmp.gt.f32.partialorder %v1962_v35, 0.0  ;;  %vm1986_vm12 = vcmp.gt.f32.partialorder %v1954_v12, 0.0  ;;  %v2030_v55 = vmul.f32 0.2, %v1966_v49 }
 0x28a   : > { %v4779_v4 = vsel %vm1995_vm8, %v1963_v57, %v2027_v43  ;;  %v4781_v30 = vsel %vm1987_vm9, %v1955_v8, %v2019_v44  ;;  %vm1998_vm13 = vcmp.gt.f32.partialorder %v1966_v49, 0.0  ;;  %v1957_v32 = vadd.f32 %v4684_v24, %v4535_v26 }
 0x28b   : > { %5924 = vst [vmem:[#allocation15_spill] sm:$0xff] %v4781_v30  ;;  %v4789_v17 = vsel %vm1986_vm12, %v1954_v12, %v2018_v53  ;;  %v4797_v8 = vsel %vm1998_vm13, %v1966_v49, %v2030_v55  ;;  %v1958_v49 = vadd.f32 %v4687_v51, %v4477_v62 }
 0x28c   : > { %5926 = vst [vmem:[#allocation17_spill] sm:$0xff] %v4789_v17  ;;  %v2083_v57 = vmax.f32 %v4789_v17, %v4781_v30  ;;  %vm1989_vm14 = vcmp.gt.f32.partialorder %v1957_v32, 0.0 }
 0x28d   : > { %5927 = vst [vmem:[#allocation18_spill] sm:$0xff] %v4797_v8  ;;  %vm1990_vm2 = vcmp.gt.f32.partialorder %v1958_v49, 0.0 }
 0x28e   : > { %1495 = vmax.xlane.f32.xlu2 %v1494_v61  ;;  %1492 = vmax.xlane.f32.xlu1 %v1491_v5  ;;  %v4785_v61 = vsel %vm1999_vm10, %v1967_v59, %v2031_v1  ;;  %v4787_v5 = vsel %vm1994_vm11, %v1962_v35, %v2026_v10  ;;  %v2021_v59 = vmul.f32 0.2, %v1957_v32 }
 0x28f   : > { %2093 = vmax.xlane.f32.xlu0 %v2092_v11  ;;  %5925 = vst [vmem:[#allocation16_spill] sm:$0xff] %v4785_v61  ;;  %v1956_v11 = vadd.f32 %v4687_v51, %v4535_v26  ;;  %v2095_v33 = vmax.f32 %v4787_v5, %v4779_v4  ;;  %v2101_v43 = vmax.f32 %v4797_v8, %v4785_v61 }
 0x290   : > { %v4801_v12 = vsel %vm1989_vm14, %v1957_v32, %v2021_v59  ;;  %v1959_v26 = vadd.f32 %v4684_v24, %v4477_v62  ;;  %v1965_v32 = vadd.f32 %v4684_v24, %v4543_v29 }
 0x291   : > { %v2020_v35 = vmul.f32 0.2, %v1956_v11  ;;  %vm1988_vm15 = vcmp.gt.f32.partialorder %v1956_v11, 0.0  ;;  %5928 = vst [vmem:[#allocation19_spill] sm:$0xff] %v4801_v12 }
 0x292   : > { %v2023_v10 = vmul.f32 0.2, %v1959_v26  ;;  %vm1991_vm0 = vcmp.gt.f32.partialorder %v1959_v26, 0.0  ;;  %vm1997_vm3 = vcmp.gt.f32.partialorder %v1965_v32, 0.0 }
 0x293   : > { %v4805_v44 = vsel %vm1988_vm15, %v1956_v11, %v2020_v35  ;;  %v1964_v11 = vadd.f32 %v4687_v51, %v4543_v29 }
 0x294   : > { %5929 = vst [vmem:[#allocation20_spill] sm:$0xff] %v4805_v44  ;;  %v2086_v1 = vmax.f32 %v4805_v44, %v4801_v12  ;;  %v4811_v53 = vsel %vm1991_vm0, %v1959_v26, %v2023_v10  ;;  %v4841_v12 = vld [vmem:[%s4831_s26 + $0x8] sm:$0xff] }
 0x295   : > { %5930 = vst [vmem:[#allocation21_spill] sm:$0xff] %v4811_v53  ;;  %vm1996_vm4 = vcmp.gt.f32.partialorder %v1964_v11, 0.0 }
 0x296   : > { %2096 = vmax.xlane.f32.xlu2 %v2095_v33  ;;  %2084 = vmax.xlane.f32.xlu1 %v2083_v57  ;;  %v2022_v33 = vmul.f32 0.2, %v1958_v49  ;;  %v2029_v57 = vmul.f32 0.2, %v1965_v32 }
 0x297   : > { %2102 = vmax.xlane.f32.xlu0 %v2101_v43  ;;  %v2028_v43 = vmul.f32 0.2, %v1964_v11 }
 0x298   : > { %v4815_v55 = vsel %vm1990_vm2, %v1958_v49, %v2022_v33  ;;  %v4821_v59 = vsel %vm1997_vm3, %v1965_v32, %v2029_v57  ;;  %v1186_v57 = vld [vmem:[%s4831_s26] sm:$0xff] }
 0x299   : > { %5931 = vst [vmem:[#allocation22_spill] sm:$0xff] %v4815_v55  ;;  %v2089_v62 = vmax.f32 %v4815_v55, %v4811_v53  ;;  %v4823_v35 = vsel %vm1996_vm4, %v1964_v11, %v2028_v43 }
 0x29a   : > { %5932 = vst [vmem:[#allocation23_spill] sm:$0xff] %v4821_v59  ;;  %v2098_v26 = vmax.f32 %v4823_v35, %v4821_v59  ;;  %v1196_v59 = vunpack.c.1.s8 %v1186_v57 }
 0x29b   : > { %5933 = vst [vmem:[#allocation24_spill] sm:$0xff] %v4823_v35 }
 0x29e   : > { %2087 = vmax.xlane.f32.xlu1 %v2086_v1 }
 0x2a6   : > { %2090 = vmax.xlane.f32.xlu1 %v2089_v62 }
 0x2ae   : > { %2099 = vmax.xlane.f32.xlu1 %v2098_v26 }
 0x2d9   : > { %v1460_v29 = vpop.xlane.xlu2 %1459  ;;  %v1457_v49 = vpop.xlane.xlu1 %1456 }
 0x2da   : > { %v1504_v1 = vsub.f32 %v4603_v19, %v1460_v29  ;;  %v1502_v10 = vsub.f32 %v4608_v13, %v1457_v49  ;;  %v1503_v33 = vsub.f32 %v4610_v27, %v1457_v49  ;;  %v1454_v32 = vpop.xlane.xlu0 %1453  ;;  %v1505_v43 = vsub.f32 %v4605_v31, %v1460_v29 }
 0x2db   : > { %v1500_v11 = vsub.f32 %v4617_v46, %v1454_v32  ;;  %v1501_v62 = vsub.f32 %v4619_v60, %v1454_v32  ;;  %v1197_v27 = vunpack.c.1.s8 %v4841_v12  ;;  %v1194_v60 = vunpack.c.0.s8 %v1186_v57 }
 0x2dc   : > { %v1540_v26 = vmul.f32 1.442695, %v1504_v1  ;;  %v1536_v61 = vmul.f32 1.442695, %v1502_v10  ;;  %v1538_v8 = vmul.f32 1.442695, %v1503_v33  ;;  %v1195_v32 = vunpack.c.0.s8 %v4841_v12 }
 0x2dd   : > { %v1532_v44 = vmul.f32 1.442695, %v1500_v11  ;;  %v1534_v19 = vmul.f32 1.442695, %v1501_v62  ;;  %v1542_v13 = vmul.f32 1.442695, %v1505_v43  ;;  %v4845_v29 = vcvt.s32.f32 %v1196_v59 }
 0x2de   : > { %3892 = vpow2.f32 %v1540_v26  ;;  %v1198_v1 = vunpack.c.2.s8 %v1186_v57  ;;  %v1199_v10 = vunpack.c.2.s8 %v4841_v12  ;;  %v1200_v11 = vunpack.c.3.s8 %v1186_v57 }
 0x2df   : > { %3894 = vpow2.f32 %v1536_v61  ;;  %5935 = vst [vmem:[#allocation25_spill] sm:$0xff] %v4845_v29  ;;  %v4851_v62 = vcvt.s32.f32 %v1197_v27  ;;  %v4854_v59 = vcvt.s32.f32 %v1194_v60  ;;  %v4856_v53 = vcvt.s32.f32 %v1195_v32 }
 0x2e0   : > { %3896 = vpow2.f32 %v1538_v8  ;;  %v4869_v27 = vcvt.s32.f32 %v1200_v11 }
 0x2e1   : > { %v1466_v46 = vpop.xlane.xlu2 %1465  ;;  %v1475_v49 = vpop.xlane.xlu1 %1474  ;;  %3898 = vpow2.f32 %v1532_v44  ;;  %5936 = vst [vmem:[#allocation26_spill] sm:$0xff] %v4851_v62 }
 0x2e2   : > { %v1463_v31 = vpop.xlane.xlu0 %1462  ;;  %3900 = vpow2.f32 %v1534_v19  ;;  %v1508_v8 = vsub.f32 %v4635_v22, %v1466_v46  ;;  %v1509_v44 = vsub.f32 %v4623_v2, %v1466_v46  ;;  %5937 = vst [vmem:[#allocation27_spill] sm:$0xff] %v4854_v59  ;;  %v4858_v19 = vcvt.s32.f32 %v1198_v1  ;;  %v4876_v1 = vld [vmem:[%s4831_s26 + $0x18] sm:$0xff] }
 0x2e3   : > { %v1506_v33 = vsub.f32 %v4647_v45, %v1463_v31  ;;  %v1507_v61 = vsub.f32 %v4631_v7, %v1463_v31  ;;  %3902 = vpow2.f32 %v1542_v13  ;;  %v4860_v45 = vcvt.s32.f32 %v1199_v10  ;;  %v4863_v7 = vld [vmem:[%s4831_s26 + $0x10] sm:$0xff]  ;;  %5940 = vst [vmem:[#allocation30_spill] sm:$0xff] %v4869_v27 }
 0x2e4   : > { %v3893_v43 = vpop.eup %3892  ;;  %5938 = vst [vmem:[#allocation28_spill] sm:$0xff] %v4858_v19  ;;  %v1201_v2 = vunpack.c.3.s8 %v4841_v12  ;;  %v1548_v60 = vmul.f32 1.442695, %v1508_v8  ;;  %v1514_v32 = vsub.f32 %v4637_v25, %v1475_v49  ;;  %v1204_v10 = vunpack.c.1.s8 %v4863_v7 }
 0x2e5   : > { %v3895_v26 = vpop.eup %3894  ;;  %v1544_v35 = vmul.f32 1.442695, %v1506_v33  ;;  %5939 = vst [vmem:[#allocation29_spill] sm:$0xff] %v4860_v45  ;;  %v1546_v22 = vmul.f32 1.442695, %v1507_v61  ;;  %v1205_v12 = vunpack.c.1.s8 %v4876_v1  ;;  %v1202_v11 = vunpack.c.0.s8 %v4863_v7 }
 0x2e6   : > { %v3897_v57 = vpop.eup %3896  ;;  %v4866_v13 = vmul.f32 %v3895_v26, %v4845_v29  ;;  %v1550_v61 = vmul.f32 1.442695, %v1509_v44  ;;  %v1515_v44 = vsub.f32 %v4625_v3, %v1475_v49  ;;  %v4903_v49 = vcvt.s32.f32 %v1204_v10 }
 0x2e7   : > { %v3899_v46 = vpop.eup %3898  ;;  %v4873_v31 = vmul.f32 %v3897_v57, %v4851_v62  ;;  %3904 = vpow2.f32 %v1544_v35  ;;  %v4901_v35 = vcvt.s32.f32 %v1201_v2 }
 0x2e8   : > { %v3901_v33 = vpop.eup %3900  ;;  %v4880_v29 = vmul.f32 %v3899_v46, %v4854_v59  ;;  %3906 = vpow2.f32 %v1546_v22  ;;  %v1203_v46 = vunpack.c.0.s8 %v4876_v1  ;;  %v1560_v59 = vmul.f32 1.442695, %v1514_v32 }
 0x2e9   : > { %v1469_v55 = vpop.xlane.xlu2 %1468  ;;  %v1478_v26 = vpop.xlane.xlu1 %1477  ;;  %v1631_v62 = vadd.f32 %v4873_v31, %v4866_v13  ;;  %v4890_v9 = vmul.f32 %v3901_v33, %v4856_v53  ;;  %3908 = vpow2.f32 %v1548_v60  ;;  %5941 = vst [vmem:[#allocation31_spill] sm:$0xff] %v4901_v35  ;;  %v4907_v60 = vcvt.s32.f32 %v1202_v11 }
 0x2ea   : > { %v3903_v8 = vpop.eup %3902  ;;  %v1510_v25 = vsub.f32 %v4665_v23, %v1469_v55  ;;  %v1511_v57 = vsub.f32 %v4653_v54, %v1469_v55  ;;  %3910 = vpow2.f32 %v1550_v61  ;;  %v4896_v23 = vmul.f32 %v3893_v43, %v4858_v19 }
 0x2eb   : > { %1632 = vadd.xlane.f32.xlu2 %v1631_v62  ;;  %v1628_v54 = vadd.f32 %v4890_v9, %v4880_v29  ;;  %v4899_v3 = vmul.f32 %v3903_v8, %v4860_v45  ;;  %v1562_v55 = vmul.f32 1.442695, %v1515_v44  ;;  %v4905_v62 = vcvt.s32.f32 %v1205_v12 }
 0x2ec   : > { %v1552_v30 = vmul.f32 1.442695, %v1510_v25  ;;  %v1554_v17 = vmul.f32 1.442695, %v1511_v57  ;;  %v4909_v32 = vcvt.s32.f32 %v1203_v46  ;;  %v1206_v43 = vunpack.c.2.s8 %v4863_v7 }
 0x2ed   : > { %1629 = vadd.xlane.f32.xlu0 %v1628_v54  ;;  %v3905_v22 = vpop.eup %3904  ;;  %v1517_v11 = vsub.f32 %v4655_v39, %v1478_v26  ;;  %v1207_v46 = vunpack.c.2.s8 %v4876_v1 }
 0x2ee   : > { %3912 = vpow2.f32 %v1552_v30  ;;  %v3907_v33 = vpop.eup %3906  ;;  %v1516_v30 = vsub.f32 %v4667_v0, %v1478_v26  ;;  %v4916_v10 = vmul.f32 %v3905_v22, %v4869_v27 }
 0x2ef   : > { %3914 = vpow2.f32 %v1554_v17  ;;  %v1634_v17 = vadd.f32 %v4899_v3, %v4896_v23  ;;  %v3909_v12 = vpop.eup %3908  ;;  %v4924_v44 = vmul.f32 %v3907_v33, %v4901_v35  ;;  %v1566_v33 = vmul.f32 1.442695, %v1517_v11 }
 0x2f0   : > { %3916 = vpow2.f32 %v1560_v59  ;;  %v3911_v59 = vpop.eup %3910 }
 0x2f1   : > { %v1472_v61 = vpop.xlane.xlu2 %1471  ;;  %v1481_v2 = vpop.xlane.xlu1 %1480  ;;  %3918 = vpow2.f32 %v1562_v55 }
 0x2f2   : > { %v1512_v8 = vsub.f32 %v4701_v37, %v1472_v61  ;;  %v1513_v25 = vsub.f32 %v4689_v40, %v1472_v61  ;;  %v1518_v57 = vsub.f32 %v4703_v48, %v1481_v2  ;;  %v1519_v0 = vsub.f32 %v4691_v56, %v1481_v2  ;;  %v4938_v2 = vld [vmem:[%s4831_s26 + $0x20] sm:$0xff] }
 0x2f3   : > { %1635 = vadd.xlane.f32.xlu2 %v1634_v17  ;;  %v1208_v37 = vunpack.c.3.s8 %v4863_v7  ;;  %v1564_v48 = vmul.f32 1.442695, %v1516_v30  ;;  %v1637_v56 = vadd.f32 %v4924_v44, %v4916_v10  ;;  %v1209_v17 = vunpack.c.3.s8 %v4876_v1 }
 0x2f4   : > { %v3913_v54 = vpop.eup %3912  ;;  %v1556_v22 = vmul.f32 1.442695, %v1512_v8  ;;  %v1558_v45 = vmul.f32 1.442695, %v1513_v25  ;;  %v1568_v39 = vmul.f32 1.442695, %v1518_v57  ;;  %v4941_v30 = vmul.f32 %v3909_v12, %v4907_v60 }
 0x2f5   : > { %v3915_v40 = vpop.eup %3914  ;;  %v1570_v26 = vmul.f32 1.442695, %v1519_v0  ;;  %v4931_v55 = vmul.f32 %v3913_v54, %v4903_v49  ;;  %1638 = vadd.xlane.f32.xlu0 %v1637_v56  ;;  %v4944_v8 = vmul.f32 %v3911_v59, %v4909_v32  ;;  %v4947_v25 = vld [vmem:[%s4831_s26 + $0x28] sm:$0xff]  ;;  %v1212_v11 = vunpack.c.1.s8 %v4938_v2 }
 0x2f6   : > { %3920 = vpow2.f32 %v1556_v22  ;;  %v4934_v61 = vmul.f32 %v3915_v40, %v4905_v62  ;;  %v3917_v7 = vpop.eup %3916  ;;  %v1213_v1 = vunpack.c.1.s8 %v4947_v25  ;;  %v4953_v22 = vcvt.s32.f32 %v1206_v43 }
 0x2f7   : > { %3922 = vpow2.f32 %v1558_v45  ;;  %v3919_v0 = vpop.eup %3918  ;;  %v4955_v12 = vcvt.s32.f32 %v1207_v46  ;;  %v4957_v59 = vcvt.s32.f32 %v1208_v37  ;;  %v4961_v56 = vcvt.s32.f32 %v1209_v17 }
 0x2f8   : > { %3924 = vpow2.f32 %v1568_v39  ;;  %v1643_v57 = vadd.f32 %v4934_v61, %v4931_v55  ;;  %v1640_v19 = vadd.f32 %v4944_v8, %v4941_v30  ;;  %v4968_v37 = vcvt.s32.f32 %v1213_v1 }
 0x2f9   : > { %3926 = vpow2.f32 %v1570_v26  ;;  %v1484_v45 = vpop.xlane.xlu2 %1483  ;;  %v1487_v54 = vpop.xlane.xlu1 %1486  ;;  %5942 = vst [vmem:[#allocation32_spill] sm:$0xff] %v4955_v12  ;;  %v4965_v26 = vcvt.s32.f32 %v1212_v11  ;;  %v1211_v17 = vunpack.c.0.s8 %v4947_v25 }
 0x2fa   : > { %5943 = vst [vmem:[#allocation33_spill] sm:$0xff] %v4957_v59  ;;  %3928 = vpow2.f32 %v1564_v48  ;;  %v1520_v40 = vsub.f32 %v4731_v14, %v1484_v45  ;;  %v1521_v39 = vsub.f32 %v4719_v28, %v1484_v45  ;;  %v1522_v46 = vsub.f32 %v4733_v21, %v1487_v54 }
 0x2fb   : > { %5944 = vst [vmem:[#allocation34_spill] sm:$0xff] %v4961_v56  ;;  %3930 = vpow2.f32 %v1566_v33  ;;  %1644 = vadd.xlane.f32.xlu2 %v1643_v57  ;;  %v1523_v14 = vsub.f32 %v4721_v6, %v1487_v54  ;;  %v1210_v33 = vunpack.c.0.s8 %v4938_v2  ;;  %v4980_v57 = vmul.f32 %v3917_v7, %v4957_v59 }
 0x2fc   : > { %5945 = vst [vmem:[#allocation35_spill] sm:$0xff] %v4965_v26  ;;  %v3921_v35 = vpop.eup %3920  ;;  %v1572_v43 = vmul.f32 1.442695, %v1520_v40  ;;  %v1574_v27 = vmul.f32 1.442695, %v1521_v39  ;;  %v4983_v21 = vmul.f32 %v3919_v0, %v4961_v56  ;;  %v1215_v54 = vunpack.c.2.s8 %v4947_v25 }
 0x2fd   : > { %5946 = vst [vmem:[#allocation36_spill] sm:$0xff] %v4968_v37  ;;  %v3923_v48 = vpop.eup %3922  ;;  %v4972_v28 = vmul.f32 %v3921_v35, %v4953_v22  ;;  %1641 = vadd.xlane.f32.xlu0 %v1640_v19  ;;  %v1214_v35 = vunpack.c.2.s8 %v4938_v2  ;;  %v1576_v39 = vmul.f32 1.442695, %v1522_v46  ;;  %v1578_v56 = vmul.f32 1.442695, %v1523_v14 }
 0x2fe   : > { %v3925_v11 = vpop.eup %3924  ;;  %3932 = vpow2.f32 %v1572_v43  ;;  %v4977_v45 = vmul.f32 %v3923_v48, %v4955_v12  ;;  %v1490_v48 = vpop.xlane.xlu0 %1489  ;;  %v4997_v19 = vcvt.s32.f32 %v1210_v33 }
 0x2ff   : > { %v3927_v1 = vpop.eup %3926  ;;  %3934 = vpow2.f32 %v1574_v27  ;;  %v4986_v6 = vmul.f32 %v3925_v11, %v4965_v26  ;;  %v4999_v11 = vcvt.s32.f32 %v1211_v17  ;;  %v1649_v26 = vadd.f32 %v4983_v21, %v4980_v57 }
 0x300   : > { %v3929_v40 = vpop.eup %3928  ;;  %v1646_v43 = vadd.f32 %v4977_v45, %v4972_v28  ;;  %v4993_v7 = vmul.f32 %v3927_v1, %v4968_v37  ;;  %5947 = vst [vmem:[#allocation37_spill] sm:$0xff] %v4997_v19  ;;  %v5005_v59 = vcvt.s32.f32 %v1214_v35  ;;  %v5007_v1 = vcvt.s32.f32 %v1215_v54 }
 0x301   : > { %v3931_v0 = vpop.eup %3930  ;;  %v4995_v27 = vpop.xlane.xlu2 %1495  ;;  %5948 = vst [vmem:[#allocation38_spill] sm:$0xff] %v4999_v11  ;;  %v1524_v14 = vsub.f32 %v4677_v50, %v1490_v48  ;;  %3936 = vpow2.f32 %v1576_v39  ;;  %v1525_v17 = vsub.f32 %v4661_v58, %v1490_v48  ;;  %v1216_v35 = vunpack.c.3.s8 %v4938_v2 }
 0x302   : > { %1647 = vadd.xlane.f32.xlu1 %v1646_v43  ;;  %v1655_v46 = vadd.f32 %v4993_v7, %v4986_v6  ;;  %5949 = vst [vmem:[#allocation39_spill] sm:$0xff] %v5005_v59  ;;  %3938 = vpow2.f32 %v1578_v56  ;;  %v5012_v43 = vmul.f32 %v3929_v40, %v4997_v19  ;;  %v5015_v12 = vmul.f32 %v3931_v0, %v4999_v11 }
 0x303   : > { %5950 = vst [vmem:[#allocation40_spill] sm:$0xff] %v5007_v1  ;;  %1650 = vadd.xlane.f32.xlu2 %v1649_v26  ;;  %v1217_v54 = vunpack.c.3.s8 %v4947_v25  ;;  %v1580_v58 = vmul.f32 1.442695, %v1524_v14  ;;  %v1582_v56 = vmul.f32 1.442695, %v1525_v17  ;;  %v1971_v0 = vadd.f32 %v4684_v24, %v4555_v34 }
 0x304   : > { %v3933_v37 = vpop.eup %3932  ;;  %v1652_v39 = vadd.f32 %v5015_v12, %v5012_v43 }
 0x305   : > { %v3935_v33 = vpop.eup %3934  ;;  %1656 = vadd.xlane.f32.xlu0 %v1655_v46  ;;  %v5020_v50 = vmul.f32 %v3933_v37, %v5005_v59  ;;  %v5031_v46 = vcvt.s32.f32 %v1216_v35  ;;  %v5033_v37 = vcvt.s32.f32 %v1217_v54  ;;  %3940 = vpow2.f32 %v1580_v58 }
 0x306   : > { %v5023_v26 = vmul.f32 %v3935_v33, %v5007_v1  ;;  %v5036_v33 = vld [vmem:[%s4831_s26 + $0x30] sm:$0xff]  ;;  %v5041_v1 = vld [vmem:[%s4831_s26 + $0x38] sm:$0xff]  ;;  %3942 = vpow2.f32 %v1582_v56  ;;  %vm2003_vm5 = vcmp.gt.f32.partialorder %v1971_v0, 0.0 }
 0x307   : > { %v3937_v2 = vpop.eup %3936  ;;  %5951 = vst [vmem:[#allocation41_spill] sm:$0xff] %v5031_v46  ;;  %v1218_v35 = vunpack.c.0.s8 %v5036_v33  ;;  %v1219_v19 = vunpack.c.0.s8 %v5041_v1 }
 0x308   : > { %5952 = vst [vmem:[#allocation42_spill] sm:$0xff] %v5033_v37  ;;  %v3939_v14 = vpop.eup %3938  ;;  %v1658_v17 = vadd.f32 %v5023_v26, %v5020_v50  ;;  %v5047_v54 = vmul.f32 %v3937_v2, %v5031_v46 }
 0x309   : > { %v2097_v40 = vpop.xlane.xlu2 %2096  ;;  %v5059_v2 = vcvt.s32.f32 %v1219_v19 }
 0x30a   : > { %v2138_v25 = vsub.f32 %v4787_v5, %v2097_v40  ;;  %v2139_v48 = vsub.f32 %v4779_v4, %v2097_v40  ;;  %v1970_v5 = vadd.f32 %v4687_v51, %v4555_v34  ;;  %v2035_v4 = vmul.f32 0.2, %v1971_v0 }
 0x30b   : > { %1653 = vadd.xlane.f32.xlu2 %v1652_v39  ;;  %v5050_v40 = vmul.f32 %v3939_v14, %v5033_v37  ;;  %v3941_v39 = vpop.eup %3940  ;;  %5954 = vst [vmem:[#allocation44_spill] sm:$0xff] %v5059_v2 }
 0x30c   : > { %v2180_v59 = vmul.f32 1.442695, %v2138_v25  ;;  %v2182_v11 = vmul.f32 1.442695, %v2139_v48  ;;  %v2034_v58 = vmul.f32 0.2, %v1970_v5  ;;  %v5055_v56 = vsel %vm2003_vm5, %v1971_v0, %v2035_v4  ;;  %v3943_v25 = vpop.eup %3942  ;;  %v1493_v4 = vpop.xlane.xlu1 %1492 }
 0x30d   : > { %1659 = vadd.xlane.f32.xlu0 %v1658_v17  ;;  %vm2002_vm6 = vcmp.gt.f32.partialorder %v1970_v5, 0.0  ;;  %v1661_v34 = vadd.f32 %v5050_v40, %v5047_v54  ;;  %v5069_v46 = vmul.f32 %v3943_v25, %v5059_v2 }
 0x30e   : > { %3944 = vpow2.f32 %v2180_v59  ;;  %v5057_v59 = vcvt.s32.f32 %v1218_v35  ;;  %v5061_v14 = vsel %vm2002_vm6, %v1970_v5, %v2034_v58  ;;  %v1526_v35 = vsub.f32 %v4763_v47, %v1493_v4 }
 0x30f   : > { %3946 = vpow2.f32 %v2182_v11  ;;  %v2107_v17 = vmax.f32 %v5061_v14, %v5055_v56  ;;  %v1527_v58 = vsub.f32 %v4751_v15, %v1493_v4  ;;  %v1499_v15 = vpop.xlane.xlu0 %1498 }
 0x310   : > { %5953 = vst [vmem:[#allocation43_spill] sm:$0xff] %v5057_v59  ;;  %v5066_v37 = vmul.f32 %v3941_v39, %v5057_v59 }
 0x311   : > { %v1586_v39 = vmul.f32 1.442695, %v1527_v58 }
 0x312   : > { %v1664_v5 = vadd.f32 %v5069_v46, %v5066_v37 }
 0x313   : > { %1662 = vadd.xlane.f32.xlu2 %v1661_v34 }
 0x314   : > { %v3945_v48 = vpop.eup %3944  ;;  %v2085_v58 = vpop.xlane.xlu1 %2084 }
 0x315   : > { %v3947_v11 = vpop.eup %3946  ;;  %v5072_v0 = vmul.f32 %v3945_v48, %v4903_v49  ;;  %2108 = vmax.xlane.f32.xlu0 %v2107_v17  ;;  %v1584_v49 = vmul.f32 1.442695, %v1526_v35  ;;  %v1531_v17 = vsub.f32 %v4697_v52, %v1499_v15  ;;  %v1225_v52 = vunpack.c.3.s8 %v5041_v1 }
 0x316   : > { %v5075_v19 = vmul.f32 %v3947_v11, %v4905_v62  ;;  %v1220_v62 = vunpack.c.1.s8 %v5036_v33  ;;  %v1530_v11 = vsub.f32 %v4713_v20, %v1499_v15 }
 0x317   : > { %3948 = vpow2.f32 %v1584_v49  ;;  %v1594_v35 = vmul.f32 1.442695, %v1531_v17  ;;  %v1529_v49 = vsub.f32 %v4749_v36, %v4995_v27  ;;  %v5116_v36 = vcvt.s32.f32 %v1225_v52 }
 0x318   : > { %3950 = vpow2.f32 %v1586_v39  ;;  %v5089_v25 = vcvt.s32.f32 %v1220_v62  ;;  %v1592_v4 = vmul.f32 1.442695, %v1530_v11  ;;  %v5957_v39 = vld [vmem:[#allocation17_spill] sm:$0xff] }
 0x319   : > { %v2130_v62 = vsub.f32 %v5957_v39, %v2085_v58  ;;  %v1590_v15 = vmul.f32 1.442695, %v1529_v49 }
 0x31a   : > { %5955 = vst [vmem:[#allocation45_spill] sm:$0xff] %v5089_v25  ;;  %3952 = vpow2.f32 %v1592_v4  ;;  %v5961_v4 = vld [vmem:[#allocation12_spill] sm:$0xff] }
 0x31b   : > { %2436 = vrot.lane.b32.xlu1 %v4506_v16, %s4163_s19  ;;  %1665 = vadd.xlane.f32.xlu2 %v1664_v5  ;;  %v1221_v16 = vunpack.c.1.s8 %v5041_v1  ;;  %v2082_v5 = vpop.xlane.xlu0 %2081  ;;  %3954 = vpow2.f32 %v1594_v35  ;;  %v2164_v11 = vmul.f32 1.442695, %v2130_v62  ;;  %v1222_v62 = vunpack.c.2.s8 %v5036_v33 }
 0x31c   : > { %v2128_v35 = vsub.f32 %v5961_v4, %v2082_v5  ;;  %v5966_v4 = vld [vmem:[#allocation25_spill] sm:$0xff] }
 0x31d   : > { %v3949_v34 = vpop.eup %3948 }
 0x31e   : > { %v3951_v47 = vpop.eup %3950 }
 0x329   : > { %1939 = vperm.xlu0 %3883, %v4392_v38   ;;  %v5091_v38 = vcvt.s32.f32 %v1221_v16  ;;  %v5958_v16 = vld [vmem:[#allocation15_spill] sm:$0xff] }
 0x32a   : > { %5960 = vst [vmem:[#allocation15_spill] sm:$0xff] %v5116_v36 }
 0x32b   : > { %5956 = vst [vmem:[#allocation46_spill] sm:$0xff] %v5091_v38 }
 0x331   : > { %1943 = vperm.xlu0 %3883, %v4397_v41   ;;  %v5095_v41 = vmul.f32 %v3949_v34, %v5089_v25  ;;  %v2131_v34 = vsub.f32 %v5958_v16, %v2085_v58  ;;  %v5962_v58 = vld [vmem:[#allocation11_spill] sm:$0xff]  ;;  %v1223_v16 = vunpack.c.2.s8 %v5041_v1  ;;  %v5965_v1 = vld [vmem:[#allocation4_spill] sm:$0xff] }
 0x333   : > { %2434 = vrot.lane.b32.xlu2 %v4514_v18, %s4163_s19  ;;  %v5098_v18 = vmul.f32 %v3951_v47, %v5091_v38  ;;  %v1224_v47 = vunpack.c.3.s8 %v5036_v33  ;;  %v2166_v17 = vmul.f32 1.442695, %v2131_v34 }
 0x335   : > { %v1667_v48 = vadd.f32 %v5098_v18, %v5095_v41  ;;  %v5114_v38 = vcvt.s32.f32 %v1224_v47 }
 0x337   : > { %5959 = vst [vmem:[#allocation17_spill] sm:$0xff] %v5114_v38 }
 0x33b   : > { %1947 = vperm.xlu2 %3884, %v4403_v42   ;;  %v1528_v42 = vsub.f32 %v4761_v63, %v4995_v27  ;;  %v3953_v63 = vpop.eup %3952 }
 0x33c   : > { %v3955_v27 = vpop.eup %3954  ;;  %v5121_v49 = vmul.f32 %v3953_v63, %v5114_v38  ;;  %v5134_v63 = vcvt.s32.f32 %v1223_v16 }
 0x33d   : > { %v1588_v20 = vmul.f32 1.442695, %v1528_v42  ;;  %v2129_v42 = vsub.f32 %v5962_v58, %v2082_v5  ;;  %v5124_v39 = vmul.f32 %v3955_v27, %v5116_v36  ;;  %v5968_v58 = vld [vmem:[#allocation26_spill] sm:$0xff] }
 0x33e   : > { %5964 = vst [vmem:[#allocation11_spill] sm:$0xff] %v5134_v63 }
 0x33f   : > { %3956 = vpow2.f32 %v1588_v20  ;;  %v2160_v20 = vmul.f32 1.442695, %v2128_v35  ;;  %v2162_v52 = vmul.f32 1.442695, %v2129_v42  ;;  %v1673_v5 = vadd.f32 %v5124_v39, %v5121_v49 }
 0x340   : > { %3958 = vpow2.f32 %v1590_v15 }
 0x341   : > { %3960 = vpow2.f32 %v2164_v11 }
 0x342   : > { %3962 = vpow2.f32 %v2166_v17  ;;  %v5132_v17 = vcvt.s32.f32 %v1222_v62 }
 0x343   : > { %3964 = vpow2.f32 %v2160_v20 }
 0x344   : > { %5963 = vst [vmem:[#allocation12_spill] sm:$0xff] %v5132_v17  ;;  %3966 = vpow2.f32 %v2162_v52 }
 0x345   : > { %1668 = vadd.xlane.f32.xlu1 %v1667_v48  ;;  %v5112_v48 = vpop.xlane.xlu0 %2093  ;;  %v3957_v34 = vpop.eup %3956 }
 0x346   : > { %v3959_v47 = vpop.eup %3958  ;;  %v5145_v36 = vmul.f32 %v3957_v34, %v5132_v17 }
 0x347   : > { %v3961_v11 = vpop.eup %3960  ;;  %v5148_v62 = vmul.f32 %v3959_v47, %v5134_v63  ;;  %v5970_v47 = vld [vmem:[#allocation27_spill] sm:$0xff] }
 0x348   : > { %v3963_v27 = vpop.eup %3962  ;;  %v5139_v35 = vmul.f32 %v3961_v11, %v5966_v4 }
 0x349   : > { %v5142_v42 = vmul.f32 %v3963_v27, %v5968_v58  ;;  %v3965_v52 = vpop.eup %3964  ;;  %v1670_v11 = vadd.f32 %v5148_v62, %v5145_v36 }
 0x34a   : > { %5967 = vst [vmem:[#allocation4_spill] sm:$0xff] %v5139_v35  ;;  %v3967_v27 = vpop.eup %3966  ;;  %v5155_v4 = vmul.f32 %v3965_v52, %v5970_v47 }
 0x34b   : > { %5969 = vst [vmem:[#allocation25_spill] sm:$0xff] %v5142_v42 }
 0x34d   : > { %v5128_v15 = vpop.xlane.xlu0 %2102 }
 0x35b   : > { %1674 = vadd.xlane.f32.xlu0 %v1673_v5  ;;  %v2259_v5 = vadd.f32 %v5142_v42, %v5139_v35 }
 0x35e   : > { %2418 = vrot.lane.b32.xlu1 %v5965_v1, %s4163_s19  ;;  %v1633_v33 = vpop.xlane.xlu2 %1632 }
 0x35f   : > { %vm1677_vm7 = vcmp.eq.f32.partialorder %v1633_v33, 0.0 }
 0x360   : > { %v1693_v16 = vsel %vm1677_vm7, 1.0, %v1633_v33  ;;  %v1630_v20 = vpop.xlane.xlu0 %1629  ;;  %v5158_v33 = vmul.f32 %v3967_v27, %v4856_v53 }
 0x361   : > { %3968 = vrcp.f32 %v1693_v16  ;;  %vm1676_vm8 = vcmp.eq.f32.partialorder %v1630_v20, 0.0  ;;  %v5160_v16 = vpop.xlane.xlu1 %2087 }
 0x362   : > { %v1692_v1 = vsel %vm1676_vm8, 1.0, %v1630_v20  ;;  %5971 = vst [vmem:[#allocation26_spill] sm:$0xff] %v5158_v33 }
 0x363   : > { %3970 = vrcp.f32 %v1692_v1  ;;  %2260 = vadd.xlane.f32.xlu0 %v2259_v5  ;;  %v2256_v5 = vadd.f32 %v5158_v33, %v5155_v4 }
 0x364   : > { %1671 = vadd.xlane.f32.xlu2 %v1670_v11 }
 0x366   : > { %v1636_v34 = vpop.xlane.xlu2 %1635 }
 0x367   : > { %v3969_v58 = vpop.eup %3968  ;;  %vm1678_vm9 = vcmp.eq.f32.partialorder %v1636_v34, 0.0 }
 0x368   : > { %v1639_v63 = vpop.xlane.xlu0 %1638  ;;  %v1726_v17 = vmul.f32 %v3969_v58, %v4866_v13  ;;  %v1727_v38 = vmul.f32 %v3969_v58, %v4873_v31  ;;  %v1694_v53 = vsel %vm1678_vm9, 1.0, %v1636_v34  ;;  %v5973_v34 = vld [vmem:[#allocation6_spill] sm:$0xff] }
 0x369   : > { %v3971_v20 = vpop.eup %3970  ;;  %vm1679_vm10 = vcmp.eq.f32.partialorder %v1639_v63, 0.0  ;;  %3972 = vrcp.f32 %v1694_v53  ;;  %v5168_v13 = vpop.xlane.xlu1 %2090 }
 0x36a   : > { %v1724_v52 = vmul.f32 %v3971_v20, %v4880_v29  ;;  %v1725_v11 = vmul.f32 %v3971_v20, %v4890_v9  ;;  %v1695_v27 = vsel %vm1679_vm10, 1.0, %v1639_v63  ;;  %v5972_v29 = vld [vmem:[#allocation7_spill] sm:$0xff]  ;;  %v1969_v20 = vadd.f32 %v4684_v24, %v5973_v34 }
 0x36b   : > { %3974 = vrcp.f32 %v1695_v27 }
 0x36c   : > { %2257 = vadd.xlane.f32.xlu2 %v2256_v5  ;;  %v1756_v1 = vpack.c.bf16 %v1726_v17, %v1724_v52  ;;  %v1757_v47 = vpack.c.bf16 %v1727_v38, %v1725_v11  ;;  %v1968_v11 = vadd.f32 %v4687_v51, %v5973_v34  ;;  %vm2001_vm13 = vcmp.gt.f32.partialorder %v1969_v20, 0.0 }
 0x36e   : > { %v1645_v25 = vpop.xlane.xlu2 %1644  ;;  %1796 = vmatmul.bf16.vlgmr.msra.gmra.mxu3 %v1756_v1  ;;  %1845 = vmatmul.bf16.vlgmr.msrb.gmra.mxu1 %v1757_v47  ;;  %vm2000_vm14 = vcmp.gt.f32.partialorder %v1968_v11, 0.0  ;;  %v5975_v47 = vld [vmem:[#allocation8_spill] sm:$0xff] }
 0x36f   : > { %v3973_v31 = vpop.eup %3972  ;;  %vm1681_vm11 = vcmp.eq.f32.partialorder %v1645_v25, 0.0 }
 0x370   : > { %v1642_v59 = vpop.xlane.xlu0 %1641  ;;  %v1728_v9 = vmul.f32 %v3973_v31, %v4896_v23  ;;  %v1729_v38 = vmul.f32 %v3973_v31, %v4899_v3  ;;  %v1697_v52 = vsel %vm1681_vm11, 1.0, %v1645_v25  ;;  %v2032_v3 = vmul.f32 0.2, %v1968_v11 }
 0x371   : > { %v3975_v58 = vpop.eup %3974  ;;  %vm1680_vm12 = vcmp.eq.f32.partialorder %v1642_v59, 0.0  ;;  %v5178_v5 = vpop.xlane.xlu1 %2099  ;;  %3976 = vrcp.f32 %v1697_v52  ;;  %v1972_v25 = vadd.f32 %v4687_v51, %v5975_v47 }
 0x372   : > { %v1730_v17 = vmul.f32 %v3975_v58, %v4916_v10  ;;  %v1731_v63 = vmul.f32 %v3975_v58, %v4924_v44  ;;  %v1696_v53 = vsel %vm1680_vm12, 1.0, %v1642_v59  ;;  %v2033_v10 = vmul.f32 0.2, %v1969_v20  ;;  %v5976_v58 = vld [vmem:[#allocation5_spill] sm:$0xff] }
 0x373   : > { %3978 = vrcp.f32 %v1696_v53  ;;  %v1973_v59 = vadd.f32 %v4684_v24, %v5975_v47  ;;  %vm2004_vm15 = vcmp.gt.f32.partialorder %v1972_v25, 0.0 }
 0x374   : > { %v1758_v27 = vpack.c.bf16 %v1730_v17, %v1728_v9  ;;  %v1759_v1 = vpack.c.bf16 %v1731_v63, %v1729_v38  ;;  %v5184_v44 = vsel %vm2001_vm13, %v1969_v20, %v2033_v10  ;;  %v5978_v63 = vld [vmem:[#allocation14_spill] sm:$0xff] }
 0x375   : > { %5974 = vst [vmem:[#allocation27_spill] sm:$0xff] %v5184_v44  ;;  %v2136_v34 = vsub.f32 %v5978_v63, %v5112_v48  ;;  %v2037_v53 = vmul.f32 0.2, %v1973_v59  ;;  %vm2005_vm2 = vcmp.gt.f32.partialorder %v1973_v59, 0.0 }
 0x376   : > { %v1651_v2 = vpop.xlane.xlu2 %1650 }
 0x377   : > { %2432 = vrot.lane.b32.xlu0 %v5972_v29, %s4163_s19  ;;  %v5192_v29 = vsel %vm2000_vm14, %v1968_v11, %v2032_v3  ;;  %v3977_v9 = vpop.eup %3976  ;;  %v2036_v11 = vmul.f32 0.2, %v1972_v25  ;;  %v2176_v63 = vmul.f32 1.442695, %v2136_v34  ;;  %vm1683_vm3 = vcmp.eq.f32.partialorder %v1651_v2, 0.0 }
 0x378   : > { %5977 = vst [vmem:[#allocation7_spill] sm:$0xff] %v5192_v29  ;;  %v2104_v17 = vmax.f32 %v5192_v29, %v5184_v44  ;;  %v5200_v52 = vpop.xlane.xlu0 %1656  ;;  %v1734_v3 = vmul.f32 %v3977_v9, %v4931_v55  ;;  %v5980_v44 = vld [vmem:[#allocation22_spill] sm:$0xff]  ;;  %v5981_v29 = vld [vmem:[#allocation21_spill] sm:$0xff] }
 0x379   : > { %v1648_v31 = vpop.xlane.xlu1 %1647  ;;  %v3979_v38 = vpop.eup %3978  ;;  %v2135_v42 = vsub.f32 %v5981_v29, %v5168_v13  ;;  %v5217_v55 = vsel %vm2004_vm15, %v1972_v25, %v2036_v11  ;;  %3980 = vpow2.f32 %v2176_v63  ;;  %vm1685_vm7 = vcmp.eq.f32.partialorder %v5200_v52, 0.0 }
 0x37a   : > { %vm1682_vm0 = vcmp.eq.f32.partialorder %v1648_v31, 0.0  ;;  %v1732_v10 = vmul.f32 %v3979_v38, %v4941_v30  ;;  %v1733_v47 = vmul.f32 %v3979_v38, %v4944_v8 }
 0x37b   : > { %v1698_v30 = vsel %vm1682_vm0, 1.0, %v1648_v31  ;;  %v2174_v31 = vmul.f32 1.442695, %v2135_v42 }
 0x37c   : > { %3982 = vrcp.f32 %v1698_v30 }
 0x37e   : > { %v5182_v23 = vpop.xlane.xlu2 %1653  ;;  %1801 = vmatmul.bf16.gmra.mxu3 %v1758_v27  ;;  %1850 = vmatmul.bf16.gmra.mxu1 %v1759_v1  ;;  %v5979_v27 = vld [vmem:[#allocation13_spill] sm:$0xff] }
 0x37f   : > { %v2137_v1 = vsub.f32 %v5979_v27, %v5112_v48  ;;  %v5212_v48 = vsel %vm2005_vm2, %v1973_v59, %v2037_v53  ;;  %v5982_v27 = vld [vmem:[#allocation9_spill] sm:$0xff]  ;;  %vm1684_vm6 = vcmp.eq.f32.partialorder %v5182_v23, 0.0 }
 0x380   : > { %v1975_v33 = vadd.f32 %v4684_v24, %v5982_v27  ;;  %v2110_v29 = vmax.f32 %v5217_v55, %v5212_v48 }
 0x381   : > { %v2178_v8 = vmul.f32 1.442695, %v2137_v1  ;;  %v5984_v1 = vld [vmem:[#allocation23_spill] sm:$0xff] }
 0x382   : > { %v2039_v25 = vmul.f32 0.2, %v1975_v33  ;;  %vm2007_vm4 = vcmp.gt.f32.partialorder %v1975_v33, 0.0  ;;  %v2141_v42 = vsub.f32 %v5984_v1, %v5178_v5  ;;  %v1700_v1 = vsel %vm1684_vm6, 1.0, %v5182_v23  ;;  %v5990_v23 = vld [vmem:[#allocation10_spill] sm:$0xff] }
 0x384   : > { %2416 = vrot.lane.b32.xlu2 %v5976_v58, %s4163_s19  ;;  %v1735_v58 = vmul.f32 %v3977_v9, %v4934_v61  ;;  %v1974_v61 = vadd.f32 %v4687_v51, %v5982_v27  ;;  %v1699_v9 = vsel %vm1683_vm3, 1.0, %v1651_v2  ;;  %v5225_v2 = vpop.xlane.xlu0 %1659  ;;  %v5231_v11 = vsel %vm2007_vm4, %v1975_v33, %v2039_v25  ;;  %s739_s19 = scalar_lea.vmem %s5842_s6, %s4274_s29 }
 0x385   : > { %3984 = vrcp.f32 %v1699_v9  ;;  %vm1686_vm13 = vcmp.eq.f32.partialorder %v5225_v2, 0.0 }
 0x386   : > { %v5198_v20 = vpop.xlane.xlu2 %1662  ;;  %v1761_v38 = vpack.c.bf16 %v1735_v58, %v1733_v47  ;;  %3986 = vpow2.f32 %v2178_v8  ;;  %v2038_v34 = vmul.f32 0.2, %v1974_v61  ;;  %vm2006_vm5 = vcmp.gt.f32.partialorder %v1974_v61, 0.0  ;;  %v5986_v58 = vld [vmem:[#allocation19_spill] sm:$0xff] }
 0x387   : > { %v2133_v63 = vsub.f32 %v5986_v58, %v5160_v16  ;;  %vm1687_vm10 = vcmp.eq.f32.partialorder %v5198_v20, 0.0 }
 0x388   : > { %2105 = vmax.xlane.f32.xlu1 %v2104_v17  ;;  %v2134_v17 = vsub.f32 %v5980_v44, %v5168_v13  ;;  %v1760_v44 = vpack.c.bf16 %v1734_v3, %v1732_v10  ;;  %v3981_v10 = vpop.eup %3980  ;;  %v5985_v3 = vld [vmem:[#allocation20_spill] sm:$0xff]  ;;  %v5237_v27 = vsel %vm2006_vm5, %v1974_v61, %v2038_v34 }
 0x389   : > { %v2132_v47 = vsub.f32 %v5985_v3, %v5160_v16 }
 0x38a   : > { %v2172_v13 = vmul.f32 1.442695, %v2134_v17  ;;  %v3983_v17 = vpop.eup %3982 }
 0x38b   : > { %v3985_v30 = vpop.eup %3984  ;;  %v1737_v61 = vmul.f32 %v3983_v17, %v4977_v45  ;;  %v5988_v45 = vld [vmem:[#allocation31_spill] sm:$0xff] }
 0x38c   : > { %3988 = vpow2.f32 %v2172_v13  ;;  %v2168_v13 = vmul.f32 1.442695, %v2132_v47  ;;  %v1738_v16 = vmul.f32 %v3985_v30, %v4980_v57  ;;  %v1739_v34 = vmul.f32 %v3985_v30, %v4983_v21  ;;  %v5987_v57 = vld [vmem:[#allocation30_spill] sm:$0xff] }
 0x38d   : > { %v2437_v35 = vpop.permute.xlu1 %2436  ;;  %3990 = vpow2.f32 %v2174_v31  ;;  %v1736_v31 = vmul.f32 %v3983_v17, %v4972_v28  ;;  %v5253_v28 = vpop.xlane.xlu0 %2108  ;;  %v5989_v47 = vld [vmem:[#allocation18_spill] sm:$0xff]  ;;  %v1977_v17 = vadd.f32 %v4684_v24, %v5990_v23 }
 0x38e   : > { %2518 = vmatpush.bf16.msrb.mxu3 %v2437_v35  ;;  %v5221_v59 = vpop.xlane.xlu2 %1665  ;;  %1855 = vmatmul.bf16.gmra.mxu1 %v1761_v38  ;;  %v5983_v35 = vld [vmem:[#allocation24_spill] sm:$0xff]  ;;  %v3987_v38 = vpop.eup %3986  ;;  %v2142_v58 = vsub.f32 %v5989_v47, %v5128_v15 }
 0x38f   : > { %1806 = vmatmul.bf16.gmra.mxu3 %v1760_v44  ;;  %v2140_v53 = vsub.f32 %v5983_v35, %v5178_v5  ;;  %v2113_v44 = vmax.f32 %v5237_v27, %v5231_v11  ;;  %v2186_v5 = vmul.f32 1.442695, %v2141_v42  ;;  %v5247_v35 = vmul.f32 %v3981_v10, %v4907_v60 }
 0x390   : > { %2111 = vmax.xlane.f32.xlu1 %v2110_v29  ;;  %v2170_v29 = vmul.f32 1.442695, %v2133_v63  ;;  %v1762_v60 = vpack.c.bf16 %v1738_v16, %v1736_v31  ;;  %v1763_v10 = vpack.c.bf16 %v1739_v34, %v1737_v61  ;;  %v1976_v63 = vadd.f32 %v4687_v51, %v5990_v23  ;;  %v5992_v61 = vld [vmem:[#allocation32_spill] sm:$0xff] }
 0x391   : > { %v2184_v8 = vmul.f32 1.442695, %v2140_v53  ;;  %v5250_v53 = vmul.f32 %v3987_v38, %v4909_v32  ;;  %v1701_v32 = vsel %vm1685_vm7, 1.0, %v5200_v52  ;;  %vm2009_vm9 = vcmp.gt.f32.partialorder %v1977_v17, 0.0 }
 0x392   : > { %v3989_v33 = vpop.eup %3988  ;;  %v2040_v31 = vmul.f32 0.2, %v1976_v63  ;;  %vm2008_vm8 = vcmp.gt.f32.partialorder %v1976_v63, 0.0  ;;  %vm1688_vm4 = vcmp.eq.f32.partialorder %v5221_v59, 0.0 }
 0x393   : > { %v3991_v25 = vpop.eup %3990  ;;  %3992 = vpow2.f32 %v2184_v8  ;;  %v5257_v42 = vmul.f32 %v3989_v33, %v5987_v57  ;;  %v2268_v3 = vadd.f32 %v5250_v53, %v5247_v35 }
 0x394   : > { %3994 = vpow2.f32 %v2186_v5  ;;  %v5260_v21 = vmul.f32 %v3991_v25, %v5988_v45  ;;  %v2041_v25 = vmul.f32 0.2, %v1977_v17  ;;  %v5292_v23 = vsel %vm2008_vm8, %v1976_v63, %v2040_v31 }
 0x395   : > { %3996 = vpow2.f32 %v2168_v13  ;;  %v2188_v13 = vmul.f32 1.442695, %v2142_v58 }
 0x396   : > { %v2435_v9 = vpop.permute.xlu2 %2434  ;;  %3998 = vpow2.f32 %v2170_v29  ;;  %v2265_v8 = vadd.f32 %v5260_v21, %v5257_v42 }
 0x397   : > { %2519 = vmatpush.bf16.msrb.mxu3 %v2435_v9  ;;  %4000 = vrcp.f32 %v1700_v1  ;;  %v5991_v9 = vld [vmem:[#allocation16_spill] sm:$0xff] }
 0x398   : > { %2114 = vmax.xlane.f32.xlu1 %v2113_v44  ;;  %v2143_v44 = vsub.f32 %v5991_v9, %v5128_v15  ;;  %4002 = vrcp.f32 %v1701_v32 }
 0x399   : > { %v3993_v30 = vpop.eup %3992  ;;  %4004 = vpow2.f32 %v2188_v13 }
 0x39a   : > { %v3995_v52 = vpop.eup %3994  ;;  %v5276_v16 = vmul.f32 %v3993_v30, %v4953_v22  ;;  %v2190_v57 = vmul.f32 1.442695, %v2143_v44  ;;  %v5294_v30 = vsel %vm2009_vm9, %v1977_v17, %v2041_v25 }
 0x39b   : > { %v3997_v38 = vpop.eup %3996  ;;  %v1940_v29 = vpop.permute.xlu0 %1939  ;;  %v5279_v34 = vmul.f32 %v3995_v52, %v5992_v61 }
 0x39c   : > { %v3999_v33 = vpop.eup %3998  ;;  %v1978_v58 = vadd.f32 %v4687_v51, %v1940_v29  ;;  %4006 = vpow2.f32 %v2190_v57 }
 0x39d   : > { %v4001_v1 = vpop.eup %4000  ;;  %v2274_v52 = vadd.f32 %v5279_v34, %v5276_v16 }
 0x39e   : > { %1860 = vmatmul.bf16.gmra.mxu1 %v1763_v10  ;;  %v1948_v5 = vpop.permute.xlu2 %1947  ;;  %v5993_v10 = vld [vmem:[#allocation28_spill] sm:$0xff]  ;;  %v4003_v47 = vpop.eup %4002  ;;  %v1740_v9 = vmul.f32 %v4001_v1, %v5012_v43  ;;  %v2042_v13 = vmul.f32 0.2, %v1978_v58  ;;  %vm2010_vm14 = vcmp.gt.f32.partialorder %v1978_v58, 0.0 }
 0x39f   : > { %1811 = vmatmul.bf16.gmra.mxu3 %v1762_v60  ;;  %v1982_v15 = vadd.f32 %v4687_v51, %v1948_v5  ;;  %v1983_v45 = vadd.f32 %v4684_v24, %v1948_v5  ;;  %v2271_v60 = vadd.f32 %v5075_v19, %v5072_v0  ;;  %v5286_v32 = vmul.f32 %v3997_v38, %v5993_v10  ;;  %v4005_v25 = vpop.eup %4004 }
 0x3a0   : > { %2269 = vadd.xlane.f32.xlu1 %v2268_v3  ;;  %v5994_v3 = vld [vmem:[#allocation29_spill] sm:$0xff]  ;;  %v1741_v5 = vmul.f32 %v4001_v1, %v5015_v12  ;;  %v1742_v63 = vmul.f32 %v4003_v47, %v4986_v6  ;;  %v1743_v43 = vmul.f32 %v4003_v47, %v4993_v7  ;;  %v2116_v7 = vmax.f32 %v5292_v23, %v5294_v30 }
 0x3a1   : > { %2266 = vadd.xlane.f32.xlu0 %v2265_v8  ;;  %v5289_v22 = vmul.f32 %v3999_v33, %v5994_v3  ;;  %v1979_v8 = vadd.f32 %v4684_v24, %v1940_v29  ;;  %v2046_v44 = vmul.f32 0.2, %v1982_v15  ;;  %v2047_v38 = vmul.f32 0.2, %v1983_v45 }
 0x3a2   : > { %vm2014_vm11 = vcmp.gt.f32.partialorder %v1982_v15, 0.0  ;;  %vm2015_vm12 = vcmp.gt.f32.partialorder %v1983_v45, 0.0  ;;  %v1703_v33 = vsel %vm1687_vm10, 1.0, %v5198_v20  ;;  %v2146_v29 = vsub.f32 %v5061_v14, %v5253_v28 }
 0x3a3   : > { %v2262_v17 = vadd.f32 %v5289_v22, %v5286_v32  ;;  %v2043_v31 = vmul.f32 0.2, %v1979_v8  ;;  %v1764_v12 = vpack.c.bf16 %v1742_v63, %v1740_v9  ;;  %v1944_v6 = vpop.permute.xlu0 %1943  ;;  %v1765_v61 = vpack.c.bf16 %v1743_v43, %v1741_v5  ;;  %v5996_v9 = vld [vmem:[#allocation34_spill] sm:$0xff] }
 0x3a4   : > { %v5310_v1 = vsel %vm2014_vm11, %v1982_v15, %v2046_v44  ;;  %v5312_v57 = vsel %vm2015_vm12, %v1983_v45, %v2047_v38  ;;  %vm2011_vm15 = vcmp.gt.f32.partialorder %v1979_v8, 0.0  ;;  %v2147_v20 = vsub.f32 %v5055_v56, %v5253_v28 }
 0x3a5   : > { %v1702_v14 = vsel %vm1686_vm13, 1.0, %v5225_v2  ;;  %4008 = vrcp.f32 %v1703_v33  ;;  %v5321_v10 = vsel %vm2010_vm14, %v1978_v58, %v2042_v13  ;;  %v1980_v15 = vadd.f32 %v4687_v51, %v1944_v6  ;;  %v5995_v2 = vld [vmem:[#allocation33_spill] sm:$0xff] }
 0x3a6   : > { %v1981_v45 = vadd.f32 %v4684_v24, %v1944_v6  ;;  %v2125_v56 = vmax.f32 %v5310_v1, %v5312_v57  ;;  %v5327_v28 = vsel %vm2011_vm15, %v1979_v8, %v2043_v31  ;;  %v2196_v3 = vmul.f32 1.442695, %v2146_v29 }
 0x3a7   : > { %4010 = vrcp.f32 %v1702_v14  ;;  %v2198_v47 = vmul.f32 1.442695, %v2147_v20  ;;  %v2119_v51 = vmax.f32 %v5321_v10, %v5327_v28  ;;  %v2044_v24 = vmul.f32 0.2, %v1980_v15 }
 0x3a8   : > { %2272 = vadd.xlane.f32.xlu1 %v2271_v60  ;;  %v4007_v60 = vpop.eup %4006  ;;  %v2045_v44 = vmul.f32 0.2, %v1981_v45  ;;  %4012 = vpow2.f32 %v2196_v3  ;;  %vm2012_vm0 = vcmp.gt.f32.partialorder %v1980_v15, 0.0  ;;  %vm2013_vm2 = vcmp.gt.f32.partialorder %v1981_v45, 0.0 }
 0x3a9   : > { %2275 = vadd.xlane.f32.xlu0 %v2274_v52  ;;  %v5330_v52 = vmul.f32 %v4005_v25, %v5995_v2  ;;  %v5333_v58 = vmul.f32 %v4007_v60, %v5996_v9  ;;  %4014 = vpow2.f32 %v2198_v47 }
 0x3aa   : > { %v5341_v33 = vsel %vm2013_vm2, %v1981_v45, %v2045_v44 }
 0x3ab   : > { %v4009_v38 = vpop.eup %4008  ;;  %v2277_v8 = vadd.f32 %v5333_v58, %v5330_v52 }
 0x3ac   : > { %v1746_v13 = vmul.f32 %v4009_v38, %v5047_v54  ;;  %v1747_v43 = vmul.f32 %v4009_v38, %v5050_v40  ;;  %v1704_v54 = vsel %vm1688_vm4, 1.0, %v5221_v59  ;;  %v5997_v40 = vld [vmem:[#allocation35_spill] sm:$0xff] }
 0x3ad   : > { %2263 = vadd.xlane.f32.xlu2 %v2262_v17  ;;  %v4011_v63 = vpop.eup %4010  ;;  %v5339_v17 = vsel %vm2012_vm0, %v1980_v15, %v2044_v24 }
 0x3ae   : > { %1865 = vmatmul.bf16.gmra.mxu1 %v1765_v61  ;;  %v4013_v29 = vpop.eup %4012  ;;  %v1744_v31 = vmul.f32 %v4011_v63, %v5020_v50  ;;  %v2122_v25 = vmax.f32 %v5339_v17, %v5341_v33  ;;  %v5998_v50 = vld [vmem:[#allocation36_spill] sm:$0xff] }
 0x3af   : > { %1816 = vmatmul.bf16.gmra.mxu3 %v1764_v12  ;;  %v1745_v12 = vmul.f32 %v4011_v63, %v5023_v26  ;;  %v4015_v6 = vpop.eup %4014  ;;  %v5352_v60 = vmul.f32 %v4013_v29, %v5997_v40 }
 0x3b0   : > { %2117 = vmax.xlane.f32.xlu1 %v2116_v7  ;;  %v1766_v20 = vpack.c.bf16 %v1746_v13, %v1744_v31  ;;  %v5355_v14 = vmul.f32 %v4015_v6, %v5998_v50 }
 0x3b1   : > { %2126 = vmax.xlane.f32.xlu0 %v2125_v56  ;;  %v1767_v7 = vpack.c.bf16 %v1747_v43, %v1745_v12 }
 0x3b2   : > { %v2283_v26 = vadd.f32 %v5355_v14, %v5352_v60 }
 0x3b5   : > { %2120 = vmax.xlane.f32.xlu2 %v2119_v51 }
 0x3b8   : > { %v1669_v5 = vpop.xlane.xlu1 %1668  ;;  %2278 = vadd.xlane.f32.xlu1 %v2277_v8 }
 0x3b9   : > { %vm1689_vm3 = vcmp.eq.f32.partialorder %v1669_v5, 0.0 }
 0x3ba   : > { %v1705_v61 = vsel %vm1689_vm3, 1.0, %v1669_v5 }
 0x3bb   : > { %4016 = vrcp.f32 %v1705_v61 }
 0x3bc   : > { %4018 = vrcp.f32 %v1704_v54  ;;  %v5999_v54 = vld [vmem:[#allocation4_spill] sm:$0xff] }
 0x3bd   : > { %2123 = vmax.xlane.f32.xlu2 %v2122_v25 }
 0x3be   : > { %1870 = vmatmul.bf16.gmra.mxu1 %v1767_v7 }
 0x3bf   : > { %1821 = vmatmul.bf16.gmra.mxu3 %v1766_v20 }
 0x3c1   : > { %v4017_v15 = vpop.eup %4016 }
 0x3c2   : > { %v4019_v45 = vpop.eup %4018  ;;  %v1750_v56 = vmul.f32 %v4017_v15, %v5095_v41  ;;  %v1751_v59 = vmul.f32 %v4017_v15, %v5098_v18  ;;  %v6001_v15 = vld [vmem:[#allocation25_spill] sm:$0xff] }
 0x3c3   : > { %v1748_v3 = vmul.f32 %v4019_v45, %v5066_v37  ;;  %v1749_v47 = vmul.f32 %v4019_v45, %v5069_v46 }
 0x3c5   : > { %2284 = vadd.xlane.f32.xlu2 %v2283_v26  ;;  %v1768_v2 = vpack.c.bf16 %v1750_v56, %v1748_v3  ;;  %v1769_v9 = vpack.c.bf16 %v1751_v59, %v1749_v47  ;;  %v6002_v47 = vld [vmem:[#allocation7_spill] sm:$0xff] }
 0x3ce   : > { %1875 = vmatmul.bf16.gmra.mxu1 %v1769_v9  ;;  %v1675_v51 = vpop.xlane.xlu0 %1674  ;;  %v6003_v9 = vld [vmem:[#allocation27_spill] sm:$0xff] }
 0x3cf   : > { %1826 = vmatmul.bf16.gmra.mxu3 %v1768_v2  ;;  %vm1691_vm5 = vcmp.eq.f32.partialorder %v1675_v51, 0.0 }
 0x3d0   : > { %v2419_v24 = vpop.permute.xlu1 %2418  ;;  %v1707_v44 = vsel %vm1691_vm5, 1.0, %v1675_v51 }
 0x3d1   : > { %2470 = vmatpush.bf16.msrb.mxu2 %v2419_v24  ;;  %4020 = vrcp.f32 %v1707_v44 }
 0x3d6   : > { %v2261_v38 = vpop.xlane.xlu0 %2260 }
 0x3d7   : > { %v1672_v8 = vpop.xlane.xlu2 %1671  ;;  %vm2305_vm7 = vcmp.eq.f32.partialorder %v2261_v38, 0.0  ;;  %v4021_v37 = vpop.eup %4020 }
 0x3d8   : > { %vm1690_vm6 = vcmp.eq.f32.partialorder %v1672_v8, 0.0  ;;  %v2321_v18 = vsel %vm2305_vm7, 1.0, %v2261_v38  ;;  %v1754_v13 = vmul.f32 %v4021_v37, %v5121_v49  ;;  %v1755_v31 = vmul.f32 %v4021_v37, %v5124_v39 }
 0x3d9   : > { %v1706_v41 = vsel %vm1690_vm6, 1.0, %v1672_v8 }
 0x3da   : > { %4022 = vrcp.f32 %v1706_v41 }
 0x3db   : > { %4024 = vrcp.f32 %v2321_v18 }
 0x3df   : > { %v2258_v5 = vpop.xlane.xlu2 %2257 }
 0x3e0   : > { %vm2304_vm8 = vcmp.eq.f32.partialorder %v2258_v5, 0.0  ;;  %v4023_v46 = vpop.eup %4022 }
 0x3e1   : > { %v2320_v63 = vsel %vm2304_vm8, 1.0, %v2258_v5  ;;  %v1752_v43 = vmul.f32 %v4023_v46, %v5145_v36  ;;  %v1753_v29 = vmul.f32 %v4023_v46, %v5148_v62  ;;  %v4025_v6 = vpop.eup %4024  ;;  %v6000_v62 = vld [vmem:[#allocation26_spill] sm:$0xff]  ;;  %vm2626_vm8 = vcmask 130048  }
 0x3e2   : > { %4026 = vrcp.f32 %v2320_v63  ;;  %v2354_v40 = vmul.f32 %v4025_v6, %v5999_v54  ;;  %v2355_v45 = vmul.f32 %v4025_v6, %v6001_v15  ;;  %v6007_v15 = vld [vmem:[#allocation40_spill] sm:$0xff] }
 0x3e3   : > { %v1770_v12 = vpack.c.bf16 %v1754_v13, %v1752_v43  ;;  %v1771_v25 = vpack.c.bf16 %v1755_v31, %v1753_v29  ;;  %v6004_v29 = vld [vmem:[#allocation37_spill] sm:$0xff] }
 0x3e5   : > { %1831 = vmatmul.bf16.gmra.mxu3 %v1770_v12  ;;  %1880 = vmatmul.bf16.gmra.mxu1 %v1771_v25  ;;  %v6005_v12 = vld [vmem:[#allocation38_spill] sm:$0xff] }
 0x3e7   : > { %v2417_v61 = vpop.permute.xlu2 %2416 }
 0x3e8   : > { %v4027_v20 = vpop.eup %4026  ;;  %2471 = vmatpush.bf16.msrb.mxu2 %v2417_v61 }
 0x3e9   : > { %v2352_v7 = vmul.f32 %v4027_v20, %v5155_v4  ;;  %v2433_v49 = vpop.permute.xlu0 %2432  ;;  %v2353_v39 = vmul.f32 %v4027_v20, %v6000_v62  ;;  %v6006_v62 = vld [vmem:[#allocation39_spill] sm:$0xff] }
 0x3ea   : > { %2520 = vmatpush.bf16.msrb.mxu3 %v2433_v49 }
 0x3eb   : > { %v2384_v50 = vpack.c.bf16 %v2354_v40, %v2352_v7  ;;  %v5369_v36 = vpop.f32.mrf.mxu1  ;;  %v2385_v59 = vpack.c.bf16 %v2355_v45, %v2353_v39 }
 0x3ed   : > { %2472 = vmatmul.bf16.vlgmr.msrb.gmra.mxu2 %v2384_v50 }
 0x3f1   : > { %v5372_v26 = vpop.f32.mrf.mxu3 }
 0x3f3   : > { %v5375_v56 = vpop.f32.mrf.mxu1 }
 0x3f5   : > { %2521 = vmatmul.bf16.vlgmr.msrb.gmra.mxu3 %v2385_v59 }
 0x3f9   : > { %v5377_v3 = vpop.f32.mrf.mxu3 }
 0x3fb   : > { %v2106_v4 = vpop.xlane.xlu1 %2105  ;;  %v5381_v24 = vpop.f32.mrf.mxu1 }
 0x3fc   : > { %v2144_v2 = vsub.f32 %v6002_v47, %v2106_v4  ;;  %v2145_v51 = vsub.f32 %v6003_v9, %v2106_v4 }
 0x3fe   : > { %v2192_v44 = vmul.f32 1.442695, %v2144_v2  ;;  %v2194_v38 = vmul.f32 1.442695, %v2145_v51  ;;  %v6008_v51 = vld [vmem:[#allocation41_spill] sm:$0xff] }
 0x400   : > { %4028 = vpow2.f32 %v2192_v44 }
 0x401   : > { %4030 = vpow2.f32 %v2194_v38  ;;  %v5383_v8 = vpop.f32.mrf.mxu3  ;;  %v6009_v38 = vld [vmem:[#allocation42_spill] sm:$0xff] }
 0x403   : > { %v2112_v41 = vpop.xlane.xlu1 %2111  ;;  %v5385_v18 = vpop.f32.mrf.mxu1 }
 0x404   : > { %v2148_v37 = vsub.f32 %v5217_v55, %v2112_v41  ;;  %v2149_v5 = vsub.f32 %v5212_v48, %v2112_v41 }
 0x406   : > { %v4029_v46 = vpop.eup %4028  ;;  %v2200_v13 = vmul.f32 1.442695, %v2148_v37  ;;  %v2202_v43 = vmul.f32 1.442695, %v2149_v5 }
 0x407   : > { %v4031_v63 = vpop.eup %4030  ;;  %v5390_v31 = vmul.f32 %v4029_v46, %v6004_v29 }
 0x408   : > { %v5393_v25 = vmul.f32 %v4031_v63, %v6005_v12  ;;  %4032 = vpow2.f32 %v2200_v13 }
 0x409   : > { %4034 = vpow2.f32 %v2202_v43  ;;  %v5397_v61 = vpop.f32.mrf.mxu3 }
 0x40a   : > { %v2280_v6 = vadd.f32 %v5393_v25, %v5390_v31 }
 0x40b   : > { %v2115_v55 = vpop.xlane.xlu1 %2114  ;;  %v5399_v48 = vpop.f32.mrf.mxu1 }
 0x40c   : > { %2281 = vadd.xlane.f32.xlu1 %v2280_v6  ;;  %v2150_v20 = vsub.f32 %v5237_v27, %v2115_v55  ;;  %v2151_v7 = vsub.f32 %v5231_v11, %v2115_v55 }
 0x40e   : > { %v4033_v54 = vpop.eup %4032  ;;  %v2204_v40 = vmul.f32 1.442695, %v2150_v20  ;;  %v2206_v49 = vmul.f32 1.442695, %v2151_v7 }
 0x40f   : > { %v4035_v50 = vpop.eup %4034  ;;  %v5404_v39 = vmul.f32 %v4033_v54, %v6006_v62 }
 0x410   : > { %4036 = vpow2.f32 %v2204_v40  ;;  %v5407_v45 = vmul.f32 %v4035_v50, %v6007_v15 }
 0x411   : > { %4038 = vpow2.f32 %v2206_v49 }
 0x412   : > { %v5409_v59 = vpop.f32.mrf.mxu3  ;;  %v2286_v4 = vadd.f32 %v5407_v45, %v5404_v39 }
 0x413   : > { %v2270_v27 = vpop.xlane.xlu1 %2269  ;;  %v5413_v47 = vpop.f32.mrf.mxu1 }
 0x414   : > { %2287 = vadd.xlane.f32.xlu0 %v2286_v4  ;;  %v2267_v11 = vpop.xlane.xlu0 %2266  ;;  %vm2308_vm12 = vcmp.eq.f32.partialorder %v2270_v27, 0.0 }
 0x415   : > { %vm2307_vm9 = vcmp.eq.f32.partialorder %v2267_v11, 0.0 }
 0x416   : > { %v4037_v2 = vpop.eup %4036  ;;  %v2323_v43 = vsel %vm2307_vm9, 1.0, %v2267_v11 }
 0x417   : > { %v4039_v9 = vpop.eup %4038  ;;  %v5416_v44 = vmul.f32 %v4037_v2, %v6008_v51  ;;  %4040 = vrcp.f32 %v2323_v43 }
 0x418   : > { %v5419_v41 = vmul.f32 %v4039_v9, %v6009_v38 }
 0x41a   : > { %v5421_v37 = vpop.f32.mrf.mxu3  ;;  %v2289_v5 = vadd.f32 %v5419_v41, %v5416_v44 }
 0x41b   : > { %v2273_v46 = vpop.xlane.xlu1 %2272  ;;  %v5425_v63 = vpop.f32.mrf.mxu1 }
 0x41c   : > { %2290 = vadd.xlane.f32.xlu1 %v2289_v5  ;;  %v5427_v13 = vpop.xlane.xlu0 %2275  ;;  %vm2309_vm11 = vcmp.eq.f32.partialorder %v2273_v46, 0.0 }
 0x41d   : > { %v4041_v4 = vpop.eup %4040  ;;  %vm2310_vm14 = vcmp.eq.f32.partialorder %v5427_v13, 0.0 }
 0x41e   : > { %v2359_v43 = vmul.f32 %v4041_v4, %v5260_v21 }
 0x420   : > { %v2264_v29 = vpop.xlane.xlu2 %2263 }
 0x421   : > { %vm2306_vm10 = vcmp.eq.f32.partialorder %v2264_v29, 0.0 }
 0x422   : > { %v5429_v12 = vpop.f32.mrf.mxu3  ;;  %v2322_v6 = vsel %vm2306_vm10, 1.0, %v2264_v29 }
 0x423   : > { %4042 = vrcp.f32 %v2322_v6  ;;  %v2118_v55 = vpop.xlane.xlu1 %2117  ;;  %v5431_v20 = vpop.f32.mrf.mxu1 }
 0x424   : > { %v2152_v7 = vsub.f32 %v5292_v23, %v2118_v55  ;;  %v2153_v54 = vsub.f32 %v5294_v30, %v2118_v55  ;;  %v2127_v40 = vpop.xlane.xlu0 %2126  ;;  %v2325_v55 = vsel %vm2309_vm11, 1.0, %v2273_v46 }
 0x425   : > { %v2158_v49 = vsub.f32 %v5310_v1, %v2127_v40  ;;  %v2159_v50 = vsub.f32 %v5312_v57, %v2127_v40  ;;  %v2358_v57 = vmul.f32 %v4041_v4, %v5257_v42  ;;  %v2324_v40 = vsel %vm2308_vm12, 1.0, %v2270_v27 }
 0x426   : > { %v2208_v62 = vmul.f32 1.442695, %v2152_v7  ;;  %v2210_v15 = vmul.f32 1.442695, %v2153_v54 }
 0x427   : > { %v2220_v11 = vmul.f32 1.442695, %v2158_v49  ;;  %v2222_v2 = vmul.f32 1.442695, %v2159_v50  ;;  %v6011_v49 = vld [vmem:[#allocation44_spill] sm:$0xff] }
 0x428   : > { %4044 = vpow2.f32 %v2208_v62  ;;  %v2121_v9 = vpop.xlane.xlu2 %2120 }
 0x429   : > { %v4043_v51 = vpop.eup %4042  ;;  %4046 = vpow2.f32 %v2210_v15  ;;  %v2154_v38 = vsub.f32 %v5321_v10, %v2121_v9  ;;  %v2155_v23 = vsub.f32 %v5327_v28, %v2121_v9 }
 0x42a   : > { %v5439_v30 = vpop.f32.mrf.mxu3  ;;  %v2356_v1 = vmul.f32 %v4043_v51, %v5286_v32  ;;  %v2357_v5 = vmul.f32 %v4043_v51, %v5289_v22  ;;  %4048 = vpow2.f32 %v2220_v11  ;;  %v6010_v32 = vld [vmem:[#allocation43_spill] sm:$0xff] }
 0x42b   : > { %v2212_v29 = vmul.f32 1.442695, %v2154_v38  ;;  %v2214_v6 = vmul.f32 1.442695, %v2155_v23  ;;  %4050 = vpow2.f32 %v2222_v2  ;;  %v5445_v7 = vpop.f32.mrf.mxu1 }
 0x42c   : > { %v2386_v10 = vpack.c.bf16 %v2358_v57, %v2356_v1  ;;  %v2387_v28 = vpack.c.bf16 %v2359_v43, %v2357_v5  ;;  %v6012_v1 = vld [vmem:[#allocation45_spill] sm:$0xff]  ;;  %v2279_v43 = vpop.xlane.xlu1 %2278 }
 0x42d   : > { %4052 = vpow2.f32 %v2212_v29  ;;  %v6014_v29 = vld [vmem:[#allocation17_spill] sm:$0xff]  ;;  %vm2311_vm13 = vcmp.eq.f32.partialorder %v2279_v43, 0.0 }
 0x42e   : > { %v4045_v54 = vpop.eup %4044  ;;  %4054 = vpow2.f32 %v2214_v6  ;;  %2477 = vmatmul.bf16.gmra.mxu2 %v2386_v10  ;;  %2526 = vmatmul.bf16.gmra.mxu3 %v2387_v28 }
 0x42f   : > { %v4047_v42 = vpop.eup %4046  ;;  %4056 = vrcp.f32 %v2325_v55  ;;  %v5448_v21 = vmul.f32 %v4045_v54, %v6010_v32  ;;  %v6015_v55 = vld [vmem:[#allocation15_spill] sm:$0xff] }
 0x430   : > { %v2124_v22 = vpop.xlane.xlu2 %2123  ;;  %v5451_v50 = vmul.f32 %v4047_v42, %v6011_v49  ;;  %v4049_v46 = vpop.eup %4048  ;;  %4058 = vrcp.f32 %v2324_v40 }
 0x431   : > { %v2156_v62 = vsub.f32 %v5339_v17, %v2124_v22  ;;  %v2157_v15 = vsub.f32 %v5341_v33, %v2124_v22  ;;  %v4051_v4 = vpop.eup %4050  ;;  %v6013_v17 = vld [vmem:[#allocation46_spill] sm:$0xff]  ;;  %v5468_v6 = vmul.f32 %v4049_v46, %v6014_v29 }
 0x432   : > { %v5455_v27 = vpop.f32.mrf.mxu3  ;;  %v2292_v11 = vadd.f32 %v5451_v50, %v5448_v21  ;;  %v5471_v10 = vmul.f32 %v4051_v4, %v6015_v55  ;;  %v2327_v4 = vsel %vm2311_vm13, 1.0, %v2279_v43 }
 0x433   : > { %v4053_v2 = vpop.eup %4052  ;;  %v2216_v9 = vmul.f32 1.442695, %v2156_v62  ;;  %v2218_v51 = vmul.f32 1.442695, %v2157_v15  ;;  %v5459_v23 = vpop.f32.mrf.mxu1 }
 0x434   : > { %v4055_v38 = vpop.eup %4054  ;;  %2293 = vadd.xlane.f32.xlu2 %v2292_v11  ;;  %v5462_v57 = vmul.f32 %v4053_v2, %v6012_v1  ;;  %v2301_v22 = vadd.f32 %v5471_v10, %v5468_v6  ;;  %v6016_v2 = vld [vmem:[#allocation12_spill] sm:$0xff] }
 0x435   : > { %v4057_v5 = vpop.eup %4056  ;;  %4060 = vpow2.f32 %v2216_v9  ;;  %v5465_v33 = vmul.f32 %v4055_v38, %v6013_v17 }
 0x436   : > { %4062 = vpow2.f32 %v2218_v51  ;;  %v4059_v28 = vpop.eup %4058  ;;  %v2362_v40 = vmul.f32 %v4057_v5, %v5072_v0  ;;  %v2363_v42 = vmul.f32 %v4057_v5, %v5075_v19  ;;  %v6017_v51 = vld [vmem:[#allocation11_spill] sm:$0xff] }
 0x437   : > { %v2295_v54 = vadd.f32 %v5465_v33, %v5462_v57  ;;  %v2360_v49 = vmul.f32 %v4059_v28, %v5247_v35  ;;  %v2361_v46 = vmul.f32 %v4059_v28, %v5250_v53  ;;  %v2326_v35 = vsel %vm2310_vm14, 1.0, %v5427_v13 }
 0x438   : > { %4064 = vrcp.f32 %v2327_v4 }
 0x439   : > { %2296 = vadd.xlane.f32.xlu0 %v2295_v54  ;;  %v2388_v0 = vpack.c.bf16 %v2362_v40, %v2360_v49  ;;  %v2389_v19 = vpack.c.bf16 %v2363_v42, %v2361_v46  ;;  %4066 = vrcp.f32 %v2326_v35 }
 0x43a   : > { %v5477_v32 = vpop.f32.mrf.mxu3 }
 0x43b   : > { %v4061_v62 = vpop.eup %4060  ;;  %v5484_v11 = vpop.f32.mrf.mxu1 }
 0x43c   : > { %v4063_v15 = vpop.eup %4062  ;;  %2302 = vadd.xlane.f32.xlu2 %v2301_v22  ;;  %v5487_v9 = vmul.f32 %v4061_v62, %v6016_v2  ;;  %v2285_v2 = vpop.xlane.xlu2 %2284 }
 0x43d   : > { %v5490_v38 = vmul.f32 %v4063_v15, %v6017_v51  ;;  %vm2313_vm15 = vcmp.eq.f32.partialorder %v2285_v2, 0.0 }
 0x43e   : > { %2482 = vmatmul.bf16.gmra.mxu2 %v2388_v0  ;;  %2531 = vmatmul.bf16.gmra.mxu3 %v2389_v19  ;;  %v4065_v5 = vpop.eup %4064 }
 0x43f   : > { %v2298_v53 = vadd.f32 %v5490_v38, %v5487_v9  ;;  %v4067_v43 = vpop.eup %4066  ;;  %v2366_v29 = vmul.f32 %v4065_v5, %v5330_v52  ;;  %v2367_v13 = vmul.f32 %v4065_v5, %v5333_v58  ;;  %v2329_v5 = vsel %vm2313_vm15, 1.0, %v2285_v2 }
 0x440   : > { %v2364_v28 = vmul.f32 %v4067_v43, %v5276_v16  ;;  %v2365_v54 = vmul.f32 %v4067_v43, %v5279_v34  ;;  %4068 = vrcp.f32 %v2329_v5 }
 0x441   : > { %2299 = vadd.xlane.f32.xlu1 %v2298_v53 }
 0x442   : > { %v5495_v1 = vpop.f32.mrf.mxu3  ;;  %v2390_v40 = vpack.c.bf16 %v2366_v29, %v2364_v28  ;;  %v2391_v42 = vpack.c.bf16 %v2367_v13, %v2365_v54 }
 0x443   : > { %v5497_v17 = vpop.f32.mrf.mxu1 }
 0x44a   : > { %v5501_v55 = vpop.f32.mrf.mxu3 }
 0x44b   : > { %v1876_v22 = vpop.f32.mrf.mxu1 }
 0x44e   : > { %2487 = vmatmul.bf16.gmra.mxu2 %v2390_v40  ;;  %2536 = vmatmul.bf16.gmra.mxu3 %v2391_v42  ;;  %v4069_v40 = vpop.eup %4068 }
 0x452   : > { %v1827_v49 = vpop.f32.mrf.mxu3 }
 0x453   : > { %v5505_v46 = vadd.f32 %v1876_v22, %v1827_v49  ;;  %v1878_v62 = vpop.f32.mrf.mxu1 }
 0x45a   : > { %v1829_v52 = vpop.f32.mrf.mxu3 }
 0x45b   : > { %v5507_v15 = vadd.f32 %v1878_v62, %v1829_v52  ;;  %v2370_v62 = vmul.f32 %v4069_v40, %v5352_v60 }
 0x462   : > { %v1881_v16 = vpop.f32.mrf.mxu1 }
 0x468   : > { %v1832_v34 = vpop.f32.mrf.mxu3 }
 0x469   : > { %v5521_v58 = vadd.f32 %v1881_v16, %v1832_v34  ;;  %v2371_v16 = vmul.f32 %v4069_v40, %v5355_v14 }
 0x46a   : > { %v1883_v4 = vpop.f32.mrf.mxu1 }
 0x470   : > { %v1834_v0 = vpop.f32.mrf.mxu3  ;;  %v2473_v51 = vpop.f32.mrf.mxu2 }
 0x471   : > { %v5523_v19 = vadd.f32 %v1883_v4, %v1834_v0 }
 0x478   : > { %v2522_v35 = vpop.f32.mrf.mxu3  ;;  %v2475_v13 = vpop.f32.mrf.mxu2 }
 0x479   : > { %v2523_v53 = vadd.f32 %v2522_v35, %v2473_v51 }
 0x47b   : > { %2578 = vrot.lane.b32.xlu0 %v2523_v53, %s4164_s23 }
 0x47f   : > { %v2282_v43 = vpop.xlane.xlu1 %2281 }
 0x480   : > { %vm2312_vm0 = vcmp.eq.f32.partialorder %v2282_v43, 0.0  ;;  %v2524_v28 = vpop.f32.mrf.mxu3 }
 0x481   : > { %v2328_v29 = vsel %vm2312_vm0, 1.0, %v2282_v43  ;;  %v2525_v54 = vadd.f32 %v2524_v28, %v2475_v13 }
 0x482   : > { %4070 = vrcp.f32 %v2328_v29 }
 0x483   : > { %2580 = vrot.lane.b32.xlu1 %v2525_v54, %s4164_s23 }
 0x487   : > { %v2288_v22 = vpop.xlane.xlu0 %2287 }
 0x488   : > { %v4071_v42 = vpop.eup %4070  ;;  %vm2314_vm2 = vcmp.eq.f32.partialorder %v2288_v22, 0.0 }
 0x489   : > { %v2368_v49 = vmul.f32 %v4071_v42, %v5390_v31  ;;  %v2369_v52 = vmul.f32 %v4071_v42, %v5393_v25  ;;  %v2330_v0 = vsel %vm2314_vm2, 1.0, %v2288_v22 }
 0x48a   : > { %4072 = vrcp.f32 %v2330_v0 }
 0x48b   : > { %v2392_v34 = vpack.c.bf16 %v2370_v62, %v2368_v49  ;;  %v2393_v4 = vpack.c.bf16 %v2371_v16, %v2369_v52 }
 0x48d   : > { %2492 = vmatmul.bf16.gmra.mxu2 %v2392_v34  ;;  %2541 = vmatmul.bf16.gmra.mxu3 %v2393_v4 }
 0x48f   : > { %v2291_v2 = vpop.xlane.xlu1 %2290 }
 0x490   : > { %vm2315_vm3 = vcmp.eq.f32.partialorder %v2291_v2, 0.0  ;;  %v4073_v35 = vpop.eup %4072 }
 0x491   : > { %v2331_v51 = vsel %vm2315_vm3, 1.0, %v2291_v2  ;;  %v2372_v31 = vmul.f32 %v4073_v35, %v5404_v39  ;;  %v2373_v25 = vmul.f32 %v4073_v35, %v5407_v45 }
 0x492   : > { %4074 = vrcp.f32 %v2331_v51 }
 0x498   : > { %v4075_v53 = vpop.eup %4074 }
 0x499   : > { %v2374_v60 = vmul.f32 %v4075_v53, %v5416_v44  ;;  %v2375_v14 = vmul.f32 %v4075_v53, %v5419_v41 }
 0x49b   : > { %v2394_v5 = vpack.c.bf16 %v2374_v60, %v2372_v31  ;;  %v2395_v43 = vpack.c.bf16 %v2375_v14, %v2373_v25 }
 0x49d   : > { %2497 = vmatmul.bf16.gmra.mxu2 %v2394_v5  ;;  %2546 = vmatmul.bf16.gmra.mxu3 %v2395_v43 }
 0x4a7   : > { %v2294_v29 = vpop.xlane.xlu2 %2293 }
 0x4a8   : > { %vm2316_vm4 = vcmp.eq.f32.partialorder %v2294_v29, 0.0 }
 0x4a9   : > { %v2332_v13 = vsel %vm2316_vm4, 1.0, %v2294_v29 }
 0x4aa   : > { %4076 = vrcp.f32 %v2332_v13 }
 0x4ac   : > { %v2297_v28 = vpop.xlane.xlu0 %2296 }
 0x4ad   : > { %vm2317_vm5 = vcmp.eq.f32.partialorder %v2297_v28, 0.0 }
 0x4ae   : > { %v2333_v54 = vsel %vm2317_vm5, 1.0, %v2297_v28 }
 0x4af   : > { %4078 = vrcp.f32 %v2333_v54  ;;  %v2303_v22 = vpop.xlane.xlu2 %2302 }
 0x4b0   : > { %v4077_v44 = vpop.eup %4076  ;;  %vm2319_vm7 = vcmp.eq.f32.partialorder %v2303_v22, 0.0 }
 0x4b1   : > { %v2478_v40 = vpop.f32.mrf.mxu2  ;;  %v2527_v39 = vpop.f32.mrf.mxu3  ;;  %v2376_v49 = vmul.f32 %v4077_v44, %v5448_v21  ;;  %v2377_v52 = vmul.f32 %v4077_v44, %v5451_v50  ;;  %v2335_v35 = vsel %vm2319_vm7, 1.0, %v2303_v22  ;;  %v5560_v44 = vld [vmem:[%s739_s19] ss:$0 sm:$0xff]  ;;  %v1847_v22 = vadd.f32 %v5369_v36, %v5372_v26 }
 0x4b2   : > { %v2528_v42 = vadd.f32 %v2527_v39, %v2478_v40 }
 0x4b4   : > { %v2300_v45 = vpop.xlane.xlu1 %2299  ;;  %2582 = vrot.lane.b32.xlu2 %v2528_v42, %s4164_s23  ;;  %v3837_v42 = vld [vmem:[%s750_s0 + $0x8] sm:$0xff] }
 0x4b5   : > { %v4079_v41 = vpop.eup %4078  ;;  %vm2318_vm6 = vcmp.eq.f32.partialorder %v2300_v45, 0.0  ;;  %2853 = vmatpush.bf16.msra.mxu1 %v3837_v42  ;;  %3842 = vmatpush.bf16.msra.mxu3 %v3837_v42 }
 0x4b6   : > { %v2378_v62 = vmul.f32 %v4079_v41, %v5462_v57  ;;  %v2379_v16 = vmul.f32 %v4079_v41, %v5465_v33  ;;  %v2334_v34 = vsel %vm2318_vm6, 1.0, %v2300_v45  ;;  %v3836_v45 = vld [vmem:[%s750_s0] sm:$0xff] }
 0x4b7   : > { %4080 = vrcp.f32 %v2334_v34  ;;  %v5569_v41 = vld [vmem:[%s742_s20] ss:$0 sm:$0xff]  ;;  %v1849_v34 = vadd.f32 %v5375_v56, %v5377_v3 }
 0x4b8   : > { %v2396_v4 = vpack.c.bf16 %v2378_v62, %v2376_v49  ;;  %v2397_v0 = vpack.c.bf16 %v2379_v16, %v2377_v52  ;;  %4082 = vrcp.f32 %v2335_v35  ;;  %v5577_v52 = vld [vmem:[%s745_s2] ss:$0 sm:$0xff]  ;;  %s753_s2 = scalar_lea.vmem %s5846_s10, %s4274_s29 }
 0x4b9   : > { %v2480_v2 = vpop.f32.mrf.mxu2  ;;  %v2529_v51 = vpop.f32.mrf.mxu3  ;;  %2854 = vmatpush.bf16.msra.mxu1 %v3836_v45  ;;  %3843 = vmatpush.bf16.msra.mxu3 %v3836_v45 }
 0x4ba   : > { %2502 = vmatmul.bf16.gmra.mxu2 %v2396_v4  ;;  %v2530_v53 = vadd.f32 %v2529_v51, %v2480_v2  ;;  %2551 = vmatmul.bf16.gmra.mxu3 %v2397_v0 }
 0x4bc   : > { %2584 = vrot.lane.b32.xlu0 %v2530_v53, %s4164_s23 }
 0x4bd   : > { %v4081_v21 = vpop.eup %4080 }
 0x4be   : > { %v4083_v60 = vpop.eup %4082  ;;  %v2380_v33 = vmul.f32 %v4081_v21, %v5487_v9  ;;  %v2381_v25 = vmul.f32 %v4081_v21, %v5490_v38 }
 0x4bf   : > { %v2382_v14 = vmul.f32 %v4083_v60, %v5468_v6  ;;  %v2383_v5 = vmul.f32 %v4083_v60, %v5471_v10 }
 0x4c1   : > { %v2483_v57 = vpop.f32.mrf.mxu2  ;;  %v2532_v31 = vpop.f32.mrf.mxu3  ;;  %v2398_v43 = vpack.c.bf16 %v2382_v14, %v2380_v33  ;;  %v2399_v29 = vpack.c.bf16 %v2383_v5, %v2381_v25 }
 0x4c2   : > { %v2533_v50 = vadd.f32 %v2532_v31, %v2483_v57 }
 0x4c4   : > { %2586 = vrot.lane.b32.xlu1 %v2533_v50, %s4164_s23 }
 0x4c9   : > { %v2485_v13 = vpop.f32.mrf.mxu2  ;;  %v2534_v28 = vpop.f32.mrf.mxu3 }
 0x4ca   : > { %2507 = vmatmul.bf16.gmra.mxu2 %v2398_v43  ;;  %v2535_v54 = vadd.f32 %v2534_v28, %v2485_v13  ;;  %2556 = vmatmul.bf16.gmra.mxu3 %v2399_v29 }
 0x4cc   : > { %2588 = vrot.lane.b32.xlu2 %v2535_v54, %s4164_s23 }
 0x4d1   : > { %v2488_v40 = vpop.f32.mrf.mxu2  ;;  %v2537_v9 = vpop.f32.mrf.mxu3 }
 0x4d2   : > { %v2538_v38 = vadd.f32 %v2537_v9, %v2488_v40  ;;  %v1852_v9 = vadd.f32 %v5381_v24, %v5383_v8  ;;  %v1854_v24 = vadd.f32 %v5385_v18, %v5397_v61  ;;  %v1859_v8 = vadd.f32 %v5413_v47, %v5421_v37 }
 0x4d3   : > { %v1857_v18 = vadd.f32 %v5399_v48, %v5409_v59 }
 0x4d4   : > { %2590 = vrot.lane.b32.xlu0 %v2538_v38, %s4164_s23 }
 0x4d9   : > { %v2490_v6 = vpop.f32.mrf.mxu2  ;;  %v2539_v10 = vpop.f32.mrf.mxu3 }
 0x4da   : > { %v2540_v39 = vadd.f32 %v2539_v10, %v2490_v6 }
 0x4dc   : > { %2592 = vrot.lane.b32.xlu1 %v2540_v39, %s4164_s23 }
 0x4ed   : > { %v2579_v49 = vpop.permute.xlu0 %2578 }
 0x4ee   : > { %v2627_v62 = vsel %vm2626_vm8, %v1847_v22, %v2579_v49 }
 0x4ef   : > { %v2647_v36 = vadd.f32 %v5560_v44, %v2627_v62 }
 0x4f1   : > { %v2667_v26 = vmul.f32 %v5569_v41, %v2647_v36 }
 0x4f3   : > { %v2687_v16 = vadd.f32 %v5577_v52, %v2667_v26 }
 0x4f5   : > { %v2719_v4 = vmin.f32 %v2687_v16, 0.0  ;;  %v2581_v0 = vpop.permute.xlu1 %2580  ;;  %vm2703_vm9 = vcmp.gt.f32.partialorder %v2687_v16, 0.0 }
 0x4f6   : > { %v2628_v2 = vsel %vm2626_vm8, %v1849_v34, %v2581_v0 }
 0x4f7   : > { %v2648_v51 = vadd.f32 %v5560_v44, %v2628_v2  ;;  %v2735_v35 = vmul.f32 1.442695, %v2719_v4 }
 0x4f9   : > { %v2668_v53 = vmul.f32 %v5569_v41, %v2648_v51  ;;  %4084 = vpow2.f32 %v2735_v35 }
 0x4fb   : > { %v2688_v21 = vadd.f32 %v5577_v52, %v2668_v53 }
 0x4fd   : > { %v2720_v57 = vmin.f32 %v2688_v21, 0.0  ;;  %vm2704_vm10 = vcmp.gt.f32.partialorder %v2688_v21, 0.0 }
 0x4ff   : > { %v2737_v31 = vmul.f32 1.442695, %v2720_v57  ;;  %v4085_v50 = vpop.eup %4084 }
 0x500   : > { %v3733_v60 = vadd.f32 -1.0, %v4085_v50 }
 0x501   : > { %4086 = vpow2.f32 %v2737_v31 }
 0x502   : > { %v2783_v56 = vsel %vm2703_vm9, %v2687_v16, %v3733_v60 }
 0x507   : > { %v4087_v33 = vpop.eup %4086 }
 0x508   : > { %v3734_v25 = vadd.f32 -1.0, %v4087_v33 }
 0x50a   : > { %v2784_v3 = vsel %vm2704_vm10, %v2688_v21, %v3734_v25 }
 0x50b   : > { %v2799_v14 = vpack.c.bf16 %v2784_v3, %v2783_v56 }
 0x50d   : > { %3757 = vmatmul.msk.bf16.vlgmr.msra.gmra.mxu1 %vm1046_vm1, %v2799_v14 }
 0x50e   : > { %v2583_v40 = vpop.permute.xlu2 %2582 }
 0x50f   : > { %v2629_v38 = vsel %vm2626_vm8, %v1852_v9, %v2583_v40 }
 0x510   : > { %v2493_v5 = vpop.f32.mrf.mxu2  ;;  %v2542_v43 = vpop.f32.mrf.mxu3  ;;  %v2649_v42 = vadd.f32 %v5560_v44, %v2629_v38 }
 0x511   : > { %v2543_v29 = vadd.f32 %v2542_v43, %v2493_v5 }
 0x512   : > { %v2669_v22 = vmul.f32 %v5569_v41, %v2649_v42 }
 0x513   : > { %2594 = vrot.lane.b32.xlu2 %v2543_v29, %s4164_s23 }
 0x514   : > { %v2689_v36 = vadd.f32 %v5577_v52, %v2669_v22 }
 0x516   : > { %v2721_v16 = vmin.f32 %v2689_v36, 0.0  ;;  %vm2705_vm11 = vcmp.gt.f32.partialorder %v2689_v36, 0.0 }
 0x518   : > { %v2495_v13 = vpop.f32.mrf.mxu2  ;;  %v2544_v28 = vpop.f32.mrf.mxu3  ;;  %v2739_v53 = vmul.f32 1.442695, %v2721_v16 }
 0x519   : > { %v2545_v54 = vadd.f32 %v2544_v28, %v2495_v13 }
 0x51a   : > { %4088 = vpow2.f32 %v2739_v53 }
 0x51b   : > { %2596 = vrot.lane.b32.xlu0 %v2545_v54, %s4164_s23 }
 0x520   : > { %v2498_v6 = vpop.f32.mrf.mxu2  ;;  %v2547_v10 = vpop.f32.mrf.mxu3 }
 0x521   : > { %v2548_v39 = vadd.f32 %v2547_v10, %v2498_v6  ;;  %v4089_v25 = vpop.eup %4088  ;;  %v1862_v6 = vadd.f32 %v5425_v63, %v5429_v12 }
 0x522   : > { %v3735_v43 = vadd.f32 -1.0, %v4089_v25 }
 0x523   : > { %2598 = vrot.lane.b32.xlu1 %v2548_v39, %s4164_s23 }
 0x524   : > { %v2785_v40 = vsel %vm2705_vm11, %v2689_v36, %v3735_v43  ;;  %v1867_v43 = vadd.f32 %v5445_v7, %v5455_v27 }
 0x526   : > { %v2589_v26 = vpop.permute.xlu2 %2588 }
 0x527   : > { %v2632_v4 = vsel %vm2626_vm8, %v1859_v8, %v2589_v26 }
 0x528   : > { %v2500_v45 = vpop.f32.mrf.mxu2  ;;  %v2549_v49 = vpop.f32.mrf.mxu3  ;;  %v2652_v51 = vadd.f32 %v5560_v44, %v2632_v4 }
 0x529   : > { %v2550_v62 = vadd.f32 %v2549_v49, %v2500_v45 }
 0x52a   : > { %v2672_v61 = vmul.f32 %v5569_v41, %v2652_v51 }
 0x52b   : > { %2600 = vrot.lane.b32.xlu2 %v2550_v62, %s4164_s23 }
 0x52c   : > { %v2692_v60 = vadd.f32 %v5577_v52, %v2672_v61 }
 0x52e   : > { %v2585_v34 = vpop.permute.xlu0 %2584  ;;  %v2724_v59 = vmin.f32 %v2692_v60, 0.0  ;;  %vm2708_vm14 = vcmp.gt.f32.partialorder %v2692_v60, 0.0 }
 0x52f   : > { %v2630_v0 = vsel %vm2626_vm8, %v1854_v24, %v2585_v34  ;;  %v1864_v24 = vadd.f32 %v5431_v20, %v5439_v30 }
 0x530   : > { %v2650_v2 = vadd.f32 %v5560_v44, %v2630_v0  ;;  %v2745_v54 = vmul.f32 1.442695, %v2724_v59 }
 0x532   : > { %v2670_v35 = vmul.f32 %v5569_v41, %v2650_v2 }
 0x534   : > { %v2690_v21 = vadd.f32 %v5577_v52, %v2670_v35 }
 0x536   : > { %v2722_v47 = vmin.f32 %v2690_v21, 0.0  ;;  %v2587_v37 = vpop.permute.xlu1 %2586  ;;  %vm2706_vm12 = vcmp.gt.f32.partialorder %v2690_v21, 0.0 }
 0x537   : > { %v2631_v57 = vsel %vm2626_vm8, %v1857_v18, %v2587_v37 }
 0x538   : > { %v2651_v31 = vadd.f32 %v5560_v44, %v2631_v57  ;;  %v2741_v50 = vmul.f32 1.442695, %v2722_v47 }
 0x53a   : > { %v2671_v33 = vmul.f32 %v5569_v41, %v2651_v31  ;;  %4090 = vpow2.f32 %v2741_v50 }
 0x53c   : > { %v2691_v56 = vadd.f32 %v5577_v52, %v2671_v33 }
 0x53d   : > { %v2503_v3 = vpop.f32.mrf.mxu2  ;;  %v2552_v48 = vpop.f32.mrf.mxu3 }
 0x53e   : > { %v2723_v14 = vmin.f32 %v2691_v56, 0.0  ;;  %v2553_v5 = vadd.f32 %v2552_v48, %v2503_v3  ;;  %vm2707_vm13 = vcmp.gt.f32.partialorder %v2691_v56, 0.0 }
 0x540   : > { %v4091_v29 = vpop.eup %4090  ;;  %2602 = vrot.lane.b32.xlu2 %v2553_v5, %s4164_s23  ;;  %v2743_v13 = vmul.f32 1.442695, %v2723_v14  ;;  %v4165_v14 = vmov 16  }
 0x541   : > { %v3736_v28 = vadd.f32 -1.0, %v4091_v29  ;;  %3885 = vset.pattern.permute.xlu1 %v4165_v14  ;;  %3886 = vset.pattern.permute.xlu2 %v4165_v14 }
 0x542   : > { %4092 = vpow2.f32 %v2743_v13  ;;  %3887 = vset.pattern.permute.xlu0 %v4165_v14 }
 0x543   : > { %v2786_v9 = vsel %vm2706_vm12, %v2690_v21, %v3736_v28  ;;  %4094 = vpow2.f32 %v2745_v54  ;;  %v1874_v28 = vadd.f32 %v5497_v17, %v5501_v55 }
 0x544   : > { %v2800_v38 = vpack.c.bf16 %v2786_v9, %v2785_v40 }
 0x545   : > { %v2505_v10 = vpop.f32.mrf.mxu2  ;;  %v2554_v39 = vpop.f32.mrf.mxu3 }
 0x546   : > { %3758 = vmatmul.msk.bf16.gmra.mxu1 %vm1046_vm1, %v2800_v38  ;;  %v2591_v42 = vpop.permute.xlu0 %2590  ;;  %v2555_v37 = vadd.f32 %v2554_v39, %v2505_v10  ;;  %v1869_v10 = vadd.f32 %v5459_v23, %v5477_v32  ;;  %v1872_v32 = vadd.f32 %v5484_v11, %v5495_v1 }
 0x547   : > { %v2633_v22 = vsel %vm2626_vm8, %v1862_v6, %v2591_v42 }
 0x548   : > { %v2653_v45 = vadd.f32 %v5560_v44, %v2633_v22  ;;  %v4093_v49 = vpop.eup %4092 }
 0x549   : > { %v4095_v36 = vpop.eup %4094  ;;  %v3737_v8 = vadd.f32 -1.0, %v4093_v49 }
 0x54a   : > { %v2673_v62 = vmul.f32 %v5569_v41, %v2653_v45  ;;  %v3738_v2 = vadd.f32 -1.0, %v4095_v36 }
 0x54b   : > { %v2787_v35 = vsel %vm2707_vm13, %v2691_v56, %v3737_v8 }
 0x54c   : > { %v2693_v26 = vadd.f32 %v5577_v52, %v2673_v62  ;;  %v2788_v20 = vsel %vm2708_vm14, %v2692_v60, %v3738_v2 }
 0x54d   : > { %v2508_v63 = vpop.f32.mrf.mxu2  ;;  %v2557_v12 = vpop.f32.mrf.mxu3  ;;  %v2801_v18 = vpack.c.bf16 %v2788_v20, %v2787_v35 }
 0x54e   : > { %v2725_v16 = vmin.f32 %v2693_v26, 0.0  ;;  %v2558_v34 = vadd.f32 %v2557_v12, %v2508_v63  ;;  %v2593_v4 = vpop.permute.xlu1 %2592  ;;  %vm2709_vm15 = vcmp.gt.f32.partialorder %v2693_v26, 0.0 }
 0x54f   : > { %v2634_v0 = vsel %vm2626_vm8, %v1864_v24, %v2593_v4 }
 0x550   : > { %v2654_v51 = vadd.f32 %v5560_v44, %v2634_v0  ;;  %2606 = vrot.lane.b32.xlu0 %v2558_v34, %s4164_s23  ;;  %v2747_v53 = vmul.f32 1.442695, %v2725_v16 }
 0x552   : > { %v2674_v21 = vmul.f32 %v5569_v41, %v2654_v51  ;;  %4096 = vpow2.f32 %v2747_v53 }
 0x554   : > { %v2694_v30 = vadd.f32 %v5577_v52, %v2674_v21 }
 0x555   : > { %v2510_v61 = vpop.f32.mrf.mxu2  ;;  %v2559_v47 = vpop.f32.mrf.mxu3 }
 0x556   : > { %v2726_v57 = vmin.f32 %v2694_v30, 0.0  ;;  %v2560_v31 = vadd.f32 %v2559_v47, %v2510_v61  ;;  %3759 = vmatmul.msk.bf16.gmra.mxu1 %vm1046_vm1, %v2801_v18  ;;  %vm2710_vm0 = vcmp.gt.f32.partialorder %v2694_v30, 0.0 }
 0x558   : > { %v2749_v50 = vmul.f32 1.442695, %v2726_v57  ;;  %2604 = vrot.lane.b32.xlu0 %v2555_v37, %s4164_s23  ;;  %2608 = vrot.lane.b32.xlu1 %v2560_v31, %s4164_s23  ;;  %v4097_v33 = vpop.eup %4096 }
 0x559   : > { %v3739_v25 = vadd.f32 -1.0, %v4097_v33 }
 0x55a   : > { %4098 = vpow2.f32 %v2749_v50 }
 0x55b   : > { %v2789_v3 = vsel %vm2709_vm15, %v2693_v26, %v3739_v25 }
 0x560   : > { %v4099_v60 = vpop.eup %4098 }
 0x561   : > { %v3740_v56 = vadd.f32 -1.0, %v4099_v60 }
 0x563   : > { %v2790_v48 = vsel %vm2710_vm0, %v2694_v30, %v3740_v56 }
 0x564   : > { %v2802_v59 = vpack.c.bf16 %v2790_v48, %v2789_v3 }
 0x566   : > { %3760 = vmatmul.msk.bf16.gmra.mxu1 %vm1046_vm1, %v2802_v59 }
 0x56d   : > { %v2595_v5 = vpop.permute.xlu2 %2594 }
 0x56e   : > { %v2635_v29 = vsel %vm2626_vm8, %v1867_v43, %v2595_v5 }
 0x56f   : > { %v2655_v13 = vadd.f32 %v5560_v44, %v2635_v29 }
 0x571   : > { %v2675_v54 = vmul.f32 %v5569_v41, %v2655_v13 }
 0x573   : > { %v2695_v38 = vadd.f32 %v5577_v52, %v2675_v54 }
 0x575   : > { %v2727_v27 = vmin.f32 %v2695_v38, 0.0  ;;  %vm2711_vm2 = vcmp.gt.f32.partialorder %v2695_v38, 0.0 }
 0x577   : > { %v2751_v22 = vmul.f32 1.442695, %v2727_v27 }
 0x579   : > { %4100 = vpow2.f32 %v2751_v22 }
 0x57f   : > { %v4101_v4 = vpop.eup %4100 }
 0x580   : > { %v3741_v1 = vadd.f32 -1.0, %v4101_v4 }
 0x582   : > { %v2791_v53 = vsel %vm2711_vm2, %v2695_v38, %v3741_v1 }
 0x585   : > { %v2601_v40 = vpop.permute.xlu2 %2600 }
 0x586   : > { %v2638_v9 = vsel %vm2626_vm8, %v1874_v28, %v2601_v40 }
 0x587   : > { %v2658_v6 = vadd.f32 %v5560_v44, %v2638_v9 }
 0x589   : > { %v2678_v17 = vmul.f32 %v5569_v41, %v2658_v6 }
 0x58a   : > { %v5648_v7 = vpop.f32.mrf.mxu1 }
 0x58b   : > { %2969 = vperm.xlu1 %3885, %v5648_v7   ;;  %v2698_v49 = vadd.f32 %v5577_v52, %v2678_v17 }
 0x58d   : > { %v2597_v39 = vpop.permute.xlu0 %2596  ;;  %v2730_v26 = vmin.f32 %v2698_v49, 0.0  ;;  %vm2714_vm5 = vcmp.gt.f32.partialorder %v2698_v49, 0.0 }
 0x58e   : > { %v2636_v55 = vsel %vm2626_vm8, %v1869_v10, %v2597_v39 }
 0x58f   : > { %v2656_v42 = vadd.f32 %v5560_v44, %v2636_v55  ;;  %v2757_v16 = vmul.f32 1.442695, %v2730_v26 }
 0x591   : > { %v2676_v45 = vmul.f32 %v5569_v41, %v2656_v42 }
 0x592   : > { %v5657_v23 = vpop.f32.mrf.mxu1 }
 0x593   : > { %v2696_v62 = vadd.f32 %v5577_v52, %v2676_v45  ;;  %2973 = vperm.xlu2 %3886, %v5657_v23  }
 0x595   : > { %v2728_v36 = vmin.f32 %v2696_v62, 0.0  ;;  %v2599_v24 = vpop.permute.xlu1 %2598  ;;  %vm2712_vm3 = vcmp.gt.f32.partialorder %v2696_v62, 0.0 }
 0x596   : > { %v2637_v12 = vsel %vm2626_vm8, %v1872_v32, %v2599_v24 }
 0x597   : > { %v2753_v63 = vmul.f32 1.442695, %v2728_v36  ;;  %v2657_v8 = vadd.f32 %v5560_v44, %v2637_v12 }
 0x599   : > { %4102 = vpow2.f32 %v2753_v63  ;;  %v2677_v34 = vmul.f32 %v5569_v41, %v2657_v8 }
 0x59a   : > { %4104 = vpow2.f32 %v2757_v16  ;;  %v2603_v50 = vpop.permute.xlu2 %2602 }
 0x59b   : > { %v2697_v0 = vadd.f32 %v5577_v52, %v2677_v34  ;;  %v2639_v33 = vsel %vm2626_vm8, %v5505_v46, %v2603_v50 }
 0x59c   : > { %v2659_v25 = vadd.f32 %v5560_v44, %v2639_v33 }
 0x59d   : > { %v2729_v11 = vmin.f32 %v2697_v0, 0.0  ;;  %vm2713_vm4 = vcmp.gt.f32.partialorder %v2697_v0, 0.0 }
 0x59e   : > { %v2679_v56 = vmul.f32 %v5569_v41, %v2659_v25  ;;  %v3151_v25 = vpack.c.bf16 %v5657_v23, %v5648_v7 }
 0x59f   : > { %v4103_v2 = vpop.eup %4102  ;;  %v2755_v51 = vmul.f32 1.442695, %v2729_v11 }
 0x5a0   : > { %v3742_v35 = vadd.f32 -1.0, %v4103_v2  ;;  %v4105_v30 = vpop.eup %4104  ;;  %v2699_v5 = vadd.f32 %v5577_v52, %v2679_v56 }
 0x5a1   : > { %4106 = vpow2.f32 %v2755_v51  ;;  %v3744_v18 = vadd.f32 -1.0, %v4105_v30 }
 0x5a2   : > { %v2792_v21 = vsel %vm2712_vm3, %v2696_v62, %v3742_v35  ;;  %v2731_v28 = vmin.f32 %v2699_v5, 0.0  ;;  %vm2715_vm9 = vcmp.gt.f32.partialorder %v2699_v5, 0.0 }
 0x5a3   : > { %v2803_v20 = vpack.c.bf16 %v2792_v21, %v2791_v53  ;;  %v2794_v57 = vsel %vm2714_vm5, %v2698_v49, %v3744_v18 }
 0x5a4   : > { %v2759_v39 = vmul.f32 1.442695, %v2731_v28 }
 0x5a5   : > { %3761 = vmatmul.msk.bf16.gmra.mxu1 %vm1046_vm1, %v2803_v20 }
 0x5a7   : > { %v4107_v61 = vpop.eup %4106 }
 0x5a8   : > { %v3743_v47 = vadd.f32 -1.0, %v4107_v61  ;;  %v2896_v61 = vld [vmem:[%s753_s2] sm:$0x1] }
 0x5aa   : > { %v2793_v37 = vsel %vm2713_vm4, %v2697_v0, %v3743_v47 }
 0x5ab   : > { %v2804_v31 = vpack.c.bf16 %v2794_v57, %v2793_v37 }
 0x5b5   : > { %3762 = vmatmul.msk.bf16.gmra.mxu1 %vm1046_vm1, %v2804_v31 }
 0x5c2   : > { %v2607_v60 = vpop.permute.xlu0 %2606 }
 0x5c3   : > { %v2641_v3 = vsel %vm2626_vm8, %v5521_v58, %v2607_v60  ;;  %v5674_v48 = vpop.f32.mrf.mxu1 }
 0x5c4   : > { %v2661_v59 = vadd.f32 %v5560_v44, %v2641_v3  ;;  %2977 = vperm.xlu0 %3887, %v5674_v48  }
 0x5c6   : > { %v2681_v14 = vmul.f32 %v5569_v41, %v2661_v59 }
 0x5c8   : > { %v2701_v46 = vadd.f32 %v5577_v52, %v2681_v14 }
 0x5ca   : > { %v2733_v43 = vmin.f32 %v2701_v46, 0.0  ;;  %v2609_v29 = vpop.permute.xlu1 %2608  ;;  %v2605_v13 = vpop.permute.xlu0 %2604  ;;  %vm2717_vm6 = vcmp.gt.f32.partialorder %v2701_v46, 0.0 }
 0x5cb   : > { %v2642_v54 = vsel %vm2626_vm8, %v5523_v19, %v2609_v29  ;;  %v2640_v58 = vsel %vm2626_vm8, %v5507_v15, %v2605_v13  ;;  %v5685_v40 = vpop.f32.mrf.mxu1 }
 0x5cc   : > { %v2662_v9 = vadd.f32 %v5560_v44, %v2642_v54  ;;  %v2660_v38 = vadd.f32 %v5560_v44, %v2640_v58  ;;  %2981 = vperm.xlu1 %3885, %v5685_v40   ;;  %v2763_v6 = vmul.f32 1.442695, %v2733_v43  ;;  %v3152_v33 = vpack.c.bf16 %v5685_v40, %v5674_v48 }
 0x5ce   : > { %v2682_v10 = vmul.f32 %v5569_v41, %v2662_v9  ;;  %v2680_v27 = vmul.f32 %v5569_v41, %v2660_v38  ;;  %4108 = vpow2.f32 %v2763_v6 }
 0x5cf   : > { %4110 = vpow2.f32 %v2759_v39 }
 0x5d0   : > { %v2702_v17 = vadd.f32 %v5577_v52, %v2682_v10  ;;  %v2700_v19 = vadd.f32 %v5577_v52, %v2680_v27 }
 0x5d2   : > { %v2734_v15 = vmin.f32 %v2702_v17, 0.0  ;;  %v2732_v55 = vmin.f32 %v2700_v19, 0.0  ;;  %vm2718_vm7 = vcmp.gt.f32.partialorder %v2702_v17, 0.0  ;;  %vm2716_vm10 = vcmp.gt.f32.partialorder %v2700_v19, 0.0 }
 0x5d3   : > { %v5694_v42 = vpop.f32.mrf.mxu1 }
 0x5d4   : > { %v2765_v22 = vmul.f32 1.442695, %v2734_v15  ;;  %v2761_v44 = vmul.f32 1.442695, %v2732_v55  ;;  %2985 = vperm.xlu2 %3886, %v5694_v42   ;;  %v4109_v45 = vpop.eup %4108 }
 0x5d5   : > { %v4111_v49 = vpop.eup %4110  ;;  %v3747_v41 = vadd.f32 -1.0, %v4109_v45 }
 0x5d6   : > { %4112 = vpow2.f32 %v2765_v22  ;;  %v3745_v36 = vadd.f32 -1.0, %v4111_v49 }
 0x5d7   : > { %4114 = vpow2.f32 %v2761_v44  ;;  %v2797_v63 = vsel %vm2717_vm6, %v2701_v46, %v3747_v41 }
 0x5d8   : > { %v2795_v16 = vsel %vm2715_vm9, %v2699_v5, %v3745_v36 }
 0x5db   : > { %v2868_v62 = vpop.f32.mrf.mxu1 }
 0x5dc   : > { %v4113_v32 = vpop.eup %4112  ;;  %2989 = vperm.xlu1 %3885, %v2868_v62   ;;  %v3153_v50 = vpack.c.bf16 %v2868_v62, %v5694_v42 }
 0x5dd   : > { %v4115_v52 = vpop.eup %4114  ;;  %v3748_v26 = vadd.f32 -1.0, %v4113_v32 }
 0x5de   : > { %v3746_v24 = vadd.f32 -1.0, %v4115_v52 }
 0x5df   : > { %v2798_v12 = vsel %vm2718_vm7, %v2702_v17, %v3748_v26 }
 0x5e0   : > { %v2806_v8 = vpack.c.bf16 %v2798_v12, %v2797_v63  ;;  %v2796_v34 = vsel %vm2716_vm10, %v2700_v19, %v3746_v24  ;;  %v3033_v63 = vld [vmem:[%s724_s1] sm:$0xff] }
 0x5e1   : > { %v2805_v4 = vpack.c.bf16 %v2796_v34, %v2795_v16 }
 0x5e2   : > { %3764 = vmatmul.msk.bf16.vlgmr.msra.gmra.mxu3 %vm1046_vm1, %v2806_v8 }
 0x5e3   : > { %3763 = vmatmul.msk.bf16.gmra.mxu1 %vm1046_vm1, %v2805_v4  ;;  %v2871_v0 = vpop.f32.mrf.mxu1  ;;  %v3035_v4 = vunpack.c.0.s8 %v3033_v63 }
 0x5e4   : > { %2993 = vperm.xlu1 %3885, %v2871_v0  }
 0x5eb   : > { %v2873_v11 = vpop.f32.mrf.mxu1 }
 0x5ec   : > { %2997 = vperm.xlu1 %3885, %v2873_v11   ;;  %v3154_v31 = vpack.c.bf16 %v2873_v11, %v2871_v0 }
 0x5ed   : > { %v2974_v3 = vpop.permute.xlu2 %2973 }
 0x5fd   : > { %v2970_v60 = vpop.permute.xlu1 %2969 }
 0x622   : > { %v2876_v1 = vpop.f32.mrf.mxu1 }
 0x62a   : > { %v2878_v2 = vpop.f32.mrf.mxu1 }
 0x62b   : > { %v3155_v57 = vpack.c.bf16 %v2878_v2, %v2876_v1 }
 0x632   : > { %v2881_v51 = vpop.f32.mrf.mxu1 }
 0x636   : > { %v2978_v5 = vpop.permute.xlu0 %2977 }
 0x63a   : > { %v2883_v35 = vpop.f32.mrf.mxu1 }
 0x63b   : > { %v3156_v37 = vpack.c.bf16 %v2883_v35, %v2881_v51 }
 0x63e   : > { %v2982_v56 = vpop.permute.xlu1 %2981 }
 0x64e   : > { %v2990_v46 = vpop.permute.xlu1 %2989 }
 0x656   : > { %v2994_v27 = vpop.permute.xlu1 %2993 }
 0x65e   : > { %v2998_v22 = vpop.permute.xlu1 %2997 }
 0x660   : > { %v2886_v21 = vpop.f32.mrf.mxu1 }
 0x665   : > { %v2891_v53 = vpop.f32.mrf.mxu3 }
 0x668   : > { %v2888_v30 = vpop.f32.mrf.mxu1 }
 0x669   : > { %v3157_v47 = vpack.c.bf16 %v2888_v30, %v2886_v21 }
 0x66d   : > { %v2893_v20 = vpop.f32.mrf.mxu3 }
 0x66e   : > { %3765 = vmatpush.xpose.msk.msra.mxu2 %vm2626_vm8, %v2893_v20  ;;  %v3158_v18 = vpack.c.bf16 %v2893_v20, %v2891_v53  ;;  %v3034_v20 = vld [vmem:[%s724_s1 + $0x8] sm:$0xff] }
 0x672   : > { %3766 = vmatpush.xpose.msk.msra.mxu2 %vm2626_vm8, %v2891_v53 }
 0x676   : > { %3767 = vmatpush.xpose.msk.msra.mxu2 %vm2626_vm8, %v2888_v30 }
 0x67a   : > { %3768 = vmatpush.xpose.msk.msra.mxu2 %vm2626_vm8, %v2886_v21 }
 0x67e   : > { %3769 = vmatpush.xpose.msk.msra.mxu2 %vm2626_vm8, %v2883_v35 }
 0x682   : > { %3770 = vmatpush.xpose.msk.msra.mxu2 %vm2626_vm8, %v2881_v51  ;;  %v3043_v51 = vcvt.s32.f32 %v3035_v4 }
 0x686   : > { %3771 = vmatpush.xpose.msk.msra.mxu2 %vm2626_vm8, %v2878_v2 }
 0x68a   : > { %3772 = vmatpush.xpose.msk.msra.mxu2 %vm2626_vm8, %v2876_v1 }
 0x68e   : > { %3773 = vmatpush.xpose.msk.msra.mxu2 %vm2626_vm8, %v2873_v11  ;;  %v3036_v11 = vunpack.c.1.s8 %v3033_v63 }
 0x690   : > { %v3044_v30 = vcvt.s32.f32 %v3036_v11 }
 0x692   : > { %3774 = vmatpush.xpose.msk.msra.mxu2 %vm2626_vm8, %v2871_v0  ;;  %v3037_v0 = vunpack.c.2.s8 %v3033_v63 }
 0x694   : > { %v3045_v21 = vcvt.s32.f32 %v3037_v0 }
 0x696   : > { %3775 = vmatpush.xpose.msk.msra.mxu2 %vm2626_vm8, %v2868_v62 }
 0x69a   : > { %3776 = vmatpush.xpose.msk.msra.mxu2 %vm2626_vm8, %v5694_v42 }
 0x69e   : > { %3777 = vmatpush.xpose.msk.msra.mxu2 %vm2626_vm8, %v5685_v40 }
 0x6a2   : > { %3778 = vmatpush.xpose.msk.msra.mxu2 %vm2626_vm8, %v5674_v48  ;;  %v2986_v48 = vpop.permute.xlu2 %2985 }
 0x6a6   : > { %3779 = vmatpush.xpose.msk.msra.mxu2 %vm2626_vm8, %v5657_v23 }
 0x6aa   : > { %3780 = vmatpush.xpose.msk.msra.mxu2 %vm2626_vm8, %v5648_v7 }
 0x6ad   : > { %3781 = vmatmul.msk.f32.vlgmr.msra.gmra.mxu2 %vm2626_vm8, %v2896_v61 }
 0x6ae   : > { %3163 = vmatpush.bf16.msrb.mxu2 %v3158_v18 }
 0x6b2   : > { %3164 = vmatpush.bf16.msrb.mxu2 %v3157_v47 }
 0x6b6   : > { %3165 = vmatpush.bf16.msrb.mxu2 %v3156_v37 }
 0x6ba   : > { %3166 = vmatpush.bf16.msrb.mxu2 %v3155_v57 }
 0x6be   : > { %3167 = vmatpush.bf16.msrb.mxu2 %v3154_v31  ;;  %v3038_v31 = vunpack.c.3.s8 %v3033_v63 }
 0x6c2   : > { %3168 = vmatpush.bf16.msrb.mxu2 %v3153_v50 }
 0x6c6   : > { %3169 = vmatpush.bf16.msrb.mxu2 %v3152_v33 }
 0x6ca   : > { %3170 = vmatpush.bf16.msrb.mxu2 %v3151_v25  ;;  %v3039_v25 = vunpack.c.0.s8 %v3034_v20 }
 0x730   : > { %v2965_v59 = vpop.f32.mrf.mxu2 }
 0x731   : > { %v3000_v14 = vperm.slane %v2965_v59, 0  ;;  %v3046_v59 = vcvt.s32.f32 %v3038_v31 }
 0x733   : > { %v3002_v43 = vadd.f32 %v3000_v14, %v2974_v3  ;;  %v3001_v29 = vadd.f32 %v3000_v14, %v2970_v60  ;;  %v3003_v13 = vadd.f32 %v3000_v14, %v2978_v5  ;;  %v3005_v23 = vadd.f32 %v3000_v14, %v2986_v48 }
 0x734   : > { %v3004_v9 = vadd.f32 %v3000_v14, %v2982_v56  ;;  %v3007_v19 = vadd.f32 %v3000_v14, %v2994_v27  ;;  %v3006_v15 = vadd.f32 %v3000_v14, %v2990_v46  ;;  %v3008_v49 = vadd.f32 %v3000_v14, %v2998_v22 }
 0x735   : > { %vm3010_vm1 = vcmp.gt.f32.partialorder %v3002_v43, 0.0  ;;  %v3018_v28 = vmul.f32 0.2, %v3002_v43  ;;  %vm3009_vm11 = vcmp.gt.f32.partialorder %v3001_v29, 0.0  ;;  %v3017_v54 = vmul.f32 0.2, %v3001_v29 }
 0x736   : > { %vm3011_vm12 = vcmp.gt.f32.partialorder %v3003_v13, 0.0  ;;  %v3019_v58 = vmul.f32 0.2, %v3003_v13  ;;  %v3021_v6 = vmul.f32 0.2, %v3005_v23  ;;  %vm3013_vm13 = vcmp.gt.f32.partialorder %v3005_v23, 0.0 }
 0x737   : > { %v3026_v40 = vsel %vm3010_vm1, %v3002_v43, %v3018_v28  ;;  %v3025_v7 = vsel %vm3009_vm11, %v3001_v29, %v3017_v54  ;;  %v3020_v10 = vmul.f32 0.2, %v3004_v9  ;;  %vm3012_vm14 = vcmp.gt.f32.partialorder %v3004_v9, 0.0 }
 0x738   : > { %3053 = vmax.xlane.f32.xlu0 %v3026_v40  ;;  %3051 = vmax.xlane.f32.xlu2 %v3025_v7  ;;  %v3027_v38 = vsel %vm3011_vm12, %v3003_v13, %v3019_v58  ;;  %v3029_v39 = vsel %vm3013_vm13, %v3005_v23, %v3021_v6  ;;  %v3023_v55 = vmul.f32 0.2, %v3007_v19  ;;  %v3022_v42 = vmul.f32 0.2, %v3006_v15 }
 0x739   : > { %3055 = vmax.xlane.f32.xlu1 %v3027_v38  ;;  %v3028_v17 = vsel %vm3012_vm14, %v3004_v9, %v3020_v10  ;;  %vm3015_vm15 = vcmp.gt.f32.partialorder %v3007_v19, 0.0  ;;  %vm3014_vm0 = vcmp.gt.f32.partialorder %v3006_v15, 0.0  ;;  %v3024_v41 = vmul.f32 0.2, %v3008_v49 }
 0x73a   : > { %v3031_v44 = vsel %vm3015_vm15, %v3007_v19, %v3023_v55  ;;  %v3030_v45 = vsel %vm3014_vm0, %v3006_v15, %v3022_v42  ;;  %vm3016_vm2 = vcmp.gt.f32.partialorder %v3008_v49, 0.0  ;;  %v3047_v46 = vcvt.s32.f32 %v3039_v25 }
 0x73b   : > { %v5730_v62 = vsel %vm3016_vm2, %v3008_v49, %v3024_v41  ;;  %v3040_v48 = vunpack.c.1.s8 %v3034_v20 }
 0x73d   : > { %v3048_v23 = vcvt.s32.f32 %v3040_v48 }
 0x740   : > { %3059 = vmax.xlane.f32.xlu0 %v3029_v39  ;;  %3057 = vmax.xlane.f32.xlu2 %v3028_v17 }
 0x748   : > { %3063 = vmax.xlane.f32.xlu0 %v3031_v44  ;;  %3061 = vmax.xlane.f32.xlu2 %v3030_v45 }
 0x750   : > { %3065 = vmax.xlane.f32.xlu2 %v5730_v62 }
 0x7ab   : > { %v3052_v32 = vpop.xlane.xlu2 %3051  ;;  %v3054_v36 = vpop.xlane.xlu0 %3053 }
 0x7ac   : > { %v3067_v52 = vsub.f32 %v3025_v7, %v3052_v32  ;;  %v3056_v26 = vpop.xlane.xlu1 %3055  ;;  %v3068_v24 = vsub.f32 %v3026_v40, %v3054_v36  ;;  %v3041_v40 = vunpack.c.2.s8 %v3034_v20 }
 0x7ad   : > { %v3069_v12 = vsub.f32 %v3027_v38, %v3056_v26 }
 0x7ae   : > { %v3075_v8 = vmul.f32 1.442695, %v3067_v52  ;;  %v3077_v16 = vmul.f32 1.442695, %v3068_v24  ;;  %v3049_v38 = vcvt.s32.f32 %v3041_v40 }
 0x7af   : > { %v3079_v34 = vmul.f32 1.442695, %v3069_v12 }
 0x7b0   : > { %4116 = vpow2.f32 %v3075_v8 }
 0x7b1   : > { %4118 = vpow2.f32 %v3079_v34 }
 0x7b2   : > { %4120 = vpow2.f32 %v3077_v16 }
 0x7b3   : > { %v3058_v1 = vpop.xlane.xlu2 %3057  ;;  %v3060_v2 = vpop.xlane.xlu0 %3059 }
 0x7b4   : > { %v3070_v35 = vsub.f32 %v3028_v17, %v3058_v1  ;;  %v3071_v53 = vsub.f32 %v3029_v39, %v3060_v2  ;;  %v3042_v17 = vunpack.c.3.s8 %v3034_v20 }
 0x7b6   : > { %v4117_v18 = vpop.eup %4116  ;;  %v3081_v61 = vmul.f32 1.442695, %v3070_v35  ;;  %v3083_v47 = vmul.f32 1.442695, %v3071_v53  ;;  %v3050_v15 = vcvt.s32.f32 %v3042_v17 }
 0x7b7   : > { %v4119_v37 = vpop.eup %4118  ;;  %v3091_v57 = vmul.f32 %v4117_v18, %v3043_v51 }
 0x7b8   : > { %v4121_v50 = vpop.eup %4120  ;;  %4122 = vpow2.f32 %v3081_v61  ;;  %v5738_v33 = vmul.f32 %v4119_v37, %v3045_v21 }
 0x7b9   : > { %4124 = vpow2.f32 %v3083_v47  ;;  %3099 = vadd.xlane.f32.xlu0 %v3091_v57  ;;  %v3092_v60 = vmul.f32 %v4121_v50, %v3044_v30 }
 0x7ba   : > { %3103 = vadd.xlane.f32.xlu1 %v5738_v33 }
 0x7bb   : > { %3101 = vadd.xlane.f32.xlu2 %v3092_v60  ;;  %v3062_v56 = vpop.xlane.xlu2 %3061  ;;  %v3064_v3 = vpop.xlane.xlu0 %3063 }
 0x7bc   : > { %v3072_v14 = vsub.f32 %v3030_v45, %v3062_v56  ;;  %v3073_v5 = vsub.f32 %v3031_v44, %v3064_v3 }
 0x7be   : > { %v4123_v43 = vpop.eup %4122  ;;  %v3085_v29 = vmul.f32 1.442695, %v3072_v14  ;;  %v3087_v13 = vmul.f32 1.442695, %v3073_v5 }
 0x7bf   : > { %v4125_v28 = vpop.eup %4124  ;;  %v3094_v54 = vmul.f32 %v4123_v43, %v3046_v59 }
 0x7c0   : > { %4126 = vpow2.f32 %v3085_v29  ;;  %v5741_v58 = vmul.f32 %v4125_v28, %v3047_v46 }
 0x7c1   : > { %4128 = vpow2.f32 %v3087_v13  ;;  %3105 = vadd.xlane.f32.xlu0 %v3094_v54 }
 0x7c3   : > { %3107 = vadd.xlane.f32.xlu2 %v5741_v58  ;;  %v3066_v7 = vpop.xlane.xlu2 %3065 }
 0x7c4   : > { %v3074_v9 = vsub.f32 %v5730_v62, %v3066_v7 }
 0x7c6   : > { %v4127_v6 = vpop.eup %4126  ;;  %v3089_v10 = vmul.f32 1.442695, %v3074_v9 }
 0x7c7   : > { %v4129_v27 = vpop.eup %4128  ;;  %v3096_v39 = vmul.f32 %v4127_v6, %v3048_v23 }
 0x7c8   : > { %4130 = vpow2.f32 %v3089_v10  ;;  %v3097_v19 = vmul.f32 %v4129_v27, %v3049_v38 }
 0x7c9   : > { %3109 = vadd.xlane.f32.xlu1 %v3096_v39 }
 0x7ca   : > { %3111 = vadd.xlane.f32.xlu0 %v3097_v19 }
 0x7ce   : > { %v4131_v55 = vpop.eup %4130 }
 0x7cf   : > { %v3098_v42 = vmul.f32 %v4131_v55, %v3050_v15 }
 0x7d1   : > { %3113 = vadd.xlane.f32.xlu2 %v3098_v42 }
 0x82c   : > { %v3100_v22 = vpop.xlane.xlu0 %3099 }
 0x82d   : > { %vm3115_vm3 = vcmp.eq.f32.partialorder %v3100_v22, 0.0  ;;  %v3104_v32 = vpop.xlane.xlu1 %3103 }
 0x82e   : > { %v3102_v44 = vpop.xlane.xlu2 %3101  ;;  %v3123_v45 = vsel %vm3115_vm3, 1.0, %v3100_v22  ;;  %vm3117_vm6 = vcmp.eq.f32.partialorder %v3104_v32, 0.0 }
 0x82f   : > { %vm3116_vm4 = vcmp.eq.f32.partialorder %v3102_v44, 0.0  ;;  %4132 = vrcp.f32 %v3123_v45  ;;  %v3125_v12 = vsel %vm3117_vm6, 1.0, %v3104_v32 }
 0x830   : > { %v3124_v49 = vsel %vm3116_vm4, 1.0, %v3102_v44 }
 0x831   : > { %4134 = vrcp.f32 %v3124_v49 }
 0x834   : > { %v3106_v41 = vpop.xlane.xlu0 %3105 }
 0x835   : > { %v4133_v62 = vpop.eup %4132  ;;  %vm3118_vm5 = vcmp.eq.f32.partialorder %v3106_v41, 0.0 }
 0x836   : > { %v3139_v36 = vmul.f32 %v4133_v62, %v3091_v57  ;;  %v3126_v24 = vsel %vm3118_vm5, 1.0, %v3106_v41  ;;  %v3108_v4 = vpop.xlane.xlu2 %3107 }
 0x837   : > { %v4135_v52 = vpop.eup %4134  ;;  %4136 = vrcp.f32 %v3126_v24  ;;  %vm3119_vm9 = vcmp.eq.f32.partialorder %v3108_v4, 0.0 }
 0x838   : > { %v3140_v26 = vmul.f32 %v4135_v52, %v3092_v60  ;;  %4138 = vrcp.f32 %v3125_v12  ;;  %v3127_v51 = vsel %vm3119_vm9, 1.0, %v3108_v4  ;;  %v3891_v60 = vld [vmem:[%s756_s22] ss:$0 sm:$0xff] }
 0x83a   : > { %v3147_v63 = vpack.c.bf16 %v3140_v26, %v3139_v36 }
 0x83c   : > { %3171 = vmatmul.bf16.vlgmr.msrb.gmra.mxu2 %v3147_v63  ;;  %v3110_v16 = vpop.xlane.xlu1 %3109 }
 0x83d   : > { %v4137_v8 = vpop.eup %4136  ;;  %vm3120_vm7 = vcmp.eq.f32.partialorder %v3110_v16, 0.0  ;;  %v3112_v20 = vpop.xlane.xlu0 %3111 }
 0x83e   : > { %v4139_v34 = vpop.eup %4138  ;;  %v3142_v0 = vmul.f32 %v4137_v8, %v3094_v54  ;;  %v3128_v1 = vsel %vm3120_vm7, 1.0, %v3110_v16  ;;  %vm3121_vm1 = vcmp.eq.f32.partialorder %v3112_v20, 0.0 }
 0x83f   : > { %v3141_v11 = vmul.f32 %v4139_v34, %v5738_v33  ;;  %4140 = vrcp.f32 %v3128_v1  ;;  %v3129_v37 = vsel %vm3121_vm1, 1.0, %v3112_v20 }
 0x840   : > { %4142 = vrcp.f32 %v3127_v51 }
 0x841   : > { %v3148_v2 = vpack.c.bf16 %v3142_v0, %v3141_v11 }
 0x844   : > { %v3114_v53 = vpop.xlane.xlu2 %3113 }
 0x845   : > { %v4141_v35 = vpop.eup %4140  ;;  %vm3122_vm10 = vcmp.eq.f32.partialorder %v3114_v53, 0.0 }
 0x846   : > { %v4143_v21 = vpop.eup %4142  ;;  %v3144_v30 = vmul.f32 %v4141_v35, %v3096_v39  ;;  %v3130_v61 = vsel %vm3122_vm10, 1.0, %v3114_v53 }
 0x847   : > { %v3143_v18 = vmul.f32 %v4143_v21, %v5741_v58  ;;  %4144 = vrcp.f32 %v3130_v61 }
 0x848   : > { %4146 = vrcp.f32 %v3129_v37 }
 0x849   : > { %v3149_v47 = vpack.c.bf16 %v3144_v30, %v3143_v18 }
 0x84c   : > { %3176 = vmatmul.bf16.gmra.mxu2 %v3148_v2 }
 0x84d   : > { %v4145_v57 = vpop.eup %4144 }
 0x84e   : > { %v4147_v31 = vpop.eup %4146  ;;  %v3146_v50 = vmul.f32 %v4145_v57, %v3098_v42 }
 0x84f   : > { %v3145_v33 = vmul.f32 %v4147_v31, %v3097_v19 }
 0x851   : > { %v3150_v25 = vpack.c.bf16 %v3146_v50, %v3145_v33 }
 0x85c   : > { %3181 = vmatmul.bf16.gmra.mxu2 %v3149_v47 }
 0x86c   : > { %3186 = vmatmul.bf16.gmra.mxu2 %v3150_v25 }
 0x8bf   : > { %v3172_v56 = vpop.f32.mrf.mxu2 }
 0x8c0   : > { %v3173_v3 = vadd.f32 %v3891_v60, %v3172_v56 }
 0x8c7   : > { %v3174_v59 = vpop.f32.mrf.mxu2 }
 0x8c8   : > { %v3175_v14 = vadd.f32 %v3891_v60, %v3174_v59 }
 0x8cf   : > { %v3177_v5 = vpop.f32.mrf.mxu2 }
 0x8d0   : > { %v3178_v46 = vadd.f32 %v3891_v60, %v3177_v5 }
 0x8d7   : > { %v3179_v43 = vpop.f32.mrf.mxu2 }
 0x8d8   : > { %v3180_v29 = vadd.f32 %v3891_v60, %v3179_v43 }
 0x8df   : > { %v3182_v13 = vpop.f32.mrf.mxu2 }
 0x8e0   : > { %v3183_v28 = vadd.f32 %v3891_v60, %v3182_v13 }
 0x8e7   : > { %v3184_v54 = vpop.f32.mrf.mxu2 }
 0x8e8   : > { %v3185_v48 = vadd.f32 %v3891_v60, %v3184_v54 }
 0x8ef   : > { %v3187_v58 = vpop.f32.mrf.mxu2 }
 0x8f0   : > { %v3188_v40 = vadd.f32 %v3891_v60, %v3187_v58 }
 0x8f4   : > { %3195 = sbr.rel (%p3782_p4) target bundleno = 2306 (0x902), region = 96 }
 0x8f7   : > { %v3189_v7 = vpop.f32.mrf.mxu2 }
 0x8f8   : > { %v3190_v23 = vadd.f32 %v3891_v60, %v3189_v7 }
 0x8f9   : > { %vm3196_vm11 = vcmask 392192   ;;  %v4166_v9 = vmov 0.0  }
 0x8fa   : > { %3197 = vst.msk [vmem:[#allocation2] sm:$0xff] %vm3196_vm11, %v4166_v9 }
 0x8fb   : > { %3198 = vst.msk [vmem:[#allocation2 + $0x8] sm:$0xff] %vm3196_vm11, %v4166_v9 }
 0x8fc   : > { %3199 = vst.msk [vmem:[#allocation2 + $0x10] sm:$0xff] %vm3196_vm11, %v4166_v9 }
 0x8fd   : > { %3200 = vst.msk [vmem:[#allocation2 + $0x18] sm:$0xff] %vm3196_vm11, %v4166_v9 }
 0x8fe   : > { %3201 = vst.msk [vmem:[#allocation2 + $0x20] sm:$0xff] %vm3196_vm11, %v4166_v9 }
 0x8ff   : > { %3202 = vst.msk [vmem:[#allocation2 + $0x28] sm:$0xff] %vm3196_vm11, %v4166_v9 }
 0x900   : > { %3203 = vst.msk [vmem:[#allocation2 + $0x30] sm:$0xff] %vm3196_vm11, %v4166_v9 }
 0x901   : > { %3204 = vst.msk [vmem:[#allocation2 + $0x38] sm:$0xff] %vm3196_vm11, %v4166_v9 }
 0x902 PF: > { %v3838_v38 = vld [vmem:[%s4288_s25] sm:$0xff]  ;;  %s6019_s2 = scalar_lea.vmem %s5839_s3, %s4274_s29  ;;  %vm3286_vm12 = vcmask 392192   ;;  %v3206_v36 = vld [vmem:[#allocation2 + $0x8] sm:$0xff]  ;;  %p3791_p5 = scmp.ne.s32.totalorder %s4268_s28, 2 }
 0x903   : > { %v4148_v6 = vld [vmem:[%s6019_s2] ss:$0 sm:$0xff]  ;;  %3256 = vmatpush.bf16.msrb.mxu0 %v3838_v38  ;;  %v3207_v24 = vld [vmem:[#allocation2 + $0x10] sm:$0xff] }
 0x904   : > { %v3217_v10 = vmul.f32 %v4148_v6, %v3173_v3  ;;  %v3218_v27 = vmul.f32 %v4148_v6, %v3175_v14  ;;  %v3219_v17 = vmul.f32 %v4148_v6, %v3178_v46  ;;  %v3220_v19 = vmul.f32 %v4148_v6, %v3180_v29  ;;  %v3205_v41 = vld [vmem:[#allocation2] sm:$0xff]  ;;  %v3208_v8 = vld [vmem:[#allocation2 + $0x18] sm:$0xff] }
 0x905   : > { %v3221_v55 = vmul.f32 %v4148_v6, %v3183_v28  ;;  %v3222_v42 = vmul.f32 %v4148_v6, %v3185_v48  ;;  %v3223_v44 = vmul.f32 %v4148_v6, %v3188_v40  ;;  %v3224_v45 = vmul.f32 %v4148_v6, %v3190_v23  ;;  %v3209_v4 = vld [vmem:[#allocation2 + $0x20] sm:$0xff] }
 0x906   : > { %v3225_v39 = vpack.c.bf16 %v3218_v27, %v3217_v10  ;;  %v3226_v15 = vpack.c.bf16 %v3220_v19, %v3219_v17  ;;  %v3210_v1 = vld [vmem:[#allocation2 + $0x28] sm:$0xff] }
 0x907   : > { %v3227_v22 = vpack.c.bf16 %v3222_v42, %v3221_v55  ;;  %v3228_v49 = vpack.c.bf16 %v3224_v45, %v3223_v44  ;;  %v3211_v35 = vld [vmem:[#allocation2 + $0x30] sm:$0xff] }
 0x908   : > { %3787 = vmatmul.msk.bf16.vlgmr.msrb.gmra.mxu0 %vm2626_vm8, %v3225_v39  ;;  %v3212_v20 = vld [vmem:[#allocation2 + $0x38] sm:$0xff] }
 0x918   : > { %3788 = vmatmul.msk.bf16.gmra.mxu0 %vm2626_vm8, %v3226_v15 }
 0x928   : > { %3789 = vmatmul.msk.bf16.gmra.mxu0 %vm2626_vm8, %v3227_v22 }
 0x938   : > { %3790 = vmatmul.msk.bf16.gmra.mxu0 %vm2626_vm8, %v3228_v49 }
 0x985   : > { %v3258_v62 = vpop.f32.mrf.mxu0 }
 0x986   : > { %v3278_v32 = vadd.f32 %v3258_v62, %v3205_v41 }
 0x988   : > { %3287 = vst.msk [vmem:[#allocation2] sm:$0xff] %vm3286_vm12, %v3278_v32 }
 0x98d   : > { %v3260_v52 = vpop.f32.mrf.mxu0 }
 0x98e   : > { %v3279_v26 = vadd.f32 %v3260_v52, %v3206_v36 }
 0x990   : > { %3288 = vst.msk [vmem:[#allocation2 + $0x8] sm:$0xff] %vm3286_vm12, %v3279_v26 }
 0x995   : > { %v3263_v63 = vpop.f32.mrf.mxu0 }
 0x996   : > { %v3280_v12 = vadd.f32 %v3263_v63, %v3207_v24 }
 0x998   : > { %3289 = vst.msk [vmem:[#allocation2 + $0x10] sm:$0xff] %vm3286_vm12, %v3280_v12 }
 0x99d   : > { %v3265_v16 = vpop.f32.mrf.mxu0 }
 0x99e   : > { %v3281_v34 = vadd.f32 %v3265_v16, %v3208_v8 }
 0x9a0   : > { %3290 = vst.msk [vmem:[#allocation2 + $0x18] sm:$0xff] %vm3286_vm12, %v3281_v34 }
 0x9a5   : > { %v3268_v0 = vpop.f32.mrf.mxu0 }
 0x9a6   : > { %v3282_v11 = vadd.f32 %v3268_v0, %v3209_v4 }
 0x9a8   : > { %3291 = vst.msk [vmem:[#allocation2 + $0x20] sm:$0xff] %vm3286_vm12, %v3282_v11 }
 0x9ad   : > { %v3270_v2 = vpop.f32.mrf.mxu0 }
 0x9ae   : > { %v3283_v51 = vadd.f32 %v3270_v2, %v3210_v1 }
 0x9b0   : > { %3292 = vst.msk [vmem:[#allocation2 + $0x28] sm:$0xff] %vm3286_vm12, %v3283_v51 }
 0x9b5   : > { %v3273_v53 = vpop.f32.mrf.mxu0 }
 0x9b6   : > { %v3284_v21 = vadd.f32 %v3273_v53, %v3211_v35 }
 0x9b8   : > { %3293 = vst.msk [vmem:[#allocation2 + $0x30] sm:$0xff] %vm3286_vm12, %v3284_v21 }
 0x9bc   : > { %3298 = sbr.rel (%p3791_p5) target bundleno = 2657 (0xa61), region = 100 }
 0x9bd   : > { %v3275_v30 = vpop.f32.mrf.mxu0 }
 0x9be   : > { %v3285_v18 = vadd.f32 %v3275_v30, %v3212_v20 }
 0x9c0   : > { %3294 = vst.msk [vmem:[#allocation2 + $0x38] sm:$0xff] %vm3286_vm12, %v3285_v18 }
 0x9c1   : > { %v3841_v61 = vld [vmem:[%s5852_s16 + $0x10] sm:$0xff]  ;;  %v3840_v47 = vld [vmem:[%s5852_s16 + $0x8] sm:$0xff]  ;;  %v3299_v37 = vld [vmem:[#allocation2] sm:$0xff] }
 0x9c2   : > { %v3300_v57 = vld [vmem:[#allocation2 + $0x8] sm:$0xff]  ;;  %3400 = vmatpush.bf16.msra.mxu0 %v3841_v61  ;;  %3844 = vmatpush.bf16.msra.mxu1 %v3841_v61  ;;  %v4149_v31 = vld [vmem:[%s5849_s13] ss:$0 sm:$0xff]  ;;  %v3301_v25 = vld [vmem:[#allocation2 + $0x10] sm:$0xff] }
 0x9c3   : > { %v4150_v50 = vld [vmem:[%s5850_s14] ss:$0 sm:$0xff]  ;;  %3845 = vmatpush.bf16.msra.mxu2 %v3841_v61  ;;  %3846 = vmatpush.bf16.msra.mxu3 %v3841_v61  ;;  %v3311_v60 = vadd.f32 %v4149_v31, %v3299_v37  ;;  %v3312_v56 = vadd.f32 %v4149_v31, %v3300_v57  ;;  %v3302_v3 = vld [vmem:[#allocation2 + $0x18] sm:$0xff]  ;;  %v3313_v59 = vadd.f32 %v4149_v31, %v3301_v25  ;;  %v3304_v5 = vld [vmem:[#allocation2 + $0x28] sm:$0xff] }
 0x9c4   : > { %v4151_v33 = vld [vmem:[%s5851_s15] ss:$0 sm:$0xff]  ;;  %v3314_v46 = vadd.f32 %v4149_v31, %v3302_v3  ;;  %v3316_v29 = vadd.f32 %v4149_v31, %v3304_v5  ;;  %v3305_v13 = vld [vmem:[#allocation2 + $0x30] sm:$0xff] }
 0x9c5   : > { %v3303_v14 = vld [vmem:[#allocation2 + $0x20] sm:$0xff]  ;;  %v3323_v54 = vmul.f32 %v4150_v50, %v3311_v60  ;;  %v3324_v48 = vmul.f32 %v4150_v50, %v3312_v56  ;;  %v3325_v58 = vmul.f32 %v4150_v50, %v3313_v59  ;;  %v3317_v27 = vadd.f32 %v4149_v31, %v3305_v13 }
 0x9c6   : > { %v3315_v43 = vadd.f32 %v4149_v31, %v3303_v14  ;;  %3401 = vmatpush.bf16.msra.mxu0 %v3840_v47  ;;  %3847 = vmatpush.bf16.msra.mxu1 %v3840_v47  ;;  %v3839_v28 = vld [vmem:[%s5852_s16] sm:$0xff]  ;;  %v3326_v7 = vmul.f32 %v4150_v50, %v3314_v46  ;;  %v3328_v9 = vmul.f32 %v4150_v50, %v3316_v29 }
 0x9c7   : > { %v3306_v40 = vld [vmem:[#allocation2 + $0x38] sm:$0xff]  ;;  %3848 = vmatpush.bf16.msra.mxu2 %v3840_v47  ;;  %3849 = vmatpush.bf16.msra.mxu3 %v3840_v47  ;;  %v3335_v38 = vadd.f32 %v4151_v33, %v3323_v54  ;;  %v3336_v6 = vadd.f32 %v4151_v33, %v3324_v48  ;;  %v3337_v10 = vadd.f32 %v4151_v33, %v3325_v58  ;;  %v4152_v16 = vld [vmem:[%s5853_s17] ss:$0 sm:$0xff] }
 0x9c8   : > { %v3327_v23 = vmul.f32 %v4150_v50, %v3315_v43  ;;  %v3338_v39 = vadd.f32 %v4151_v33, %v3326_v7  ;;  %v3340_v19 = vadd.f32 %v4151_v33, %v3328_v9  ;;  %v3318_v15 = vadd.f32 %v4149_v31, %v3306_v40 }
 0x9c9   : > { %v3343_v55 = vmax.f32 %v3335_v38, 0.0  ;;  %v3344_v42 = vmax.f32 %v3336_v6, 0.0  ;;  %v3345_v22 = vmax.f32 %v3337_v10, 0.0  ;;  %v3329_v44 = vmul.f32 %v4150_v50, %v3317_v27 }
 0x9ca   : > { %v3339_v17 = vadd.f32 %v4151_v33, %v3327_v23  ;;  %3402 = vmatpush.bf16.msra.mxu0 %v3839_v28  ;;  %3850 = vmatpush.bf16.msra.mxu1 %v3839_v28  ;;  %v3346_v45 = vmax.f32 %v3338_v39, 0.0  ;;  %v3348_v41 = vmax.f32 %v3340_v19, 0.0  ;;  %v3330_v62 = vmul.f32 %v4150_v50, %v3318_v15 }
 0x9cb   : > { %3851 = vmatpush.bf16.msra.mxu2 %v3839_v28  ;;  %3852 = vmatpush.bf16.msra.mxu3 %v3839_v28  ;;  %v3351_v32 = vpack.c.bf16 %v3344_v42, %v3343_v55  ;;  %v3341_v36 = vadd.f32 %v4151_v33, %v3329_v44 }
 0x9cc   : > { %v3347_v49 = vmax.f32 %v3339_v17, 0.0  ;;  %v3352_v52 = vpack.c.bf16 %v3346_v45, %v3345_v22  ;;  %v3342_v24 = vadd.f32 %v4151_v33, %v3330_v62 }
 0x9cd   : > { %3804 = vmatmul.msk.bf16.vlgmr.msra.gmra.mxu0 %vm3286_vm12, %v3351_v32  ;;  %v3349_v63 = vmax.f32 %v3341_v36, 0.0 }
 0x9ce   : > { %v3353_v26 = vpack.c.bf16 %v3348_v41, %v3347_v49  ;;  %3805 = vmatmul.msk.bf16.vlgmr.msra.gmra.mxu1 %vm3286_vm12, %v3352_v52  ;;  %v3350_v12 = vmax.f32 %v3342_v24, 0.0 }
 0x9d0   : > { %3806 = vmatmul.msk.bf16.vlgmr.msra.gmra.mxu2 %vm3286_vm12, %v3353_v26  ;;  %v3354_v8 = vpack.c.bf16 %v3350_v12, %v3349_v63 }
 0x9d2   : > { %3807 = vmatmul.msk.bf16.vlgmr.msra.gmra.mxu3 %vm3286_vm12, %v3354_v8 }
 0xa4a   : > { %v3404_v34 = vpop.f32.mrf.mxu0 }
 0xa4b   : > { %v3405_v4 = vadd.f32 %v4152_v16, %v3404_v34  ;;  %v3409_v0 = vpop.f32.mrf.mxu1 }
 0xa4c   : > { %v3410_v11 = vadd.f32 %v4152_v16, %v3409_v0 }
 0xa4d   : > { %3424 = vst.msk [vmem:[%s5854_s18] sm:$0xff] %vm2626_vm8, %v3405_v4 }
 0xa4e   : > { %3426 = vst.msk [vmem:[%s5854_s18 + $0x10] sm:$0xff] %vm2626_vm8, %v3410_v11 }
 0xa52   : > { %v3406_v51 = vpop.f32.mrf.mxu0 }
 0xa53   : > { %v3414_v1 = vpop.f32.mrf.mxu2  ;;  %v3407_v35 = vadd.f32 %v4152_v16, %v3406_v51  ;;  %v3411_v53 = vpop.f32.mrf.mxu1 }
 0xa54   : > { %v3415_v2 = vadd.f32 %v4152_v16, %v3414_v1  ;;  %v3412_v21 = vadd.f32 %v4152_v16, %v3411_v53 }
 0xa55   : > { %v3419_v20 = vpop.f32.mrf.mxu3  ;;  %3425 = vst.msk [vmem:[%s5854_s18 + $0x8] sm:$0xff] %vm2626_vm8, %v3407_v35 }
 0xa56   : > { %3428 = vst.msk [vmem:[%s5854_s18 + $0x20] sm:$0xff] %vm2626_vm8, %v3415_v2  ;;  %v3420_v30 = vadd.f32 %v4152_v16, %v3419_v20 }
 0xa57   : > { %3427 = vst.msk [vmem:[%s5854_s18 + $0x18] sm:$0xff] %vm2626_vm8, %v3412_v21 }
 0xa58   : > { %3430 = vst.msk [vmem:[%s5854_s18 + $0x30] sm:$0xff] %vm2626_vm8, %v3420_v30 }
 0xa5b   : > { %v3416_v18 = vpop.f32.mrf.mxu2 }
 0xa5c   : > { %v3417_v61 = vadd.f32 %v4152_v16, %v3416_v18 }
 0xa5d   : > { %v3421_v47 = vpop.f32.mrf.mxu3 }
 0xa5e   : > { %3429 = vst.msk [vmem:[%s5854_s18 + $0x28] sm:$0xff] %vm2626_vm8, %v3417_v61  ;;  %v3422_v37 = vadd.f32 %v4152_v16, %v3421_v47 }
 0xa60   : > { %3431 = vst.msk [vmem:[%s5854_s18 + $0x38] sm:$0xff] %vm2626_vm8, %v3422_v37 }
 0xa61 PF: > { %s6020_s29 = sld [smem:[#allocation3_spill]] }
 0xa67   : > { %s28_s27 = sadd.s32 1, %s6020_s29  }
 0xa68   : > { %p25_p6 = scmp.ge.s32.totalorder %s28_s27, 5  }
 0xa6a   :  { %27 = sbr.rel (!%p25_p6) target bundleno = 4 (0x4), region = 162 }

</bundles_post_ra>
